<compile_context>
chip_gen: v7x
topology: tpu7x:2x2x1
jax: 0.10.0
libtpu: 0.0.40
codegen_flags: <defaults>
</compile_context>

<pallas_src>
import functools

import jax
import jax.numpy as jnp
from jax.experimental import pallas as pl
from jax.experimental.pallas import tpu as pltpu

BN_EPS = 1e-3
_SUB = 8                                  # f32 sublane tile
_VMEM_LIMIT = 48 * 1024 * 1024            # < v7x 64 MiB physical, > default scoped

# MXU precision for every conv matmul.  DEFAULT (single bf16 pass) keeps the fused
# conv kernels at the MXU-issue roofline; set jax.lax.Precision.HIGHEST if bit-level
# closeness to an fp32 PyTorch reference is required for FID features (3-6x MXU cost).
MXU_PRECISION = jax.lax.Precision.DEFAULT


def _round_up(x, m):
    return (x + m - 1) // m * m


def _pad_width(x, width=None):
    """Zero-pad the W (second-to-last) dim of an NHWC tensor to a multiple of 8."""
    n, h, w, c = x.shape
    wp = _round_up(w, _SUB)
    if wp == w:
        return x
    return jnp.pad(x, ((0, 0), (0, 0), (0, wp - w), (0, 0)))


# ---------------------------------------------------------------------------
# Fused matmul + BatchNorm(scale,bias) + ReLU kernel
# (used for the stride-2 stem conv via a tiny K=27 patch tensor, and the 1x1 conv)
# ---------------------------------------------------------------------------
def _matmul_bn_relu_kernel(a_ref, b_ref, s_ref, c_ref, o_ref):
    # Single-shot K reduction (whole weight tile resident in VMEM); BN + ReLU epilogue
    # fused so activations are written exactly once.
    y = jnp.dot(a_ref[...], b_ref[...], preferred_element_type=jnp.float32,
                precision=MXU_PRECISION)
    y = y * s_ref[...] + c_ref[...]
    o_ref[...] = jnp.maximum(y, 0.0).astype(o_ref.dtype)


def matmul_bn_relu(a, b, scale, bias):
    """relu((a @ b) * scale + bias).

    a: (M, K) with M a multiple of 8; b: (K, N); scale/bias: (1, N).  Returns (M, N).
    """
    M, K = a.shape
    K2, N = b.shape
    assert K == K2 and M % _SUB == 0, (a.shape, b.shape)

    # Row-block size as a function of K (perf review): big blocks amortize the
    # ~0.35us per-grid-step overhead; small-K layers get the largest blocks while the
    # double-buffered working set stays well inside every generation's scoped VMEM.
    tm = 2048 if K <= 128 else 1024
    tm = min(tm, M)
    grid_m = pl.cdiv(M, tm)

    return pl.pallas_call(
        _matmul_bn_relu_kernel,
        out_shape=jax.ShapeDtypeStruct((M, N), jnp.float32),
        grid=(grid_m,),
        in_specs=[
            pl.BlockSpec((tm, K), lambda i: (i, 0)),   # streamed A row block
            pl.BlockSpec((K, N), lambda i: (0, 0)),    # resident weights
            pl.BlockSpec((1, N), lambda i: (0, 0)),    # resident BN scale
            pl.BlockSpec((1, N), lambda i: (0, 0)),    # resident BN bias
        ],
        out_specs=pl.BlockSpec((tm, N), lambda i: (i, 0)),
        compiler_params=pltpu.CompilerParams(
            dimension_semantics=("parallel",),
            vmem_limit_bytes=_VMEM_LIMIT),
    )(a, b, scale, bias)


def _im2col(x, k, stride):
    """XLA-side (ky, kx, cin)-ordered conv patches (only used for the stride-2 stem
    conv, whose patch tensor is tiny: K = 27)."""
    n, h, w, c = x.shape
    oh = (h - k) // stride + 1
    ow = (w - k) // stride + 1
    cols = [x[:, dy:dy + (oh - 1) * stride + 1:stride,
              dx:dx + (ow - 1) * stride + 1:stride, :]
            for dy in range(k) for dx in range(k)]
    return jnp.concatenate(cols, axis=-1), oh, ow


def conv_matmul_bn_relu(x, layer, *, k, stride):
    """Conv (valid) as XLA patch gather + fused Pallas matmul/BN/ReLU.  NHWC in/out."""
    n = x.shape[0]
    if k == 1:
        patches, oh, ow = x, x.shape[1], x.shape[2]
    else:
        patches, oh, ow = _im2col(x, k, stride)
    kp = patches.shape[-1]
    m = n * oh * ow
    mp = _round_up(m, _SUB)
    a = patches.reshape(m, kp)
    if mp != m:                          # keep every A/O block fully in bounds
        a = jnp.pad(a, ((0, mp - m), (0, 0)))
    y = matmul_bn_relu(a, layer["w_mat"], layer["scale"], layer["bias"])
    return y[:m].reshape(n, oh, ow, -1)


# ---------------------------------------------------------------------------
# Fused 3x3 / stride-1 conv + BN + ReLU kernel (in-kernel patch gather:
# 9 shifted matmuls with K = Cin per tap; no im2col tensor in HBM)
# ---------------------------------------------------------------------------
def _conv3x3s1_bn_relu_kernel(x_ref, w_ref, s_ref, b_ref, o_ref, *, out_w):
    # x_ref: (1, Hin, Wp, Cin)   Wp % 8 == 0, columns >= true input width are zero
    # w_ref: (9, Cin, Cout)      tap-major (dy, dx)
    # o_ref: (1, OH, Wp, Cout)   OH = Hin - 2; valid output columns are [0, out_w)
    _, hin, wp, cin = x_ref.shape
    _, oh, _, cout = o_ref.shape

    x = x_ref[0]                                         # (Hin, Wp, Cin)
    acc = jnp.zeros((oh * wp, cout), jnp.float32)
    for dy in range(3):
        rows = x[dy:dy + oh]                             # leading-axis slice (free)
        for dx in range(3):
            if dx == 0:
                shifted = rows
            else:
                # shift left by dx along W; refill the tail with zeros (VMEM only)
                shifted = jnp.concatenate(
                    [rows[:, dx:, :],
                     jnp.zeros((oh, dx, cin), rows.dtype)], axis=1)
            a = shifted.reshape(oh * wp, cin)            # layout-free: Wp % 8 == 0
            acc = acc + jnp.dot(a, w_ref[dy * 3 + dx],
                                preferred_element_type=jnp.float32,
                                precision=MXU_PRECISION)

    y = jnp.maximum(acc * s_ref[...] + b_ref[...], 0.0)  # fused BN + ReLU epilogue
    y = y.reshape(oh, wp, cout)
    # keep the invariant "stored columns >= true width are exactly zero"
    col = jax.lax.broadcasted_iota(jnp.int32, (oh, wp, cout), 1)
    o_ref[0] = jnp.where(col < out_w, y, 0.0).astype(o_ref.dtype)


def conv3x3_s1_bn_relu(x, true_w, layer):
    """Valid 3x3 stride-1 conv + BN + ReLU.  x: (N, Hin, Wp, Cin) stored NHWC.
    Returns (y, new_true_w) with y: (N, Hin-2, Wp, Cout)."""
    n, hin, wp, cin = x.shape
    oh = hin - 2
    ow = true_w - 2
    cout = layer["w_taps"].shape[-1]
    kernel = functools.partial(_conv3x3s1_bn_relu_kernel, out_w=ow)
    y = pl.pallas_call(
        kernel,
        out_shape=jax.ShapeDtypeStruct((n, oh, wp, cout), jnp.float32),
        grid=(n,),
        in_specs=[
            pl.BlockSpec((1, hin, wp, cin), lambda i: (i, 0, 0, 0)),
            pl.BlockSpec((9, cin, cout), lambda i: (0, 0, 0)),   # resident weights
            pl.BlockSpec((1, cout), lambda i: (0, 0)),           # resident BN scale
            pl.BlockSpec((1, cout), lambda i: (0, 0)),           # resident BN bias
        ],
        out_specs=pl.BlockSpec((1, oh, wp, cout), lambda i: (i, 0, 0, 0)),
        compiler_params=pltpu.CompilerParams(
            dimension_semantics=("parallel",),
            vmem_limit_bytes=_VMEM_LIMIT),
    )(x, layer["w_taps"], layer["scale"], layer["bias"])
    return y, ow


# ---------------------------------------------------------------------------
# 3x3 / stride-2 max-pool kernel (contiguous slices + leading-axis ops only)
# ---------------------------------------------------------------------------
def _maxpool3x3_s2_kernel(x_ref, o_ref):
    # x_ref: (1, H, Wp, C); o_ref: (1, OH, Wp-2, C)
    x = x_ref[0]
    h, wp, c = x.shape
    oh = o_ref.shape[1]
    # W direction: stride-1 3-tap running max (contiguous sublane slices only); the
    # stride-2 column decimation happens as a cheap fused XLA slice right after.
    m = jnp.maximum(jnp.maximum(x[:, :wp - 2, :], x[:, 1:wp - 1, :]), x[:, 2:, :])
    # H direction: 3-tap max + stride-2 row decimation using only leading-axis ops.
    mh = jnp.maximum(jnp.maximum(m[:h - 2], m[1:h - 1]), m[2:])      # (h-2, wp-2, c)
    if h - 2 < 2 * oh:                        # odd H: one filler row (never selected)
        mh = jnp.concatenate([mh, mh[h - 3:h - 2]], axis=0)
    out = mh[:2 * oh].reshape(oh, 2, wp - 2, c)[:, 0]                # rows 0,2,4,...
    o_ref[0] = out.astype(o_ref.dtype)


def maxpool_3x3_s2(x, true_w):
    """MaxPool2d(kernel=3, stride=2).  x: (N, H, Wp, C) stored NHWC.
    Returns (pooled, new_true_w); pooled is (N, OH, OWp, C), OWp % 8 == 0."""
    n, h, wp, c = x.shape
    oh = (h - 3) // 2 + 1
    ow = (true_w - 3) // 2 + 1
    pooled = pl.pallas_call(
        _maxpool3x3_s2_kernel,
        out_shape=jax.ShapeDtypeStruct((n, oh, wp - 2, c), x.dtype),
        grid=(n,),
        in_specs=[pl.BlockSpec((1, h, wp, c), lambda i: (i, 0, 0, 0))],
        out_specs=pl.BlockSpec((1, oh, wp - 2, c), lambda i: (i, 0, 0, 0)),
        compiler_params=pltpu.CompilerParams(
            dimension_semantics=("parallel",),
            vmem_limit_bytes=_VMEM_LIMIT),
    )(x)
    # Stride-2 column decimation + re-pad stored width; XLA fuses this into one small
    # copy.  TODO(synk): fold the decimation into the kernel (or fuse pool + 1x1 conv)
    # to remove the remaining ~2x-wide pool writeback.
    dec = pooled[:, :, : 2 * ow - 1 : 2, :]
    return _pad_width(dec), ow


# ---------------------------------------------------------------------------
# Parameter construction (deterministic, synthetic) — built once, outside jit
# ---------------------------------------------------------------------------
def _fold_bn(gamma, beta, mean, var, eps=BN_EPS):
    scale = gamma / jnp.sqrt(var + eps)
    return scale, beta - mean * scale


_LAYER_DEFS = (
    # (cout, cin, k, stride, padding)
    (32, 3, 3, 2, 0),      # Conv2d_1a_3x3
    (32, 32, 3, 1, 0),     # Conv2d_2a_3x3
    (64, 32, 3, 1, 1),     # Conv2d_2b_3x3
    (80, 64, 1, 1, 0),     # Conv2d_3b_1x1
    (192, 80, 3, 1, 0),    # Conv2d_4a_3x3
)


def make_params(key):
    params = []
    for idx, (cout, cin, k, _s, _p) in enumerate(_LAYER_DEFS):
        key, kw, kg, kb, km, kv = jax.random.split(key, 6)
        w = jax.random.normal(kw, (cout, cin, k, k), jnp.float32) * 0.05
        gamma = 1.0 + 0.01 * jax.random.normal(kg, (cout,), jnp.float32)
        beta = 0.01 * jax.random.normal(kb, (cout,), jnp.float32)
        mean = 0.01 * jax.random.normal(km, (cout,), jnp.float32)
        var = jax.random.uniform(kv, (cout,), jnp.float32, 0.5, 1.5)
        scale, bias = _fold_bn(gamma, beta, mean, var)

        if idx == 0:
            # Fold the input normalization (2*x - 1) into the first conv:
            #   conv(2x - 1, W) = conv(x, 2W) - sum(W)   (per output channel)
            bias = bias - jnp.sum(w, axis=(1, 2, 3)) * scale
            w = 2.0 * w

        w_hwio = jnp.transpose(w, (2, 3, 1, 0))              # (k, k, cin, cout)
        params.append({
            "scale": scale.reshape(1, cout),
            "bias": bias.reshape(1, cout),
            "w_mat": w_hwio.reshape(k * k * cin, cout),      # patch-order matmul form
            "w_taps": w_hwio.reshape(k * k, cin, cout),      # tap-major fused-conv form
        })
    return params


# ---------------------------------------------------------------------------
# Forward pass (matches InceptionV3.forward with normalize_input=True)
# ---------------------------------------------------------------------------
@jax.jit
def inception_v3_forward(x_nchw, params):
    # NCHW in/out to match PyTorch; NHWC (C on the 128-lane axis) internally, with the
    # W axis zero-padded to a multiple of 8 (true width tracked as a static int).
    x = jnp.transpose(x_nchw, (0, 2, 3, 1)).astype(jnp.float32)

    # --- block0 ---
    # Conv2d_1a_3x3 (stride 2): tiny K=27 patch tensor stays in XLA; 2x-1 is folded
    # into the weights.
    x = conv_matmul_bn_relu(x, params[0], k=3, stride=2)
    true_w = x.shape[2]
    x = _pad_width(x)

    # Conv2d_2a_3x3: fused in-kernel patch gather (9 shifted matmuls) + BN + ReLU.
    x, true_w = conv3x3_s1_bn_relu(x, true_w, params[1])

    # Conv2d_2b_3x3 (padding=1): spatial zero-pad in XLA, then the same fused kernel.
    x = jnp.pad(x[:, :, :true_w, :], ((0, 0), (1, 1), (1, 1), (0, 0)))
    true_w = true_w + 2
    x = _pad_width(x)
    x, true_w = conv3x3_s1_bn_relu(x, true_w, params[2])

    # --- block1 ---
    x, true_w = maxpool_3x3_s2(x, true_w)                        # MaxPool2d(3, 2)
    x = conv_matmul_bn_relu(x, params[3], k=1, stride=1)         # Conv2d_3b_1x1
    x, true_w = conv3x3_s1_bn_relu(x, true_w, params[4])         # Conv2d_4a_3x3

    x = x[:, :, :true_w, :]                   # strip the stored-width padding
    return [jnp.transpose(x, (0, 3, 1, 2))]   # forward() returns a list [features]


if __name__ == "__main__":
    key = jax.random.PRNGKey(0)
    kp, kx = jax.random.split(key)
    params = make_params(kp)
    # Small input (images in [0,1], NCHW like PyTorch); 32x32 is the smallest spatial
    # size for which every valid conv / pool in the stem stays positive-sized.
    x = jax.random.uniform(kx, (2, 3, 32, 32), jnp.float32)

    outp = inception_v3_forward(x, params)
    outp = jax.block_until_ready(outp)

    feats = outp[0]
    assert feats.shape == (2, 192, 4, 4), feats.shape
    assert bool(jnp.all(jnp.isfinite(feats)))
    print("KERNEL_OK")
</pallas_src>

<mosaic_0001>
module attributes {stable_mosaic.version = 11 : i64} {
  func.func @_matmul_bn_relu_kernel(%arg0: i32, %arg1: memref<456x27xf32, #tpu.memory_space<vmem>>, %arg2: memref<27x32xf32, #tpu.memory_space<vmem>>, %arg3: memref<1x32xf32, #tpu.memory_space<vmem>>, %arg4: memref<1x32xf32, #tpu.memory_space<vmem>>, %arg5: memref<456x32xf32, #tpu.memory_space<vmem>>) attributes {dimension_semantics = [#tpu.dimension_semantics<parallel>], iteration_bounds = array<i64: 1>, scalar_prefetch = 0 : i64, scratch_operands = 0 : i64, tpu.core_type = #tpu.core_type<tc>, window_params = [{transform_indices = @transform_0, window_bounds = array<i64: 456, 27>}, {pipeline_mode = #tpu.pipeline_mode<synchronous>, transform_indices = @transform_1, window_bounds = array<i64: 27, 32>}, {pipeline_mode = #tpu.pipeline_mode<synchronous>, transform_indices = @transform_2, window_bounds = array<i64: 1, 32>}, {pipeline_mode = #tpu.pipeline_mode<synchronous>, transform_indices = @transform_3, window_bounds = array<i64: 1, 32>}, {transform_indices = @transform_4, window_bounds = array<i64: 456, 32>}]} {
    %c0 = arith.constant 0 : index
    %c0_0 = arith.constant 0 : index
    %0 = vector.load %arg1[%c0, %c0_0] : memref<456x27xf32, #tpu.memory_space<vmem>>, vector<456x27xf32>
    %c0_1 = arith.constant 0 : index
    %c0_2 = arith.constant 0 : index
    %1 = vector.load %arg2[%c0_1, %c0_2] : memref<27x32xf32, #tpu.memory_space<vmem>>, vector<27x32xf32>
    %cst = arith.constant dense<0.000000e+00> : vector<456x32xf32>
    %2 = tpu.matmul %0, %1, %cst {dimension_numbers = #tpu.dot_dimension_numbers<[1], [0], [0], [1], [0, 0, 1, 1], [], []>} : vector<456x27xf32>, vector<27x32xf32>, vector<456x32xf32> -> vector<456x32xf32>
    %c0_3 = arith.constant 0 : index
    %c0_4 = arith.constant 0 : index
    %3 = vector.load %arg3[%c0_3, %c0_4] : memref<1x32xf32, #tpu.memory_space<vmem>>, vector<1x32xf32>
    %4 = vector.broadcast %3 : vector<1x32xf32> to vector<456x32xf32>
    %5 = arith.mulf %2, %4 : vector<456x32xf32>
    %c0_5 = arith.constant 0 : index
    %c0_6 = arith.constant 0 : index
    %6 = vector.load %arg4[%c0_5, %c0_6] : memref<1x32xf32, #tpu.memory_space<vmem>>, vector<1x32xf32>
    %7 = vector.broadcast %6 : vector<1x32xf32> to vector<456x32xf32>
    %8 = arith.addf %5, %7 : vector<456x32xf32>
    %cst_7 = arith.constant 0.000000e+00 : f32
    %9 = vector.broadcast %cst_7 : f32 to vector<456x32xf32>
    %10 = arith.maximumf %8, %9 : vector<456x32xf32>
    %c0_8 = arith.constant 0 : index
    %c0_9 = arith.constant 0 : index
    %11 = vector.load %arg5[%c0_8, %c0_9] : memref<456x32xf32, #tpu.memory_space<vmem>>, vector<456x32xf32>
    tpu.vector_store %arg5[%c0_8, %c0_9], %10 {strides = array<i32>} : memref<456x32xf32, #tpu.memory_space<vmem>>, vector<456x32xf32>,
    return
  }
  func.func @transform_0(%arg0: i32) -> (i32, i32) {
    %c0_i32 = arith.constant 0 : i32
    %c0_i32_0 = arith.constant 0 : i32
    return %arg0, %c0_i32 : i32, i32
  }
  func.func @transform_1(%arg0: i32) -> (i32, i32) {
    %c0_i32 = arith.constant 0 : i32
    %c0_i32_0 = arith.constant 0 : i32
    %c0_i32_1 = arith.constant 0 : i32
    return %c0_i32, %c0_i32_0 : i32, i32
  }
  func.func @transform_2(%arg0: i32) -> (i32, i32) {
    %c0_i32 = arith.constant 0 : i32
    %c0_i32_0 = arith.constant 0 : i32
    %c0_i32_1 = arith.constant 0 : i32
    return %c0_i32, %c0_i32_0 : i32, i32
  }
  func.func @transform_3(%arg0: i32) -> (i32, i32) {
    %c0_i32 = arith.constant 0 : i32
    %c0_i32_0 = arith.constant 0 : i32
    %c0_i32_1 = arith.constant 0 : i32
    return %c0_i32, %c0_i32_0 : i32, i32
  }
  func.func @transform_4(%arg0: i32) -> (i32, i32) {
    %c0_i32 = arith.constant 0 : i32
    %c0_i32_0 = arith.constant 0 : i32
    return %arg0, %c0_i32 : i32, i32
  }
}

module attributes {stable_mosaic.version = 11 : i64} {
  func.func @_conv3x3s1_bn_relu_kernel(%arg0: i32, %arg1: memref<1x15x16x32xf32, #tpu.memory_space<vmem>>, %arg2: memref<9x32x32xf32, #tpu.memory_space<vmem>>, %arg3: memref<1x32xf32, #tpu.memory_space<vmem>>, %arg4: memref<1x32xf32, #tpu.memory_space<vmem>>, %arg5: memref<1x13x16x32xf32, #tpu.memory_space<vmem>>) attributes {dimension_semantics = [#tpu.dimension_semantics<parallel>], iteration_bounds = array<i64: 2>, scalar_prefetch = 0 : i64, scratch_operands = 0 : i64, tpu.core_type = #tpu.core_type<tc>, window_params = [{transform_indices = @transform_0, window_bounds = array<i64: 1, 15, 16, 32>}, {pipeline_mode = #tpu.pipeline_mode<synchronous>, transform_indices = @transform_1, window_bounds = array<i64: 9, 32, 32>}, {pipeline_mode = #tpu.pipeline_mode<synchronous>, transform_indices = @transform_2, window_bounds = array<i64: 1, 32>}, {pipeline_mode = #tpu.pipeline_mode<synchronous>, transform_indices = @transform_3, window_bounds = array<i64: 1, 32>}, {transform_indices = @transform_4, window_bounds = array<i64: 1, 13, 16, 32>}]} {
    %c0 = arith.constant 0 : index
    %c0_0 = arith.constant 0 : index
    %c0_1 = arith.constant 0 : index
    %c0_2 = arith.constant 0 : index
    %0 = vector.load %arg1[%c0, %c0_0, %c0_1, %c0_2] : memref<1x15x16x32xf32, #tpu.memory_space<vmem>>, vector<1x15x16x32xf32>
    %1 = vector.shape_cast %0 : vector<1x15x16x32xf32> to vector<15x16x32xf32>
    %cst = arith.constant 0.000000e+00 : f32
    %2 = vector.broadcast %cst : f32 to vector<208x32xf32>
    %3 = vector.extract_strided_slice %1 {offsets = [0, 0, 0], sizes = [13, 16, 32], strides = [1, 1, 1]} : vector<15x16x32xf32> to vector<13x16x32xf32>
    %4 = vector.shape_cast %3 : vector<13x16x32xf32> to vector<208x32xf32>
    %c0_3 = arith.constant 0 : index
    %c0_4 = arith.constant 0 : index
    %c0_5 = arith.constant 0 : index
    %5 = vector.load %arg2[%c0_3, %c0_4, %c0_5] : memref<9x32x32xf32, #tpu.memory_space<vmem>>, vector<1x32x32xf32>
    %6 = vector.shape_cast %5 : vector<1x32x32xf32> to vector<32x32xf32>
    %cst_6 = arith.constant dense<0.000000e+00> : vector<208x32xf32>
    %7 = tpu.matmul %4, %6, %cst_6 {dimension_numbers = #tpu.dot_dimension_numbers<[1], [0], [0], [1], [0, 0, 1, 1], [], []>} : vector<208x32xf32>, vector<32x32xf32>, vector<208x32xf32> -> vector<208x32xf32>
    %8 = arith.addf %2, %7 : vector<208x32xf32>
    %9 = vector.extract_strided_slice %3 {offsets = [0, 1, 0], sizes = [13, 15, 32], strides = [1, 1, 1]} : vector<13x16x32xf32> to vector<13x15x32xf32>
    %cst_7 = arith.constant 0.000000e+00 : f32
    %10 = vector.broadcast %cst_7 : f32 to vector<13x1x32xf32>
    %11 = tpu.concatenate %9, %10 in 1 : vector<13x15x32xf32>, vector<13x1x32xf32> -> vector<13x16x32xf32>
    %12 = vector.shape_cast %11 : vector<13x16x32xf32> to vector<208x32xf32>
    %c1 = arith.constant 1 : index
    %c0_8 = arith.constant 0 : index
    %c0_9 = arith.constant 0 : index
    %13 = vector.load %arg2[%c1, %c0_8, %c0_9] : memref<9x32x32xf32, #tpu.memory_space<vmem>>, vector<1x32x32xf32>
    %14 = vector.shape_cast %13 : vector<1x32x32xf32> to vector<32x32xf32>
    %cst_10 = arith.constant dense<0.000000e+00> : vector<208x32xf32>
    %15 = tpu.matmul %12, %14, %cst_10 {dimension_numbers = #tpu.dot_dimension_numbers<[1], [0], [0], [1], [0, 0, 1, 1], [], []>} : vector<208x32xf32>, vector<32x32xf32>, vector<208x32xf32> -> vector<208x32xf32>
    %16 = arith.addf %8, %15 : vector<208x32xf32>
    %17 = vector.extract_strided_slice %3 {offsets = [0, 2, 0], sizes = [13, 14, 32], strides = [1, 1, 1]} : vector<13x16x32xf32> to vector<13x14x32xf32>
    %cst_11 = arith.constant 0.000000e+00 : f32
    %18 = vector.broadcast %cst_11 : f32 to vector<13x2x32xf32>
    %19 = tpu.concatenate %17, %18 in 1 : vector<13x14x32xf32>, vector<13x2x32xf32> -> vector<13x16x32xf32>
    %20 = vector.shape_cast %19 : vector<13x16x32xf32> to vector<208x32xf32>
    %c2 = arith.constant 2 : index
    %c0_12 = arith.constant 0 : index
    %c0_13 = arith.constant 0 : index
    %21 = vector.load %arg2[%c2, %c0_12, %c0_13] : memref<9x32x32xf32, #tpu.memory_space<vmem>>, vector<1x32x32xf32>
    %22 = vector.shape_cast %21 : vector<1x32x32xf32> to vector<32x32xf32>
    %cst_14 = arith.constant dense<0.000000e+00> : vector<208x32xf32>
    %23 = tpu.matmul %20, %22, %cst_14 {dimension_numbers = #tpu.dot_dimension_numbers<[1], [0], [0], [1], [0, 0, 1, 1], [], []>} : vector<208x32xf32>, vector<32x32xf32>, vector<208x32xf32> -> vector<208x32xf32>
    %24 = arith.addf %16, %23 : vector<208x32xf32>
    %25 = vector.extract_strided_slice %1 {offsets = [1, 0, 0], sizes = [13, 16, 32], strides = [1, 1, 1]} : vector<15x16x32xf32> to vector<13x16x32xf32>
    %26 = vector.shape_cast %25 : vector<13x16x32xf32> to vector<208x32xf32>
    %c3 = arith.constant 3 : index
    %c0_15 = arith.constant 0 : index
    %c0_16 = arith.constant 0 : index
    %27 = vector.load %arg2[%c3, %c0_15, %c0_16] : memref<9x32x32xf32, #tpu.memory_space<vmem>>, vector<1x32x32xf32>
    %28 = vector.shape_cast %27 : vector<1x32x32xf32> to vector<32x32xf32>
    %cst_17 = arith.constant dense<0.000000e+00> : vector<208x32xf32>
    %29 = tpu.matmul %26, %28, %cst_17 {dimension_numbers = #tpu.dot_dimension_numbers<[1], [0], [0], [1], [0, 0, 1, 1], [], []>} : vector<208x32xf32>, vector<32x32xf32>, vector<208x32xf32> -> vector<208x32xf32>
    %30 = arith.addf %24, %29 : vector<208x32xf32>
    %31 = vector.extract_strided_slice %25 {offsets = [0, 1, 0], sizes = [13, 15, 32], strides = [1, 1, 1]} : vector<13x16x32xf32> to vector<13x15x32xf32>
    %cst_18 = arith.constant 0.000000e+00 : f32
    %32 = vector.broadcast %cst_18 : f32 to vector<13x1x32xf32>
    %33 = tpu.concatenate %31, %32 in 1 : vector<13x15x32xf32>, vector<13x1x32xf32> -> vector<13x16x32xf32>
    %34 = vector.shape_cast %33 : vector<13x16x32xf32> to vector<208x32xf32>
    %c4 = arith.constant 4 : index
    %c0_19 = arith.constant 0 : index
    %c0_20 = arith.constant 0 : index
    %35 = vector.load %arg2[%c4, %c0_19, %c0_20] : memref<9x32x32xf32, #tpu.memory_space<vmem>>, vector<1x32x32xf32>
    %36 = vector.shape_cast %35 : vector<1x32x32xf32> to vector<32x32xf32>
    %cst_21 = arith.constant dense<0.000000e+00> : vector<208x32xf32>
    %37 = tpu.matmul %34, %36, %cst_21 {dimension_numbers = #tpu.dot_dimension_numbers<[1], [0], [0], [1], [0, 0, 1, 1], [], []>} : vector<208x32xf32>, vector<32x32xf32>, vector<208x32xf32> -> vector<208x32xf32>
    %38 = arith.addf %30, %37 : vector<208x32xf32>
    %39 = vector.extract_strided_slice %25 {offsets = [0, 2, 0], sizes = [13, 14, 32], strides = [1, 1, 1]} : vector<13x16x32xf32> to vector<13x14x32xf32>
    %cst_22 = arith.constant 0.000000e+00 : f32
    %40 = vector.broadcast %cst_22 : f32 to vector<13x2x32xf32>
    %41 = tpu.concatenate %39, %40 in 1 : vector<13x14x32xf32>, vector<13x2x32xf32> -> vector<13x16x32xf32>
    %42 = vector.shape_cast %41 : vector<13x16x32xf32> to vector<208x32xf32>
    %c5 = arith.constant 5 : index
    %c0_23 = arith.constant 0 : index
    %c0_24 = arith.constant 0 : index
    %43 = vector.load %arg2[%c5, %c0_23, %c0_24] : memref<9x32x32xf32, #tpu.memory_space<vmem>>, vector<1x32x32xf32>
    %44 = vector.shape_cast %43 : vector<1x32x32xf32> to vector<32x32xf32>
    %cst_25 = arith.constant dense<0.000000e+00> : vector<208x32xf32>
    %45 = tpu.matmul %42, %44, %cst_25 {dimension_numbers = #tpu.dot_dimension_numbers<[1], [0], [0], [1], [0, 0, 1, 1], [], []>} : vector<208x32xf32>, vector<32x32xf32>, vector<208x32xf32> -> vector<208x32xf32>
    %46 = arith.addf %38, %45 : vector<208x32xf32>
    %47 = vector.extract_strided_slice %1 {offsets = [2, 0, 0], sizes = [13, 16, 32], strides = [1, 1, 1]} : vector<15x16x32xf32> to vector<13x16x32xf32>
    %48 = vector.shape_cast %47 : vector<13x16x32xf32> to vector<208x32xf32>
    %c6 = arith.constant 6 : index
    %c0_26 = arith.constant 0 : index
    %c0_27 = arith.constant 0 : index
    %49 = vector.load %arg2[%c6, %c0_26, %c0_27] : memref<9x32x32xf32, #tpu.memory_space<vmem>>, vector<1x32x32xf32>
    %50 = vector.shape_cast %49 : vector<1x32x32xf32> to vector<32x32xf32>
    %cst_28 = arith.constant dense<0.000000e+00> : vector<208x32xf32>
    %51 = tpu.matmul %48, %50, %cst_28 {dimension_numbers = #tpu.dot_dimension_numbers<[1], [0], [0], [1], [0, 0, 1, 1], [], []>} : vector<208x32xf32>, vector<32x32xf32>, vector<208x32xf32> -> vector<208x32xf32>
    %52 = arith.addf %46, %51 : vector<208x32xf32>
    %53 = vector.extract_strided_slice %47 {offsets = [0, 1, 0], sizes = [13, 15, 32], strides = [1, 1, 1]} : vector<13x16x32xf32> to vector<13x15x32xf32>
    %cst_29 = arith.constant 0.000000e+00 : f32
    %54 = vector.broadcast %cst_29 : f32 to vector<13x1x32xf32>
    %55 = tpu.concatenate %53, %54 in 1 : vector<13x15x32xf32>, vector<13x1x32xf32> -> vector<13x16x32xf32>
    %56 = vector.shape_cast %55 : vector<13x16x32xf32> to vector<208x32xf32>
    %c7 = arith.constant 7 : index
    %c0_30 = arith.constant 0 : index
    %c0_31 = arith.constant 0 : index
    %57 = vector.load %arg2[%c7, %c0_30, %c0_31] : memref<9x32x32xf32, #tpu.memory_space<vmem>>, vector<1x32x32xf32>
    %58 = vector.shape_cast %57 : vector<1x32x32xf32> to vector<32x32xf32>
    %cst_32 = arith.constant dense<0.000000e+00> : vector<208x32xf32>
    %59 = tpu.matmul %56, %58, %cst_32 {dimension_numbers = #tpu.dot_dimension_numbers<[1], [0], [0], [1], [0, 0, 1, 1], [], []>} : vector<208x32xf32>, vector<32x32xf32>, vector<208x32xf32> -> vector<208x32xf32>
    %60 = arith.addf %52, %59 : vector<208x32xf32>
    %61 = vector.extract_strided_slice %47 {offsets = [0, 2, 0], sizes = [13, 14, 32], strides = [1, 1, 1]} : vector<13x16x32xf32> to vector<13x14x32xf32>
    %cst_33 = arith.constant 0.000000e+00 : f32
    %62 = vector.broadcast %cst_33 : f32 to vector<13x2x32xf32>
    %63 = tpu.concatenate %61, %62 in 1 : vector<13x14x32xf32>, vector<13x2x32xf32> -> vector<13x16x32xf32>
    %64 = vector.shape_cast %63 : vector<13x16x32xf32> to vector<208x32xf32>
    %c8 = arith.constant 8 : index
    %c0_34 = arith.constant 0 : index
    %c0_35 = arith.constant 0 : index
    %65 = vector.load %arg2[%c8, %c0_34, %c0_35] : memref<9x32x32xf32, #tpu.memory_space<vmem>>, vector<1x32x32xf32>
    %66 = vector.shape_cast %65 : vector<1x32x32xf32> to vector<32x32xf32>
    %cst_36 = arith.constant dense<0.000000e+00> : vector<208x32xf32>
    %67 = tpu.matmul %64, %66, %cst_36 {dimension_numbers = #tpu.dot_dimension_numbers<[1], [0], [0], [1], [0, 0, 1, 1], [], []>} : vector<208x32xf32>, vector<32x32xf32>, vector<208x32xf32> -> vector<208x32xf32>
    %68 = arith.addf %60, %67 : vector<208x32xf32>
    %c0_37 = arith.constant 0 : index
    %c0_38 = arith.constant 0 : index
    %69 = vector.load %arg3[%c0_37, %c0_38] : memref<1x32xf32, #tpu.memory_space<vmem>>, vector<1x32xf32>
    %70 = vector.broadcast %69 : vector<1x32xf32> to vector<208x32xf32>
    %71 = arith.mulf %68, %70 : vector<208x32xf32>
    %c0_39 = arith.constant 0 : index
    %c0_40 = arith.constant 0 : index
    %72 = vector.load %arg4[%c0_39, %c0_40] : memref<1x32xf32, #tpu.memory_space<vmem>>, vector<1x32xf32>
    %73 = vector.broadcast %72 : vector<1x32xf32> to vector<208x32xf32>
    %74 = arith.addf %71, %73 : vector<208x32xf32>
    %cst_41 = arith.constant 0.000000e+00 : f32
    %75 = vector.broadcast %cst_41 : f32 to vector<208x32xf32>
    %76 = arith.maximumf %74, %75 : vector<208x32xf32>
    %77 = vector.shape_cast %76 : vector<208x32xf32> to vector<13x16x32xf32>
    %78 = tpu.iota {dimensions = array<i32: 1>} : vector<13x16x32xi32>
    %c13_i32 = arith.constant 13 : i32
    %79 = vector.broadcast %c13_i32 : i32 to vector<13x16x32xi32>
    %80 = arith.cmpi slt, %78, %79 : vector<13x16x32xi32>
    %cst_42 = arith.constant 0.000000e+00 : f32
    %81 = vector.broadcast %cst_42 : f32 to vector<13x16x32xf32>
    %82 = arith.select %80, %77, %81 : vector<13x16x32xi1>, vector<13x16x32xf32>
    %c0_43 = arith.constant 0 : index
    %c0_44 = arith.constant 0 : index
    %c0_45 = arith.constant 0 : index
    %c0_46 = arith.constant 0 : index
    %83 = vector.load %arg5[%c0_43, %c0_44, %c0_45, %c0_46] : memref<1x13x16x32xf32, #tpu.memory_space<vmem>>, vector<1x13x16x32xf32>
    %84 = vector.shape_cast %83 : vector<1x13x16x32xf32> to vector<13x16x32xf32>
    %85 = vector.shape_cast %82 : vector<13x16x32xf32> to vector<1x13x16x32xf32>
    tpu.vector_store %arg5[%c0_43, %c0_44, %c0_45, %c0_46], %85 {strides = array<i32>} : memref<1x13x16x32xf32, #tpu.memory_space<vmem>>, vector<1x13x16x32xf32>,
    return
  }
  func.func @transform_0(%arg0: i32) -> (i32, i32, i32, i32) {
    %c0_i32 = arith.constant 0 : i32
    %c0_i32_0 = arith.constant 0 : i32
    %c0_i32_1 = arith.constant 0 : i32
    %c0_i32_2 = arith.constant 0 : i32
    return %arg0, %c0_i32, %c0_i32_0, %c0_i32_1 : i32, i32, i32, i32
  }
  func.func @transform_1(%arg0: i32) -> (i32, i32, i32) {
    %c0_i32 = arith.constant 0 : i32
    %c0_i32_0 = arith.constant 0 : i32
    %c0_i32_1 = arith.constant 0 : i32
    %c0_i32_2 = arith.constant 0 : i32
    return %c0_i32, %c0_i32_0, %c0_i32_1 : i32, i32, i32
  }
  func.func @transform_2(%arg0: i32) -> (i32, i32) {
    %c0_i32 = arith.constant 0 : i32
    %c0_i32_0 = arith.constant 0 : i32
    %c0_i32_1 = arith.constant 0 : i32
    return %c0_i32, %c0_i32_0 : i32, i32
  }
  func.func @transform_3(%arg0: i32) -> (i32, i32) {
    %c0_i32 = arith.constant 0 : i32
    %c0_i32_0 = arith.constant 0 : i32
    %c0_i32_1 = arith.constant 0 : i32
    return %c0_i32, %c0_i32_0 : i32, i32
  }
  func.func @transform_4(%arg0: i32) -> (i32, i32, i32, i32) {
    %c0_i32 = arith.constant 0 : i32
    %c0_i32_0 = arith.constant 0 : i32
    %c0_i32_1 = arith.constant 0 : i32
    %c0_i32_2 = arith.constant 0 : i32
    return %arg0, %c0_i32, %c0_i32_0, %c0_i32_1 : i32, i32, i32, i32
  }
}

module attributes {stable_mosaic.version = 11 : i64} {
  func.func @_maxpool3x3_s2_kernel(%arg0: i32, %arg1: memref<1x13x16x64xf32, #tpu.memory_space<vmem>>, %arg2: memref<1x6x14x64xf32, #tpu.memory_space<vmem>>) attributes {dimension_semantics = [#tpu.dimension_semantics<parallel>], iteration_bounds = array<i64: 2>, scalar_prefetch = 0 : i64, scratch_operands = 0 : i64, tpu.core_type = #tpu.core_type<tc>, window_params = [{transform_indices = @transform_0, window_bounds = array<i64: 1, 13, 16, 64>}, {transform_indices = @transform_1, window_bounds = array<i64: 1, 6, 14, 64>}]} {
    %c0 = arith.constant 0 : index
    %c0_0 = arith.constant 0 : index
    %c0_1 = arith.constant 0 : index
    %c0_2 = arith.constant 0 : index
    %0 = vector.load %arg1[%c0, %c0_0, %c0_1, %c0_2] : memref<1x13x16x64xf32, #tpu.memory_space<vmem>>, vector<1x13x16x64xf32>
    %1 = vector.shape_cast %0 : vector<1x13x16x64xf32> to vector<13x16x64xf32>
    %2 = vector.extract_strided_slice %1 {offsets = [0, 0, 0], sizes = [13, 14, 64], strides = [1, 1, 1]} : vector<13x16x64xf32> to vector<13x14x64xf32>
    %3 = vector.extract_strided_slice %1 {offsets = [0, 1, 0], sizes = [13, 14, 64], strides = [1, 1, 1]} : vector<13x16x64xf32> to vector<13x14x64xf32>
    %4 = arith.maximumf %2, %3 : vector<13x14x64xf32>
    %5 = vector.extract_strided_slice %1 {offsets = [0, 2, 0], sizes = [13, 14, 64], strides = [1, 1, 1]} : vector<13x16x64xf32> to vector<13x14x64xf32>
    %6 = arith.maximumf %4, %5 : vector<13x14x64xf32>
    %7 = vector.extract_strided_slice %6 {offsets = [0, 0, 0], sizes = [11, 14, 64], strides = [1, 1, 1]} : vector<13x14x64xf32> to vector<11x14x64xf32>
    %8 = vector.extract_strided_slice %6 {offsets = [1, 0, 0], sizes = [11, 14, 64], strides = [1, 1, 1]} : vector<13x14x64xf32> to vector<11x14x64xf32>
    %9 = arith.maximumf %7, %8 : vector<11x14x64xf32>
    %10 = vector.extract_strided_slice %6 {offsets = [2, 0, 0], sizes = [11, 14, 64], strides = [1, 1, 1]} : vector<13x14x64xf32> to vector<11x14x64xf32>
    %11 = arith.maximumf %9, %10 : vector<11x14x64xf32>
    %12 = vector.extract_strided_slice %11 {offsets = [10, 0, 0], sizes = [1, 14, 64], strides = [1, 1, 1]} : vector<11x14x64xf32> to vector<1x14x64xf32>
    %13 = tpu.concatenate %11, %12 in 0 : vector<11x14x64xf32>, vector<1x14x64xf32> -> vector<12x14x64xf32>
    %14 = vector.shape_cast %13 : vector<12x14x64xf32> to vector<6x2x14x64xf32>
    %15 = vector.extract_strided_slice %14 {offsets = [0, 0, 0, 0], sizes = [6, 1, 14, 64], strides = [1, 1, 1, 1]} : vector<6x2x14x64xf32> to vector<6x1x14x64xf32>
    %16 = vector.shape_cast %15 : vector<6x1x14x64xf32> to vector<6x14x64xf32>
    %c0_3 = arith.constant 0 : index
    %c0_4 = arith.constant 0 : index
    %c0_5 = arith.constant 0 : index
    %c0_6 = arith.constant 0 : index
    %17 = vector.load %arg2[%c0_3, %c0_4, %c0_5, %c0_6] : memref<1x6x14x64xf32, #tpu.memory_space<vmem>>, vector<1x6x14x64xf32>
    %18 = vector.shape_cast %17 : vector<1x6x14x64xf32> to vector<6x14x64xf32>
    %19 = vector.shape_cast %16 : vector<6x14x64xf32> to vector<1x6x14x64xf32>
    tpu.vector_store %arg2[%c0_3, %c0_4, %c0_5, %c0_6], %19 {strides = array<i32>} : memref<1x6x14x64xf32, #tpu.memory_space<vmem>>, vector<1x6x14x64xf32>,
    return
  }
  func.func @transform_0(%arg0: i32) -> (i32, i32, i32, i32) {
    %c0_i32 = arith.constant 0 : i32
    %c0_i32_0 = arith.constant 0 : i32
    %c0_i32_1 = arith.constant 0 : i32
    %c0_i32_2 = arith.constant 0 : i32
    return %arg0, %c0_i32, %c0_i32_0, %c0_i32_1 : i32, i32, i32, i32
  }
  func.func @transform_1(%arg0: i32) -> (i32, i32, i32, i32) {
    %c0_i32 = arith.constant 0 : i32
    %c0_i32_0 = arith.constant 0 : i32
    %c0_i32_1 = arith.constant 0 : i32
    %c0_i32_2 = arith.constant 0 : i32
    return %arg0, %c0_i32, %c0_i32_0, %c0_i32_1 : i32, i32, i32, i32
  }
}

module attributes {stable_mosaic.version = 11 : i64} {
  func.func @_conv3x3s1_bn_relu_kernel(%arg0: i32, %arg1: memref<1x15x16x32xf32, #tpu.memory_space<vmem>>, %arg2: memref<9x32x64xf32, #tpu.memory_space<vmem>>, %arg3: memref<1x64xf32, #tpu.memory_space<vmem>>, %arg4: memref<1x64xf32, #tpu.memory_space<vmem>>, %arg5: memref<1x13x16x64xf32, #tpu.memory_space<vmem>>) attributes {dimension_semantics = [#tpu.dimension_semantics<parallel>], iteration_bounds = array<i64: 2>, scalar_prefetch = 0 : i64, scratch_operands = 0 : i64, tpu.core_type = #tpu.core_type<tc>, window_params = [{transform_indices = @transform_0, window_bounds = array<i64: 1, 15, 16, 32>}, {pipeline_mode = #tpu.pipeline_mode<synchronous>, transform_indices = @transform_1, window_bounds = array<i64: 9, 32, 64>}, {pipeline_mode = #tpu.pipeline_mode<synchronous>, transform_indices = @transform_2, window_bounds = array<i64: 1, 64>}, {pipeline_mode = #tpu.pipeline_mode<synchronous>, transform_indices = @transform_3, window_bounds = array<i64: 1, 64>}, {transform_indices = @transform_4, window_bounds = array<i64: 1, 13, 16, 64>}]} {
    %c0 = arith.constant 0 : index
    %c0_0 = arith.constant 0 : index
    %c0_1 = arith.constant 0 : index
    %c0_2 = arith.constant 0 : index
    %0 = vector.load %arg1[%c0, %c0_0, %c0_1, %c0_2] : memref<1x15x16x32xf32, #tpu.memory_space<vmem>>, vector<1x15x16x32xf32>
    %1 = vector.shape_cast %0 : vector<1x15x16x32xf32> to vector<15x16x32xf32>
    %cst = arith.constant 0.000000e+00 : f32
    %2 = vector.broadcast %cst : f32 to vector<208x64xf32>
    %3 = vector.extract_strided_slice %1 {offsets = [0, 0, 0], sizes = [13, 16, 32], strides = [1, 1, 1]} : vector<15x16x32xf32> to vector<13x16x32xf32>
    %4 = vector.shape_cast %3 : vector<13x16x32xf32> to vector<208x32xf32>
    %c0_3 = arith.constant 0 : index
    %c0_4 = arith.constant 0 : index
    %c0_5 = arith.constant 0 : index
    %5 = vector.load %arg2[%c0_3, %c0_4, %c0_5] : memref<9x32x64xf32, #tpu.memory_space<vmem>>, vector<1x32x64xf32>
    %6 = vector.shape_cast %5 : vector<1x32x64xf32> to vector<32x64xf32>
    %cst_6 = arith.constant dense<0.000000e+00> : vector<208x64xf32>
    %7 = tpu.matmul %4, %6, %cst_6 {dimension_numbers = #tpu.dot_dimension_numbers<[1], [0], [0], [1], [0, 0, 1, 1], [], []>} : vector<208x32xf32>, vector<32x64xf32>, vector<208x64xf32> -> vector<208x64xf32>
    %8 = arith.addf %2, %7 : vector<208x64xf32>
    %9 = vector.extract_strided_slice %3 {offsets = [0, 1, 0], sizes = [13, 15, 32], strides = [1, 1, 1]} : vector<13x16x32xf32> to vector<13x15x32xf32>
    %cst_7 = arith.constant 0.000000e+00 : f32
    %10 = vector.broadcast %cst_7 : f32 to vector<13x1x32xf32>
    %11 = tpu.concatenate %9, %10 in 1 : vector<13x15x32xf32>, vector<13x1x32xf32> -> vector<13x16x32xf32>
    %12 = vector.shape_cast %11 : vector<13x16x32xf32> to vector<208x32xf32>
    %c1 = arith.constant 1 : index
    %c0_8 = arith.constant 0 : index
    %c0_9 = arith.constant 0 : index
    %13 = vector.load %arg2[%c1, %c0_8, %c0_9] : memref<9x32x64xf32, #tpu.memory_space<vmem>>, vector<1x32x64xf32>
    %14 = vector.shape_cast %13 : vector<1x32x64xf32> to vector<32x64xf32>
    %cst_10 = arith.constant dense<0.000000e+00> : vector<208x64xf32>
    %15 = tpu.matmul %12, %14, %cst_10 {dimension_numbers = #tpu.dot_dimension_numbers<[1], [0], [0], [1], [0, 0, 1, 1], [], []>} : vector<208x32xf32>, vector<32x64xf32>, vector<208x64xf32> -> vector<208x64xf32>
    %16 = arith.addf %8, %15 : vector<208x64xf32>
    %17 = vector.extract_strided_slice %3 {offsets = [0, 2, 0], sizes = [13, 14, 32], strides = [1, 1, 1]} : vector<13x16x32xf32> to vector<13x14x32xf32>
    %cst_11 = arith.constant 0.000000e+00 : f32
    %18 = vector.broadcast %cst_11 : f32 to vector<13x2x32xf32>
    %19 = tpu.concatenate %17, %18 in 1 : vector<13x14x32xf32>, vector<13x2x32xf32> -> vector<13x16x32xf32>
    %20 = vector.shape_cast %19 : vector<13x16x32xf32> to vector<208x32xf32>
    %c2 = arith.constant 2 : index
    %c0_12 = arith.constant 0 : index
    %c0_13 = arith.constant 0 : index
    %21 = vector.load %arg2[%c2, %c0_12, %c0_13] : memref<9x32x64xf32, #tpu.memory_space<vmem>>, vector<1x32x64xf32>
    %22 = vector.shape_cast %21 : vector<1x32x64xf32> to vector<32x64xf32>
    %cst_14 = arith.constant dense<0.000000e+00> : vector<208x64xf32>
    %23 = tpu.matmul %20, %22, %cst_14 {dimension_numbers = #tpu.dot_dimension_numbers<[1], [0], [0], [1], [0, 0, 1, 1], [], []>} : vector<208x32xf32>, vector<32x64xf32>, vector<208x64xf32> -> vector<208x64xf32>
    %24 = arith.addf %16, %23 : vector<208x64xf32>
    %25 = vector.extract_strided_slice %1 {offsets = [1, 0, 0], sizes = [13, 16, 32], strides = [1, 1, 1]} : vector<15x16x32xf32> to vector<13x16x32xf32>
    %26 = vector.shape_cast %25 : vector<13x16x32xf32> to vector<208x32xf32>
    %c3 = arith.constant 3 : index
    %c0_15 = arith.constant 0 : index
    %c0_16 = arith.constant 0 : index
    %27 = vector.load %arg2[%c3, %c0_15, %c0_16] : memref<9x32x64xf32, #tpu.memory_space<vmem>>, vector<1x32x64xf32>
    %28 = vector.shape_cast %27 : vector<1x32x64xf32> to vector<32x64xf32>
    %cst_17 = arith.constant dense<0.000000e+00> : vector<208x64xf32>
    %29 = tpu.matmul %26, %28, %cst_17 {dimension_numbers = #tpu.dot_dimension_numbers<[1], [0], [0], [1], [0, 0, 1, 1], [], []>} : vector<208x32xf32>, vector<32x64xf32>, vector<208x64xf32> -> vector<208x64xf32>
    %30 = arith.addf %24, %29 : vector<208x64xf32>
    %31 = vector.extract_strided_slice %25 {offsets = [0, 1, 0], sizes = [13, 15, 32], strides = [1, 1, 1]} : vector<13x16x32xf32> to vector<13x15x32xf32>
    %cst_18 = arith.constant 0.000000e+00 : f32
    %32 = vector.broadcast %cst_18 : f32 to vector<13x1x32xf32>
    %33 = tpu.concatenate %31, %32 in 1 : vector<13x15x32xf32>, vector<13x1x32xf32> -> vector<13x16x32xf32>
    %34 = vector.shape_cast %33 : vector<13x16x32xf32> to vector<208x32xf32>
    %c4 = arith.constant 4 : index
    %c0_19 = arith.constant 0 : index
    %c0_20 = arith.constant 0 : index
    %35 = vector.load %arg2[%c4, %c0_19, %c0_20] : memref<9x32x64xf32, #tpu.memory_space<vmem>>, vector<1x32x64xf32>
    %36 = vector.shape_cast %35 : vector<1x32x64xf32> to vector<32x64xf32>
    %cst_21 = arith.constant dense<0.000000e+00> : vector<208x64xf32>
    %37 = tpu.matmul %34, %36, %cst_21 {dimension_numbers = #tpu.dot_dimension_numbers<[1], [0], [0], [1], [0, 0, 1, 1], [], []>} : vector<208x32xf32>, vector<32x64xf32>, vector<208x64xf32> -> vector<208x64xf32>
    %38 = arith.addf %30, %37 : vector<208x64xf32>
    %39 = vector.extract_strided_slice %25 {offsets = [0, 2, 0], sizes = [13, 14, 32], strides = [1, 1, 1]} : vector<13x16x32xf32> to vector<13x14x32xf32>
    %cst_22 = arith.constant 0.000000e+00 : f32
    %40 = vector.broadcast %cst_22 : f32 to vector<13x2x32xf32>
    %41 = tpu.concatenate %39, %40 in 1 : vector<13x14x32xf32>, vector<13x2x32xf32> -> vector<13x16x32xf32>
    %42 = vector.shape_cast %41 : vector<13x16x32xf32> to vector<208x32xf32>
    %c5 = arith.constant 5 : index
    %c0_23 = arith.constant 0 : index
    %c0_24 = arith.constant 0 : index
    %43 = vector.load %arg2[%c5, %c0_23, %c0_24] : memref<9x32x64xf32, #tpu.memory_space<vmem>>, vector<1x32x64xf32>
    %44 = vector.shape_cast %43 : vector<1x32x64xf32> to vector<32x64xf32>
    %cst_25 = arith.constant dense<0.000000e+00> : vector<208x64xf32>
    %45 = tpu.matmul %42, %44, %cst_25 {dimension_numbers = #tpu.dot_dimension_numbers<[1], [0], [0], [1], [0, 0, 1, 1], [], []>} : vector<208x32xf32>, vector<32x64xf32>, vector<208x64xf32> -> vector<208x64xf32>
    %46 = arith.addf %38, %45 : vector<208x64xf32>
    %47 = vector.extract_strided_slice %1 {offsets = [2, 0, 0], sizes = [13, 16, 32], strides = [1, 1, 1]} : vector<15x16x32xf32> to vector<13x16x32xf32>
    %48 = vector.shape_cast %47 : vector<13x16x32xf32> to vector<208x32xf32>
    %c6 = arith.constant 6 : index
    %c0_26 = arith.constant 0 : index
    %c0_27 = arith.constant 0 : index
    %49 = vector.load %arg2[%c6, %c0_26, %c0_27] : memref<9x32x64xf32, #tpu.memory_space<vmem>>, vector<1x32x64xf32>
    %50 = vector.shape_cast %49 : vector<1x32x64xf32> to vector<32x64xf32>
    %cst_28 = arith.constant dense<0.000000e+00> : vector<208x64xf32>
    %51 = tpu.matmul %48, %50, %cst_28 {dimension_numbers = #tpu.dot_dimension_numbers<[1], [0], [0], [1], [0, 0, 1, 1], [], []>} : vector<208x32xf32>, vector<32x64xf32>, vector<208x64xf32> -> vector<208x64xf32>
    %52 = arith.addf %46, %51 : vector<208x64xf32>
    %53 = vector.extract_strided_slice %47 {offsets = [0, 1, 0], sizes = [13, 15, 32], strides = [1, 1, 1]} : vector<13x16x32xf32> to vector<13x15x32xf32>
    %cst_29 = arith.constant 0.000000e+00 : f32
    %54 = vector.broadcast %cst_29 : f32 to vector<13x1x32xf32>
    %55 = tpu.concatenate %53, %54 in 1 : vector<13x15x32xf32>, vector<13x1x32xf32> -> vector<13x16x32xf32>
    %56 = vector.shape_cast %55 : vector<13x16x32xf32> to vector<208x32xf32>
    %c7 = arith.constant 7 : index
    %c0_30 = arith.constant 0 : index
    %c0_31 = arith.constant 0 : index
    %57 = vector.load %arg2[%c7, %c0_30, %c0_31] : memref<9x32x64xf32, #tpu.memory_space<vmem>>, vector<1x32x64xf32>
    %58 = vector.shape_cast %57 : vector<1x32x64xf32> to vector<32x64xf32>
    %cst_32 = arith.constant dense<0.000000e+00> : vector<208x64xf32>
    %59 = tpu.matmul %56, %58, %cst_32 {dimension_numbers = #tpu.dot_dimension_numbers<[1], [0], [0], [1], [0, 0, 1, 1], [], []>} : vector<208x32xf32>, vector<32x64xf32>, vector<208x64xf32> -> vector<208x64xf32>
    %60 = arith.addf %52, %59 : vector<208x64xf32>
    %61 = vector.extract_strided_slice %47 {offsets = [0, 2, 0], sizes = [13, 14, 32], strides = [1, 1, 1]} : vector<13x16x32xf32> to vector<13x14x32xf32>
    %cst_33 = arith.constant 0.000000e+00 : f32
    %62 = vector.broadcast %cst_33 : f32 to vector<13x2x32xf32>
    %63 = tpu.concatenate %61, %62 in 1 : vector<13x14x32xf32>, vector<13x2x32xf32> -> vector<13x16x32xf32>
    %64 = vector.shape_cast %63 : vector<13x16x32xf32> to vector<208x32xf32>
    %c8 = arith.constant 8 : index
    %c0_34 = arith.constant 0 : index
    %c0_35 = arith.constant 0 : index
    %65 = vector.load %arg2[%c8, %c0_34, %c0_35] : memref<9x32x64xf32, #tpu.memory_space<vmem>>, vector<1x32x64xf32>
    %66 = vector.shape_cast %65 : vector<1x32x64xf32> to vector<32x64xf32>
    %cst_36 = arith.constant dense<0.000000e+00> : vector<208x64xf32>
    %67 = tpu.matmul %64, %66, %cst_36 {dimension_numbers = #tpu.dot_dimension_numbers<[1], [0], [0], [1], [0, 0, 1, 1], [], []>} : vector<208x32xf32>, vector<32x64xf32>, vector<208x64xf32> -> vector<208x64xf32>
    %68 = arith.addf %60, %67 : vector<208x64xf32>
    %c0_37 = arith.constant 0 : index
    %c0_38 = arith.constant 0 : index
    %69 = vector.load %arg3[%c0_37, %c0_38] : memref<1x64xf32, #tpu.memory_space<vmem>>, vector<1x64xf32>
    %70 = vector.broadcast %69 : vector<1x64xf32> to vector<208x64xf32>
    %71 = arith.mulf %68, %70 : vector<208x64xf32>
    %c0_39 = arith.constant 0 : index
    %c0_40 = arith.constant 0 : index
    %72 = vector.load %arg4[%c0_39, %c0_40] : memref<1x64xf32, #tpu.memory_space<vmem>>, vector<1x64xf32>
    %73 = vector.broadcast %72 : vector<1x64xf32> to vector<208x64xf32>
    %74 = arith.addf %71, %73 : vector<208x64xf32>
    %cst_41 = arith.constant 0.000000e+00 : f32
    %75 = vector.broadcast %cst_41 : f32 to vector<208x64xf32>
    %76 = arith.maximumf %74, %75 : vector<208x64xf32>
    %77 = vector.shape_cast %76 : vector<208x64xf32> to vector<13x16x64xf32>
    %78 = tpu.iota {dimensions = array<i32: 1>} : vector<13x16x64xi32>
    %c13_i32 = arith.constant 13 : i32
    %79 = vector.broadcast %c13_i32 : i32 to vector<13x16x64xi32>
    %80 = arith.cmpi slt, %78, %79 : vector<13x16x64xi32>
    %cst_42 = arith.constant 0.000000e+00 : f32
    %81 = vector.broadcast %cst_42 : f32 to vector<13x16x64xf32>
    %82 = arith.select %80, %77, %81 : vector<13x16x64xi1>, vector<13x16x64xf32>
    %c0_43 = arith.constant 0 : index
    %c0_44 = arith.constant 0 : index
    %c0_45 = arith.constant 0 : index
    %c0_46 = arith.constant 0 : index
    %83 = vector.load %arg5[%c0_43, %c0_44, %c0_45, %c0_46] : memref<1x13x16x64xf32, #tpu.memory_space<vmem>>, vector<1x13x16x64xf32>
    %84 = vector.shape_cast %83 : vector<1x13x16x64xf32> to vector<13x16x64xf32>
    %85 = vector.shape_cast %82 : vector<13x16x64xf32> to vector<1x13x16x64xf32>
    tpu.vector_store %arg5[%c0_43, %c0_44, %c0_45, %c0_46], %85 {strides = array<i32>} : memref<1x13x16x64xf32, #tpu.memory_space<vmem>>, vector<1x13x16x64xf32>,
    return
  }
  func.func @transform_0(%arg0: i32) -> (i32, i32, i32, i32) {
    %c0_i32 = arith.constant 0 : i32
    %c0_i32_0 = arith.constant 0 : i32
    %c0_i32_1 = arith.constant 0 : i32
    %c0_i32_2 = arith.constant 0 : i32
    return %arg0, %c0_i32, %c0_i32_0, %c0_i32_1 : i32, i32, i32, i32
  }
  func.func @transform_1(%arg0: i32) -> (i32, i32, i32) {
    %c0_i32 = arith.constant 0 : i32
    %c0_i32_0 = arith.constant 0 : i32
    %c0_i32_1 = arith.constant 0 : i32
    %c0_i32_2 = arith.constant 0 : i32
    return %c0_i32, %c0_i32_0, %c0_i32_1 : i32, i32, i32
  }
  func.func @transform_2(%arg0: i32) -> (i32, i32) {
    %c0_i32 = arith.constant 0 : i32
    %c0_i32_0 = arith.constant 0 : i32
    %c0_i32_1 = arith.constant 0 : i32
    return %c0_i32, %c0_i32_0 : i32, i32
  }
  func.func @transform_3(%arg0: i32) -> (i32, i32) {
    %c0_i32 = arith.constant 0 : i32
    %c0_i32_0 = arith.constant 0 : i32
    %c0_i32_1 = arith.constant 0 : i32
    return %c0_i32, %c0_i32_0 : i32, i32
  }
  func.func @transform_4(%arg0: i32) -> (i32, i32, i32, i32) {
    %c0_i32 = arith.constant 0 : i32
    %c0_i32_0 = arith.constant 0 : i32
    %c0_i32_1 = arith.constant 0 : i32
    %c0_i32_2 = arith.constant 0 : i32
    return %arg0, %c0_i32, %c0_i32_0, %c0_i32_1 : i32, i32, i32, i32
  }
}

module attributes {stable_mosaic.version = 11 : i64} {
  func.func @_matmul_bn_relu_kernel(%arg0: i32, %arg1: memref<96x64xf32, #tpu.memory_space<vmem>>, %arg2: memref<64x80xf32, #tpu.memory_space<vmem>>, %arg3: memref<1x80xf32, #tpu.memory_space<vmem>>, %arg4: memref<1x80xf32, #tpu.memory_space<vmem>>, %arg5: memref<96x80xf32, #tpu.memory_space<vmem>>) attributes {dimension_semantics = [#tpu.dimension_semantics<parallel>], iteration_bounds = array<i64: 1>, scalar_prefetch = 0 : i64, scratch_operands = 0 : i64, tpu.core_type = #tpu.core_type<tc>, window_params = [{transform_indices = @transform_0, window_bounds = array<i64: 96, 64>}, {pipeline_mode = #tpu.pipeline_mode<synchronous>, transform_indices = @transform_1, window_bounds = array<i64: 64, 80>}, {pipeline_mode = #tpu.pipeline_mode<synchronous>, transform_indices = @transform_2, window_bounds = array<i64: 1, 80>}, {pipeline_mode = #tpu.pipeline_mode<synchronous>, transform_indices = @transform_3, window_bounds = array<i64: 1, 80>}, {transform_indices = @transform_4, window_bounds = array<i64: 96, 80>}]} {
    %c0 = arith.constant 0 : index
    %c0_0 = arith.constant 0 : index
    %0 = vector.load %arg1[%c0, %c0_0] : memref<96x64xf32, #tpu.memory_space<vmem>>, vector<96x64xf32>
    %c0_1 = arith.constant 0 : index
    %c0_2 = arith.constant 0 : index
    %1 = vector.load %arg2[%c0_1, %c0_2] : memref<64x80xf32, #tpu.memory_space<vmem>>, vector<64x80xf32>
    %cst = arith.constant dense<0.000000e+00> : vector<96x80xf32>
    %2 = tpu.matmul %0, %1, %cst {dimension_numbers = #tpu.dot_dimension_numbers<[1], [0], [0], [1], [0, 0, 1, 1], [], []>} : vector<96x64xf32>, vector<64x80xf32>, vector<96x80xf32> -> vector<96x80xf32>
    %c0_3 = arith.constant 0 : index
    %c0_4 = arith.constant 0 : index
    %3 = vector.load %arg3[%c0_3, %c0_4] : memref<1x80xf32, #tpu.memory_space<vmem>>, vector<1x80xf32>
    %4 = vector.broadcast %3 : vector<1x80xf32> to vector<96x80xf32>
    %5 = arith.mulf %2, %4 : vector<96x80xf32>
    %c0_5 = arith.constant 0 : index
    %c0_6 = arith.constant 0 : index
    %6 = vector.load %arg4[%c0_5, %c0_6] : memref<1x80xf32, #tpu.memory_space<vmem>>, vector<1x80xf32>
    %7 = vector.broadcast %6 : vector<1x80xf32> to vector<96x80xf32>
    %8 = arith.addf %5, %7 : vector<96x80xf32>
    %cst_7 = arith.constant 0.000000e+00 : f32
    %9 = vector.broadcast %cst_7 : f32 to vector<96x80xf32>
    %10 = arith.maximumf %8, %9 : vector<96x80xf32>
    %c0_8 = arith.constant 0 : index
    %c0_9 = arith.constant 0 : index
    %11 = vector.load %arg5[%c0_8, %c0_9] : memref<96x80xf32, #tpu.memory_space<vmem>>, vector<96x80xf32>
    tpu.vector_store %arg5[%c0_8, %c0_9], %10 {strides = array<i32>} : memref<96x80xf32, #tpu.memory_space<vmem>>, vector<96x80xf32>,
    return
  }
  func.func @transform_0(%arg0: i32) -> (i32, i32) {
    %c0_i32 = arith.constant 0 : i32
    %c0_i32_0 = arith.constant 0 : i32
    return %arg0, %c0_i32 : i32, i32
  }
  func.func @transform_1(%arg0: i32) -> (i32, i32) {
    %c0_i32 = arith.constant 0 : i32
    %c0_i32_0 = arith.constant 0 : i32
    %c0_i32_1 = arith.constant 0 : i32
    return %c0_i32, %c0_i32_0 : i32, i32
  }
  func.func @transform_2(%arg0: i32) -> (i32, i32) {
    %c0_i32 = arith.constant 0 : i32
    %c0_i32_0 = arith.constant 0 : i32
    %c0_i32_1 = arith.constant 0 : i32
    return %c0_i32, %c0_i32_0 : i32, i32
  }
  func.func @transform_3(%arg0: i32) -> (i32, i32) {
    %c0_i32 = arith.constant 0 : i32
    %c0_i32_0 = arith.constant 0 : i32
    %c0_i32_1 = arith.constant 0 : i32
    return %c0_i32, %c0_i32_0 : i32, i32
  }
  func.func @transform_4(%arg0: i32) -> (i32, i32) {
    %c0_i32 = arith.constant 0 : i32
    %c0_i32_0 = arith.constant 0 : i32
    return %arg0, %c0_i32 : i32, i32
  }
}

module attributes {stable_mosaic.version = 11 : i64} {
  func.func @_conv3x3s1_bn_relu_kernel(%arg0: i32, %arg1: memref<1x6x8x80xf32, #tpu.memory_space<vmem>>, %arg2: memref<9x80x192xf32, #tpu.memory_space<vmem>>, %arg3: memref<1x192xf32, #tpu.memory_space<vmem>>, %arg4: memref<1x192xf32, #tpu.memory_space<vmem>>, %arg5: memref<1x4x8x192xf32, #tpu.memory_space<vmem>>) attributes {dimension_semantics = [#tpu.dimension_semantics<parallel>], iteration_bounds = array<i64: 2>, scalar_prefetch = 0 : i64, scratch_operands = 0 : i64, tpu.core_type = #tpu.core_type<tc>, window_params = [{transform_indices = @transform_0, window_bounds = array<i64: 1, 6, 8, 80>}, {pipeline_mode = #tpu.pipeline_mode<synchronous>, transform_indices = @transform_1, window_bounds = array<i64: 9, 80, 192>}, {pipeline_mode = #tpu.pipeline_mode<synchronous>, transform_indices = @transform_2, window_bounds = array<i64: 1, 192>}, {pipeline_mode = #tpu.pipeline_mode<synchronous>, transform_indices = @transform_3, window_bounds = array<i64: 1, 192>}, {transform_indices = @transform_4, window_bounds = array<i64: 1, 4, 8, 192>}]} {
    %c0 = arith.constant 0 : index
    %c0_0 = arith.constant 0 : index
    %c0_1 = arith.constant 0 : index
    %c0_2 = arith.constant 0 : index
    %0 = vector.load %arg1[%c0, %c0_0, %c0_1, %c0_2] : memref<1x6x8x80xf32, #tpu.memory_space<vmem>>, vector<1x6x8x80xf32>
    %1 = vector.shape_cast %0 : vector<1x6x8x80xf32> to vector<6x8x80xf32>
    %cst = arith.constant 0.000000e+00 : f32
    %2 = vector.broadcast %cst : f32 to vector<32x192xf32>
    %3 = vector.extract_strided_slice %1 {offsets = [0, 0, 0], sizes = [4, 8, 80], strides = [1, 1, 1]} : vector<6x8x80xf32> to vector<4x8x80xf32>
    %4 = vector.shape_cast %3 : vector<4x8x80xf32> to vector<32x80xf32>
    %c0_3 = arith.constant 0 : index
    %c0_4 = arith.constant 0 : index
    %c0_5 = arith.constant 0 : index
    %5 = vector.load %arg2[%c0_3, %c0_4, %c0_5] : memref<9x80x192xf32, #tpu.memory_space<vmem>>, vector<1x80x192xf32>
    %6 = vector.shape_cast %5 : vector<1x80x192xf32> to vector<80x192xf32>
    %cst_6 = arith.constant dense<0.000000e+00> : vector<32x192xf32>
    %7 = tpu.matmul %4, %6, %cst_6 {dimension_numbers = #tpu.dot_dimension_numbers<[1], [0], [0], [1], [0, 0, 1, 1], [], []>} : vector<32x80xf32>, vector<80x192xf32>, vector<32x192xf32> -> vector<32x192xf32>
    %8 = arith.addf %2, %7 : vector<32x192xf32>
    %9 = vector.extract_strided_slice %3 {offsets = [0, 1, 0], sizes = [4, 7, 80], strides = [1, 1, 1]} : vector<4x8x80xf32> to vector<4x7x80xf32>
    %cst_7 = arith.constant 0.000000e+00 : f32
    %10 = vector.broadcast %cst_7 : f32 to vector<4x1x80xf32>
    %11 = tpu.concatenate %9, %10 in 1 : vector<4x7x80xf32>, vector<4x1x80xf32> -> vector<4x8x80xf32>
    %12 = vector.shape_cast %11 : vector<4x8x80xf32> to vector<32x80xf32>
    %c1 = arith.constant 1 : index
    %c0_8 = arith.constant 0 : index
    %c0_9 = arith.constant 0 : index
    %13 = vector.load %arg2[%c1, %c0_8, %c0_9] : memref<9x80x192xf32, #tpu.memory_space<vmem>>, vector<1x80x192xf32>
    %14 = vector.shape_cast %13 : vector<1x80x192xf32> to vector<80x192xf32>
    %cst_10 = arith.constant dense<0.000000e+00> : vector<32x192xf32>
    %15 = tpu.matmul %12, %14, %cst_10 {dimension_numbers = #tpu.dot_dimension_numbers<[1], [0], [0], [1], [0, 0, 1, 1], [], []>} : vector<32x80xf32>, vector<80x192xf32>, vector<32x192xf32> -> vector<32x192xf32>
    %16 = arith.addf %8, %15 : vector<32x192xf32>
    %17 = vector.extract_strided_slice %3 {offsets = [0, 2, 0], sizes = [4, 6, 80], strides = [1, 1, 1]} : vector<4x8x80xf32> to vector<4x6x80xf32>
    %cst_11 = arith.constant 0.000000e+00 : f32
    %18 = vector.broadcast %cst_11 : f32 to vector<4x2x80xf32>
    %19 = tpu.concatenate %17, %18 in 1 : vector<4x6x80xf32>, vector<4x2x80xf32> -> vector<4x8x80xf32>
    %20 = vector.shape_cast %19 : vector<4x8x80xf32> to vector<32x80xf32>
    %c2 = arith.constant 2 : index
    %c0_12 = arith.constant 0 : index
    %c0_13 = arith.constant 0 : index
    %21 = vector.load %arg2[%c2, %c0_12, %c0_13] : memref<9x80x192xf32, #tpu.memory_space<vmem>>, vector<1x80x192xf32>
    %22 = vector.shape_cast %21 : vector<1x80x192xf32> to vector<80x192xf32>
    %cst_14 = arith.constant dense<0.000000e+00> : vector<32x192xf32>
    %23 = tpu.matmul %20, %22, %cst_14 {dimension_numbers = #tpu.dot_dimension_numbers<[1], [0], [0], [1], [0, 0, 1, 1], [], []>} : vector<32x80xf32>, vector<80x192xf32>, vector<32x192xf32> -> vector<32x192xf32>
    %24 = arith.addf %16, %23 : vector<32x192xf32>
    %25 = vector.extract_strided_slice %1 {offsets = [1, 0, 0], sizes = [4, 8, 80], strides = [1, 1, 1]} : vector<6x8x80xf32> to vector<4x8x80xf32>
    %26 = vector.shape_cast %25 : vector<4x8x80xf32> to vector<32x80xf32>
    %c3 = arith.constant 3 : index
    %c0_15 = arith.constant 0 : index
    %c0_16 = arith.constant 0 : index
    %27 = vector.load %arg2[%c3, %c0_15, %c0_16] : memref<9x80x192xf32, #tpu.memory_space<vmem>>, vector<1x80x192xf32>
    %28 = vector.shape_cast %27 : vector<1x80x192xf32> to vector<80x192xf32>
    %cst_17 = arith.constant dense<0.000000e+00> : vector<32x192xf32>
    %29 = tpu.matmul %26, %28, %cst_17 {dimension_numbers = #tpu.dot_dimension_numbers<[1], [0], [0], [1], [0, 0, 1, 1], [], []>} : vector<32x80xf32>, vector<80x192xf32>, vector<32x192xf32> -> vector<32x192xf32>
    %30 = arith.addf %24, %29 : vector<32x192xf32>
    %31 = vector.extract_strided_slice %25 {offsets = [0, 1, 0], sizes = [4, 7, 80], strides = [1, 1, 1]} : vector<4x8x80xf32> to vector<4x7x80xf32>
    %cst_18 = arith.constant 0.000000e+00 : f32
    %32 = vector.broadcast %cst_18 : f32 to vector<4x1x80xf32>
    %33 = tpu.concatenate %31, %32 in 1 : vector<4x7x80xf32>, vector<4x1x80xf32> -> vector<4x8x80xf32>
    %34 = vector.shape_cast %33 : vector<4x8x80xf32> to vector<32x80xf32>
    %c4 = arith.constant 4 : index
    %c0_19 = arith.constant 0 : index
    %c0_20 = arith.constant 0 : index
    %35 = vector.load %arg2[%c4, %c0_19, %c0_20] : memref<9x80x192xf32, #tpu.memory_space<vmem>>, vector<1x80x192xf32>
    %36 = vector.shape_cast %35 : vector<1x80x192xf32> to vector<80x192xf32>
    %cst_21 = arith.constant dense<0.000000e+00> : vector<32x192xf32>
    %37 = tpu.matmul %34, %36, %cst_21 {dimension_numbers = #tpu.dot_dimension_numbers<[1], [0], [0], [1], [0, 0, 1, 1], [], []>} : vector<32x80xf32>, vector<80x192xf32>, vector<32x192xf32> -> vector<32x192xf32>
    %38 = arith.addf %30, %37 : vector<32x192xf32>
    %39 = vector.extract_strided_slice %25 {offsets = [0, 2, 0], sizes = [4, 6, 80], strides = [1, 1, 1]} : vector<4x8x80xf32> to vector<4x6x80xf32>
    %cst_22 = arith.constant 0.000000e+00 : f32
    %40 = vector.broadcast %cst_22 : f32 to vector<4x2x80xf32>
    %41 = tpu.concatenate %39, %40 in 1 : vector<4x6x80xf32>, vector<4x2x80xf32> -> vector<4x8x80xf32>
    %42 = vector.shape_cast %41 : vector<4x8x80xf32> to vector<32x80xf32>
    %c5 = arith.constant 5 : index
    %c0_23 = arith.constant 0 : index
    %c0_24 = arith.constant 0 : index
    %43 = vector.load %arg2[%c5, %c0_23, %c0_24] : memref<9x80x192xf32, #tpu.memory_space<vmem>>, vector<1x80x192xf32>
    %44 = vector.shape_cast %43 : vector<1x80x192xf32> to vector<80x192xf32>
    %cst_25 = arith.constant dense<0.000000e+00> : vector<32x192xf32>
    %45 = tpu.matmul %42, %44, %cst_25 {dimension_numbers = #tpu.dot_dimension_numbers<[1], [0], [0], [1], [0, 0, 1, 1], [], []>} : vector<32x80xf32>, vector<80x192xf32>, vector<32x192xf32> -> vector<32x192xf32>
    %46 = arith.addf %38, %45 : vector<32x192xf32>
    %47 = vector.extract_strided_slice %1 {offsets = [2, 0, 0], sizes = [4, 8, 80], strides = [1, 1, 1]} : vector<6x8x80xf32> to vector<4x8x80xf32>
    %48 = vector.shape_cast %47 : vector<4x8x80xf32> to vector<32x80xf32>
    %c6 = arith.constant 6 : index
    %c0_26 = arith.constant 0 : index
    %c0_27 = arith.constant 0 : index
    %49 = vector.load %arg2[%c6, %c0_26, %c0_27] : memref<9x80x192xf32, #tpu.memory_space<vmem>>, vector<1x80x192xf32>
    %50 = vector.shape_cast %49 : vector<1x80x192xf32> to vector<80x192xf32>
    %cst_28 = arith.constant dense<0.000000e+00> : vector<32x192xf32>
    %51 = tpu.matmul %48, %50, %cst_28 {dimension_numbers = #tpu.dot_dimension_numbers<[1], [0], [0], [1], [0, 0, 1, 1], [], []>} : vector<32x80xf32>, vector<80x192xf32>, vector<32x192xf32> -> vector<32x192xf32>
    %52 = arith.addf %46, %51 : vector<32x192xf32>
    %53 = vector.extract_strided_slice %47 {offsets = [0, 1, 0], sizes = [4, 7, 80], strides = [1, 1, 1]} : vector<4x8x80xf32> to vector<4x7x80xf32>
    %cst_29 = arith.constant 0.000000e+00 : f32
    %54 = vector.broadcast %cst_29 : f32 to vector<4x1x80xf32>
    %55 = tpu.concatenate %53, %54 in 1 : vector<4x7x80xf32>, vector<4x1x80xf32> -> vector<4x8x80xf32>
    %56 = vector.shape_cast %55 : vector<4x8x80xf32> to vector<32x80xf32>
    %c7 = arith.constant 7 : index
    %c0_30 = arith.constant 0 : index
    %c0_31 = arith.constant 0 : index
    %57 = vector.load %arg2[%c7, %c0_30, %c0_31] : memref<9x80x192xf32, #tpu.memory_space<vmem>>, vector<1x80x192xf32>
    %58 = vector.shape_cast %57 : vector<1x80x192xf32> to vector<80x192xf32>
    %cst_32 = arith.constant dense<0.000000e+00> : vector<32x192xf32>
    %59 = tpu.matmul %56, %58, %cst_32 {dimension_numbers = #tpu.dot_dimension_numbers<[1], [0], [0], [1], [0, 0, 1, 1], [], []>} : vector<32x80xf32>, vector<80x192xf32>, vector<32x192xf32> -> vector<32x192xf32>
    %60 = arith.addf %52, %59 : vector<32x192xf32>
    %61 = vector.extract_strided_slice %47 {offsets = [0, 2, 0], sizes = [4, 6, 80], strides = [1, 1, 1]} : vector<4x8x80xf32> to vector<4x6x80xf32>
    %cst_33 = arith.constant 0.000000e+00 : f32
    %62 = vector.broadcast %cst_33 : f32 to vector<4x2x80xf32>
    %63 = tpu.concatenate %61, %62 in 1 : vector<4x6x80xf32>, vector<4x2x80xf32> -> vector<4x8x80xf32>
    %64 = vector.shape_cast %63 : vector<4x8x80xf32> to vector<32x80xf32>
    %c8 = arith.constant 8 : index
    %c0_34 = arith.constant 0 : index
    %c0_35 = arith.constant 0 : index
    %65 = vector.load %arg2[%c8, %c0_34, %c0_35] : memref<9x80x192xf32, #tpu.memory_space<vmem>>, vector<1x80x192xf32>
    %66 = vector.shape_cast %65 : vector<1x80x192xf32> to vector<80x192xf32>
    %cst_36 = arith.constant dense<0.000000e+00> : vector<32x192xf32>
    %67 = tpu.matmul %64, %66, %cst_36 {dimension_numbers = #tpu.dot_dimension_numbers<[1], [0], [0], [1], [0, 0, 1, 1], [], []>} : vector<32x80xf32>, vector<80x192xf32>, vector<32x192xf32> -> vector<32x192xf32>
    %68 = arith.addf %60, %67 : vector<32x192xf32>
    %c0_37 = arith.constant 0 : index
    %c0_38 = arith.constant 0 : index
    %69 = vector.load %arg3[%c0_37, %c0_38] : memref<1x192xf32, #tpu.memory_space<vmem>>, vector<1x192xf32>
    %70 = vector.broadcast %69 : vector<1x192xf32> to vector<32x192xf32>
    %71 = arith.mulf %68, %70 : vector<32x192xf32>
    %c0_39 = arith.constant 0 : index
    %c0_40 = arith.constant 0 : index
    %72 = vector.load %arg4[%c0_39, %c0_40] : memref<1x192xf32, #tpu.memory_space<vmem>>, vector<1x192xf32>
    %73 = vector.broadcast %72 : vector<1x192xf32> to vector<32x192xf32>
    %74 = arith.addf %71, %73 : vector<32x192xf32>
    %cst_41 = arith.constant 0.000000e+00 : f32
    %75 = vector.broadcast %cst_41 : f32 to vector<32x192xf32>
    %76 = arith.maximumf %74, %75 : vector<32x192xf32>
    %77 = vector.shape_cast %76 : vector<32x192xf32> to vector<4x8x192xf32>
    %78 = tpu.iota {dimensions = array<i32: 1>} : vector<4x8x192xi32>
    %c4_i32 = arith.constant 4 : i32
    %79 = vector.broadcast %c4_i32 : i32 to vector<4x8x192xi32>
    %80 = arith.cmpi slt, %78, %79 : vector<4x8x192xi32>
    %cst_42 = arith.constant 0.000000e+00 : f32
    %81 = vector.broadcast %cst_42 : f32 to vector<4x8x192xf32>
    %82 = arith.select %80, %77, %81 : vector<4x8x192xi1>, vector<4x8x192xf32>
    %c0_43 = arith.constant 0 : index
    %c0_44 = arith.constant 0 : index
    %c0_45 = arith.constant 0 : index
    %c0_46 = arith.constant 0 : index
    %83 = vector.load %arg5[%c0_43, %c0_44, %c0_45, %c0_46] : memref<1x4x8x192xf32, #tpu.memory_space<vmem>>, vector<1x4x8x192xf32>
    %84 = vector.shape_cast %83 : vector<1x4x8x192xf32> to vector<4x8x192xf32>
    %85 = vector.shape_cast %82 : vector<4x8x192xf32> to vector<1x4x8x192xf32>
    tpu.vector_store %arg5[%c0_43, %c0_44, %c0_45, %c0_46], %85 {strides = array<i32>} : memref<1x4x8x192xf32, #tpu.memory_space<vmem>>, vector<1x4x8x192xf32>,
    return
  }
  func.func @transform_0(%arg0: i32) -> (i32, i32, i32, i32) {
    %c0_i32 = arith.constant 0 : i32
    %c0_i32_0 = arith.constant 0 : i32
    %c0_i32_1 = arith.constant 0 : i32
    %c0_i32_2 = arith.constant 0 : i32
    return %arg0, %c0_i32, %c0_i32_0, %c0_i32_1 : i32, i32, i32, i32
  }
  func.func @transform_1(%arg0: i32) -> (i32, i32, i32) {
    %c0_i32 = arith.constant 0 : i32
    %c0_i32_0 = arith.constant 0 : i32
    %c0_i32_1 = arith.constant 0 : i32
    %c0_i32_2 = arith.constant 0 : i32
    return %c0_i32, %c0_i32_0, %c0_i32_1 : i32, i32, i32
  }
  func.func @transform_2(%arg0: i32) -> (i32, i32) {
    %c0_i32 = arith.constant 0 : i32
    %c0_i32_0 = arith.constant 0 : i32
    %c0_i32_1 = arith.constant 0 : i32
    return %c0_i32, %c0_i32_0 : i32, i32
  }
  func.func @transform_3(%arg0: i32) -> (i32, i32) {
    %c0_i32 = arith.constant 0 : i32
    %c0_i32_0 = arith.constant 0 : i32
    %c0_i32_1 = arith.constant 0 : i32
    return %c0_i32, %c0_i32_0 : i32, i32
  }
  func.func @transform_4(%arg0: i32) -> (i32, i32, i32, i32) {
    %c0_i32 = arith.constant 0 : i32
    %c0_i32_0 = arith.constant 0 : i32
    %c0_i32_1 = arith.constant 0 : i32
    %c0_i32_2 = arith.constant 0 : i32
    return %arg0, %c0_i32, %c0_i32_0, %c0_i32_1 : i32, i32, i32, i32
  }
}

</mosaic_0001>

<bundles_post_ra>
// kernel: inception_v3_forward.6
= control target key start
LH: loop header
LB: loop body
LE: loop exit
PB: predicated region body
PF: predicated region fallthrough
CT: control target
= control target key end

     0   :  { %v1166_v0 = vmov 0.0|0.0   ;;  %vm250_vm0 = vcmask 1042432   ;;  %vm1167_vm1 = vmmov 0   ;;  %v1168_v6 = vmov 0.0   ;;  %s1901_s1 = inlined_call_operand.vmem [shape: f32[27,32], index: 1, kind: input, shape index: {}]   ;;  %s1902_s0 = inlined_call_operand.vmem [shape: f32[456,27], index: 0, kind: input, shape index: {}]   ;;  %s1903_s2 = inlined_call_operand.vmem [shape: f32[1,32], index: 2, kind: input, shape index: {}]   ;;  %s1904_s3 = inlined_call_operand.vmem [shape: f32[1,32], index: 3, kind: input, shape index: {}]   ;;  %s1905_s4 = inlined_call_operand.vmem [shape: f32[456,32], index: 4, kind: output, shape index: {}]  }
   0x1   :  { %1151 = vmatprep.subr.bf16.mxu0 %v1166_v0  ;;  %v74_v1 = vld [vmem:[%s1901_s1] sm:$0xff]  ;;  %v75_v2 = vld [vmem:[%s1901_s1 + $0x8] sm:$0xff]  ;;  %1158 = vmatprep.subr.bf16.mxu1 %v1166_v0  ;;  %v76_v3 = vld [vmem:[%s1901_s1 + $0x10] sm:$0xff]  ;;  %vm1169_vm2 = vmmov 1   ;;  %vm78_vm4 = vcmask 220160   ;;  %vm789_vm5 = vcmask 261120  }
   0x2   :  { %v1152_v4 = vpack.c.bf16 %v75_v2, %v74_v1  ;;  %v77_v5 = vld [vmem:[%s1901_s1 + $0x18] sm:$0x7]  ;;  %980 = vmatprep.mubr.msk.f32.mxu0 %vm1167_vm1, %v1168_v6  ;;  %1067 = vmatprep.mubr.msk.f32.mxu1 %vm1167_vm1, %v1168_v6  ;;  %vm1156_vm3 = vmpackc.low %vm250_vm0, %vm1169_vm2  ;;  %v17_v8 = vld [vmem:[%s1902_s0] sm:$0xff] }
   0x3   :  { %v1155_v7 = vpack.c.bf16 %v77_v5, %v76_v3  ;;  %v46_v9 = vld [vmem:[%s1902_s0 + $0xe8] sm:$0xff]  ;;  %v47_v11 = vld [vmem:[%s1902_s0 + $0xf0] sm:$0xff]  ;;  %v48_v13 = vld [vmem:[%s1902_s0 + $0xf8] sm:$0xff] }
   0x4   :  { %1153 = vmatpush3.bf16.msra.mxu0 %v1152_v4  ;;  %1160 = vmatpush3.bf16.msra.mxu1 %v1152_v4  ;;  %v18_v10 = vld [vmem:[%s1902_s0 + $0x8] sm:$0xff]  ;;  %v19_v12 = vld [vmem:[%s1902_s0 + $0x10] sm:$0xff]  ;;  %v20_v14 = vld [vmem:[%s1902_s0 + $0x18] sm:$0xff] }
   0x5   :  { %1154 = vmatprep.subr.bf16.mxu0 %v1166_v0  ;;  %1159 = vmatprep.subr.bf16.mxu1 %v1166_v0  ;;  %v49_v15 = vld [vmem:[%s1902_s0 + $0x100] sm:$0xff]  ;;  %v50_v17 = vld [vmem:[%s1902_s0 + $0x108] sm:$0xff]  ;;  %v51_v19 = vld [vmem:[%s1902_s0 + $0x110] sm:$0xff] }
   0x6   :  { %v21_v16 = vld [vmem:[%s1902_s0 + $0x20] sm:$0xff]  ;;  %v22_v18 = vld [vmem:[%s1902_s0 + $0x28] sm:$0xff]  ;;  %v23_v20 = vld [vmem:[%s1902_s0 + $0x30] sm:$0xff] }
   0x7   :  { %v52_v21 = vld [vmem:[%s1902_s0 + $0x118] sm:$0xff]  ;;  %v53_v23 = vld [vmem:[%s1902_s0 + $0x120] sm:$0xff]  ;;  %v54_v25 = vld [vmem:[%s1902_s0 + $0x128] sm:$0xff] }
   0x8   :  { %1157 = vmatpush3.bf16.msk.msra.mxu0 %vm1156_vm3, %v1155_v7  ;;  %1161 = vmatpush3.bf16.msk.msra.mxu1 %vm1156_vm3, %v1155_v7  ;;  %v24_v22 = vld [vmem:[%s1902_s0 + $0x38] sm:$0xff]  ;;  %v25_v24 = vld [vmem:[%s1902_s0 + $0x40] sm:$0xff]  ;;  %v26_v26 = vld [vmem:[%s1902_s0 + $0x48] sm:$0xff] }
   0x9   :  { %v55_v27 = vld [vmem:[%s1902_s0 + $0x130] sm:$0xff]  ;;  %v56_v29 = vld [vmem:[%s1902_s0 + $0x138] sm:$0xff]  ;;  %v57_v31 = vld [vmem:[%s1902_s0 + $0x140] sm:$0xff] }
   0xa   :  { %v27_v28 = vld [vmem:[%s1902_s0 + $0x50] sm:$0xff]  ;;  %v28_v30 = vld [vmem:[%s1902_s0 + $0x58] sm:$0xff]  ;;  %v29_v32 = vld [vmem:[%s1902_s0 + $0x60] sm:$0xff] }
   0xb   :  { %981 = vmatmul.mubr.msk.f32.vlgmr.msra.gmra.mrb[0].mxu0 %vm78_vm4, %v17_v8  ;;  %1068 = vmatmul.mubr.msk.f32.vlgmr.msra.gmra.mrb[0].mxu1 %vm78_vm4, %v46_v9  ;;  %v58_v33 = vld [vmem:[%s1902_s0 + $0x148] sm:$0xff]  ;;  %v59_v35 = vld [vmem:[%s1902_s0 + $0x150] sm:$0xff]  ;;  %v60_v37 = vld [vmem:[%s1902_s0 + $0x158] sm:$0xff] }
   0xc   :  { %983 = vmatprep.mubr.msk.f32.mxu0 %vm1167_vm1, %v1168_v6  ;;  %1070 = vmatprep.mubr.msk.f32.mxu1 %vm1167_vm1, %v1168_v6  ;;  %v30_v34 = vld [vmem:[%s1902_s0 + $0x68] sm:$0xff]  ;;  %v31_v36 = vld [vmem:[%s1902_s0 + $0x70] sm:$0xff]  ;;  %v32_v38 = vld [vmem:[%s1902_s0 + $0x78] sm:$0xff] }
   0xd   :  { %v61_v39 = vld [vmem:[%s1902_s0 + $0x160] sm:$0xff]  ;;  %v62_v41 = vld [vmem:[%s1902_s0 + $0x168] sm:$0xff]  ;;  %v63_v43 = vld [vmem:[%s1902_s0 + $0x170] sm:$0xff] }
   0xe   :  { %v33_v40 = vld [vmem:[%s1902_s0 + $0x80] sm:$0xff]  ;;  %v34_v42 = vld [vmem:[%s1902_s0 + $0x88] sm:$0xff]  ;;  %v35_v44 = vld [vmem:[%s1902_s0 + $0x90] sm:$0xff] }
   0xf   :  { %984 = vmatmul.mubr.msk.f32.gmra.mrb[2].mxu0 %vm78_vm4, %v18_v10  ;;  %1071 = vmatmul.mubr.msk.f32.gmra.mrb[2].mxu1 %vm78_vm4, %v47_v11  ;;  %v64_v45 = vld [vmem:[%s1902_s0 + $0x178] sm:$0xff]  ;;  %v65_v47 = vld [vmem:[%s1902_s0 + $0x180] sm:$0xff]  ;;  %v66_v49 = vld [vmem:[%s1902_s0 + $0x188] sm:$0xff] }
  0x10   :  { %986 = vmatprep.mubr.msk.f32.mxu0 %vm1167_vm1, %v1168_v6  ;;  %1073 = vmatprep.mubr.msk.f32.mxu1 %vm1167_vm1, %v1168_v6  ;;  %v36_v46 = vld [vmem:[%s1902_s0 + $0x98] sm:$0xff]  ;;  %v37_v48 = vld [vmem:[%s1902_s0 + $0xa0] sm:$0xff]  ;;  %v38_v50 = vld [vmem:[%s1902_s0 + $0xa8] sm:$0xff] }
  0x11   :  { %v67_v51 = vld [vmem:[%s1902_s0 + $0x190] sm:$0xff]  ;;  %v68_v53 = vld [vmem:[%s1902_s0 + $0x198] sm:$0xff]  ;;  %v69_v55 = vld [vmem:[%s1902_s0 + $0x1a0] sm:$0xff] }
  0x12   :  { %v39_v52 = vld [vmem:[%s1902_s0 + $0xb0] sm:$0xff]  ;;  %v40_v54 = vld [vmem:[%s1902_s0 + $0xb8] sm:$0xff]  ;;  %v41_v56 = vld [vmem:[%s1902_s0 + $0xc0] sm:$0xff] }
  0x13   :  { %987 = vmatmul.mubr.msk.f32.gmra.mrb[4].mxu0 %vm78_vm4, %v19_v12  ;;  %1074 = vmatmul.mubr.msk.f32.gmra.mrb[4].mxu1 %vm78_vm4, %v48_v13  ;;  %v70_v57 = vld [vmem:[%s1902_s0 + $0x1a8] sm:$0xff]  ;;  %v71_v59 = vld [vmem:[%s1902_s0 + $0x1b0] sm:$0xff]  ;;  %v72_v61 = vld [vmem:[%s1902_s0 + $0x1b8] sm:$0xff] }
  0x14   :  { %989 = vmatprep.mubr.msk.f32.mxu0 %vm1167_vm1, %v1168_v6  ;;  %1076 = vmatprep.mubr.msk.f32.mxu1 %vm1167_vm1, %v1168_v6  ;;  %v42_v58 = vld [vmem:[%s1902_s0 + $0xc8] sm:$0xff]  ;;  %v43_v60 = vld [vmem:[%s1902_s0 + $0xd0] sm:$0xff]  ;;  %v44_v62 = vld [vmem:[%s1902_s0 + $0xd8] sm:$0xff] }
  0x15   :  { %v73_v63 = vld [vmem:[%s1902_s0 + $0x1c0] sm:$0xff] }
  0x16   :  { %v45_v0 = vld [vmem:[%s1902_s0 + $0xe0] sm:$0xff] }
  0x17   :  { %990 = vmatmul.mubr.msk.f32.gmra.mrb[6].mxu0 %vm78_vm4, %v20_v14  ;;  %1077 = vmatmul.mubr.msk.f32.gmra.mrb[6].mxu1 %vm78_vm4, %v49_v15  ;;  %v1552_v1 = vld [vmem:[%s1903_s2] ss:$0 sm:$0xff] }
  0x18   :  { %992 = vmatprep.mubr.msk.f32.mxu0 %vm1167_vm1, %v1168_v6  ;;  %1079 = vmatprep.mubr.msk.f32.mxu1 %vm1167_vm1, %v1168_v6  ;;  %v1557_v3 = vld [vmem:[%s1904_s3] ss:$0 sm:$0xff] }
  0x1b   :  { %993 = vmatmul.mubr.msk.f32.gmra.mrb[8].mxu0 %vm78_vm4, %v21_v16  ;;  %1080 = vmatmul.mubr.msk.f32.gmra.mrb[8].mxu1 %vm78_vm4, %v50_v17 }
  0x1c   :  { %995 = vmatprep.mubr.msk.f32.mxu0 %vm1167_vm1, %v1168_v6  ;;  %1082 = vmatprep.mubr.msk.f32.mxu1 %vm1167_vm1, %v1168_v6 }
  0x1f   :  { %996 = vmatmul.mubr.msk.f32.gmra.mrb[10].mxu0 %vm78_vm4, %v22_v18  ;;  %1083 = vmatmul.mubr.msk.f32.gmra.mrb[10].mxu1 %vm78_vm4, %v51_v19 }
  0x20   :  { %998 = vmatprep.mubr.msk.f32.mxu0 %vm1167_vm1, %v1168_v6  ;;  %1085 = vmatprep.mubr.msk.f32.mxu1 %vm1167_vm1, %v1168_v6 }
  0x23   :  { %999 = vmatmul.mubr.msk.f32.gmra.mrb[12].mxu0 %vm78_vm4, %v23_v20  ;;  %1086 = vmatmul.mubr.msk.f32.gmra.mrb[12].mxu1 %vm78_vm4, %v52_v21 }
  0x24   :  { %1001 = vmatprep.mubr.msk.f32.mxu0 %vm1167_vm1, %v1168_v6  ;;  %1088 = vmatprep.mubr.msk.f32.mxu1 %vm1167_vm1, %v1168_v6 }
  0x27   :  { %1002 = vmatmul.mubr.msk.f32.gmra.mrb[14].mxu0 %vm78_vm4, %v24_v22  ;;  %1089 = vmatmul.mubr.msk.f32.gmra.mrb[14].mxu1 %vm78_vm4, %v53_v23 }
  0x28   :  { %1004 = vmatprep.mubr.msk.f32.mxu0 %vm1167_vm1, %v1168_v6  ;;  %1091 = vmatprep.mubr.msk.f32.mxu1 %vm1167_vm1, %v1168_v6 }
  0x2b   :  { %1005 = vmatmul.mubr.msk.f32.gmra.mrb[16].mxu0 %vm78_vm4, %v25_v24  ;;  %1092 = vmatmul.mubr.msk.f32.gmra.mrb[16].mxu1 %vm78_vm4, %v54_v25 }
  0x2c   :  { %1007 = vmatprep.mubr.msk.f32.mxu0 %vm1167_vm1, %v1168_v6  ;;  %1094 = vmatprep.mubr.msk.f32.mxu1 %vm1167_vm1, %v1168_v6 }
  0x2f   :  { %1008 = vmatmul.mubr.msk.f32.gmra.mrb[18].mxu0 %vm78_vm4, %v26_v26  ;;  %1095 = vmatmul.mubr.msk.f32.gmra.mrb[18].mxu1 %vm78_vm4, %v55_v27 }
  0x30   :  { %1010 = vmatprep.mubr.msk.f32.mxu0 %vm1167_vm1, %v1168_v6  ;;  %1097 = vmatprep.mubr.msk.f32.mxu1 %vm1167_vm1, %v1168_v6 }
  0x33   :  { %1011 = vmatmul.mubr.msk.f32.gmra.mrb[20].mxu0 %vm78_vm4, %v27_v28  ;;  %1098 = vmatmul.mubr.msk.f32.gmra.mrb[20].mxu1 %vm78_vm4, %v56_v29 }
  0x34   :  { %1013 = vmatprep.mubr.msk.f32.mxu0 %vm1167_vm1, %v1168_v6  ;;  %1100 = vmatprep.mubr.msk.f32.mxu1 %vm1167_vm1, %v1168_v6 }
  0x37   :  { %1014 = vmatmul.mubr.msk.f32.gmra.mrb[22].mxu0 %vm78_vm4, %v28_v30  ;;  %1101 = vmatmul.mubr.msk.f32.gmra.mrb[22].mxu1 %vm78_vm4, %v57_v31 }
  0x38   :  { %1016 = vmatprep.mubr.msk.f32.mxu0 %vm1167_vm1, %v1168_v6  ;;  %1103 = vmatprep.mubr.msk.f32.mxu1 %vm1167_vm1, %v1168_v6 }
  0x3b   :  { %1017 = vmatmul.mubr.msk.f32.gmra.mrb[24].mxu0 %vm78_vm4, %v29_v32  ;;  %1104 = vmatmul.mubr.msk.f32.gmra.mrb[24].mxu1 %vm78_vm4, %v58_v33 }
  0x3c   :  { %1019 = vmatprep.mubr.msk.f32.mxu0 %vm1167_vm1, %v1168_v6  ;;  %1106 = vmatprep.mubr.msk.f32.mxu1 %vm1167_vm1, %v1168_v6 }
  0x3f   :  { %1020 = vmatmul.mubr.msk.f32.gmra.mrb[26].mxu0 %vm78_vm4, %v30_v34  ;;  %1107 = vmatmul.mubr.msk.f32.gmra.mrb[26].mxu1 %vm78_vm4, %v59_v35 }
  0x40   :  { %1022 = vmatprep.mubr.msk.f32.mxu0 %vm1167_vm1, %v1168_v6  ;;  %1109 = vmatprep.mubr.msk.f32.mxu1 %vm1167_vm1, %v1168_v6 }
  0x43   :  { %1023 = vmatmul.mubr.msk.f32.gmra.mrb[28].mxu0 %vm78_vm4, %v31_v36  ;;  %1110 = vmatmul.mubr.msk.f32.gmra.mrb[28].mxu1 %vm78_vm4, %v60_v37 }
  0x44   :  { %1025 = vmatprep.mubr.msk.f32.mxu0 %vm1167_vm1, %v1168_v6  ;;  %1112 = vmatprep.mubr.msk.f32.mxu1 %vm1167_vm1, %v1168_v6 }
  0x47   :  { %1026 = vmatmul.mubr.msk.f32.gmra.mrb[30].mxu0 %vm78_vm4, %v32_v38  ;;  %1113 = vmatmul.mubr.msk.f32.gmra.mrb[30].mxu1 %vm78_vm4, %v61_v39 }
  0x48   :  { %1028 = vmatprep.mubr.msk.f32.mxu0 %vm1167_vm1, %v1168_v6  ;;  %1115 = vmatprep.mubr.msk.f32.mxu1 %vm1167_vm1, %v1168_v6 }
  0x4b   :  { %1029 = vmatmul.mubr.msk.f32.gmra.mrb[32].mxu0 %vm78_vm4, %v33_v40  ;;  %1116 = vmatmul.mubr.msk.f32.gmra.mrb[32].mxu1 %vm78_vm4, %v62_v41 }
  0x4c   :  { %1031 = vmatprep.mubr.msk.f32.mxu0 %vm1167_vm1, %v1168_v6  ;;  %1118 = vmatprep.mubr.msk.f32.mxu1 %vm1167_vm1, %v1168_v6 }
  0x4f   :  { %1032 = vmatmul.mubr.msk.f32.gmra.mrb[34].mxu0 %vm78_vm4, %v34_v42  ;;  %1119 = vmatmul.mubr.msk.f32.gmra.mrb[34].mxu1 %vm78_vm4, %v63_v43 }
  0x50   :  { %1034 = vmatprep.mubr.msk.f32.mxu0 %vm1167_vm1, %v1168_v6  ;;  %1121 = vmatprep.mubr.msk.f32.mxu1 %vm1167_vm1, %v1168_v6 }
  0x53   :  { %1035 = vmatmul.mubr.msk.f32.gmra.mrb[36].mxu0 %vm78_vm4, %v35_v44  ;;  %1122 = vmatmul.mubr.msk.f32.gmra.mrb[36].mxu1 %vm78_vm4, %v64_v45 }
  0x54   :  { %1037 = vmatprep.mubr.msk.f32.mxu0 %vm1167_vm1, %v1168_v6  ;;  %1124 = vmatprep.mubr.msk.f32.mxu1 %vm1167_vm1, %v1168_v6 }
  0x57   :  { %1038 = vmatmul.mubr.msk.f32.gmra.mrb[38].mxu0 %vm78_vm4, %v36_v46  ;;  %1125 = vmatmul.mubr.msk.f32.gmra.mrb[38].mxu1 %vm78_vm4, %v65_v47 }
  0x58   :  { %1040 = vmatprep.mubr.msk.f32.mxu0 %vm1167_vm1, %v1168_v6  ;;  %1127 = vmatprep.mubr.msk.f32.mxu1 %vm1167_vm1, %v1168_v6 }
  0x5b   :  { %1041 = vmatmul.mubr.msk.f32.gmra.mrb[40].mxu0 %vm78_vm4, %v37_v48  ;;  %1128 = vmatmul.mubr.msk.f32.gmra.mrb[40].mxu1 %vm78_vm4, %v66_v49 }
  0x5c   :  { %1043 = vmatprep.mubr.msk.f32.mxu0 %vm1167_vm1, %v1168_v6  ;;  %1130 = vmatprep.mubr.msk.f32.mxu1 %vm1167_vm1, %v1168_v6 }
  0x5f   :  { %1044 = vmatmul.mubr.msk.f32.gmra.mrb[42].mxu0 %vm78_vm4, %v38_v50  ;;  %1131 = vmatmul.mubr.msk.f32.gmra.mrb[42].mxu1 %vm78_vm4, %v67_v51 }
  0x60   :  { %1046 = vmatprep.mubr.msk.f32.mxu0 %vm1167_vm1, %v1168_v6  ;;  %1133 = vmatprep.mubr.msk.f32.mxu1 %vm1167_vm1, %v1168_v6 }
  0x63   :  { %1047 = vmatmul.mubr.msk.f32.gmra.mrb[44].mxu0 %vm78_vm4, %v39_v52  ;;  %1134 = vmatmul.mubr.msk.f32.gmra.mrb[44].mxu1 %vm78_vm4, %v68_v53 }
  0x64   :  { %1049 = vmatprep.mubr.msk.f32.mxu0 %vm1167_vm1, %v1168_v6  ;;  %1136 = vmatprep.mubr.msk.f32.mxu1 %vm1167_vm1, %v1168_v6 }
  0x67   :  { %1050 = vmatmul.mubr.msk.f32.gmra.mrb[46].mxu0 %vm78_vm4, %v40_v54  ;;  %1137 = vmatmul.mubr.msk.f32.gmra.mrb[46].mxu1 %vm78_vm4, %v69_v55 }
  0x68   :  { %1052 = vmatprep.mubr.msk.f32.mxu0 %vm1167_vm1, %v1168_v6  ;;  %1139 = vmatprep.mubr.msk.f32.mxu1 %vm1167_vm1, %v1168_v6 }
  0x6b   :  { %1053 = vmatmul.mubr.msk.f32.gmra.mrb[48].mxu0 %vm78_vm4, %v41_v56  ;;  %1140 = vmatmul.mubr.msk.f32.gmra.mrb[48].mxu1 %vm78_vm4, %v70_v57 }
  0x6c   :  { %1055 = vmatprep.mubr.msk.f32.mxu0 %vm1167_vm1, %v1168_v6  ;;  %1142 = vmatprep.mubr.msk.f32.mxu1 %vm1167_vm1, %v1168_v6 }
  0x6f   :  { %1056 = vmatmul.mubr.msk.f32.gmra.mrb[50].mxu0 %vm78_vm4, %v42_v58  ;;  %1143 = vmatmul.mubr.msk.f32.gmra.mrb[50].mxu1 %vm78_vm4, %v71_v59 }
  0x70   :  { %1058 = vmatprep.mubr.msk.f32.mxu0 %vm1167_vm1, %v1168_v6  ;;  %1145 = vmatprep.mubr.msk.f32.mxu1 %vm1167_vm1, %v1168_v6 }
  0x73   :  { %1059 = vmatmul.mubr.msk.f32.gmra.mrb[52].mxu0 %vm78_vm4, %v43_v60  ;;  %1146 = vmatmul.mubr.msk.f32.gmra.mrb[52].mxu1 %vm78_vm4, %v72_v61 }
  0x74   :  { %1061 = vmatprep.mubr.msk.f32.mxu0 %vm1167_vm1, %v1168_v6  ;;  %1148 = vmatprep.mubr.msk.f32.mxu1 %vm1167_vm1, %v1168_v6 }
  0x77   :  { %1062 = vmatmul.mubr.msk.f32.gmra.mrb[54].mxu0 %vm78_vm4, %v44_v62  ;;  %1149 = vmatmul.mubr.msk.f32.gmra.mrb[54].mxu1 %vm78_vm4, %v73_v63 }
  0x78   :  { %1064 = vmatprep.mubr.msk.f32.mxu0 %vm1167_vm1, %v1168_v6 }
  0x7b   :  { %1065 = vmatmul.mubr.msk.f32.gmra.mrb[56].mxu0 %vm78_vm4, %v45_v0 }
  0xde   :  { %v320_v2 = vpop.f32.mrb[0].mxu0  ;;  %v465_v4 = vpop.f32.mrb[0].mxu1 }
  0xdf   :  { %v611_v5 = vmul.f32 %v1552_v1, %v320_v2  ;;  %v982_v6 = vpop.f32.mrb[1].mxu0  ;;  %v640_v7 = vmul.f32 %v1552_v1, %v465_v4  ;;  %v1069_v8 = vpop.f32.mrb[1].mxu1 }
  0xe1   :  { %v675_v9 = vadd.f32 %v1557_v3, %v611_v5  ;;  %v704_v10 = vadd.f32 %v1557_v3, %v640_v7 }
  0xe2   :  { %v325_v11 = vpop.f32.mrb[2].mxu0  ;;  %v470_v12 = vpop.f32.mrb[2].mxu1 }
  0xe3   :  { %v732_v13 = vmax.f32 %v675_v9, 0.0  ;;  %v761_v14 = vmax.f32 %v704_v10, 0.0  ;;  %v612_v15 = vmul.f32 %v1552_v1, %v325_v11  ;;  %v985_v16 = vpop.f32.mrb[3].mxu0  ;;  %v641_v17 = vmul.f32 %v1552_v1, %v470_v12  ;;  %v1072_v18 = vpop.f32.mrb[3].mxu1 }
  0xe5   :  { %790 = vst.msk [vmem:[%s1905_s4] sm:$0xff] %vm789_vm5, %v732_v13  ;;  %819 = vst.msk [vmem:[%s1905_s4 + $0xe8] sm:$0xff] %vm789_vm5, %v761_v14  ;;  %v676_v19 = vadd.f32 %v1557_v3, %v612_v15  ;;  %v705_v20 = vadd.f32 %v1557_v3, %v641_v17 }
  0xe6   :  { %v330_v21 = vpop.f32.mrb[4].mxu0  ;;  %v475_v22 = vpop.f32.mrb[4].mxu1 }
  0xe7   :  { %v733_v23 = vmax.f32 %v676_v19, 0.0  ;;  %v762_v24 = vmax.f32 %v705_v20, 0.0  ;;  %v613_v25 = vmul.f32 %v1552_v1, %v330_v21  ;;  %v988_v26 = vpop.f32.mrb[5].mxu0  ;;  %v642_v27 = vmul.f32 %v1552_v1, %v475_v22  ;;  %v1075_v28 = vpop.f32.mrb[5].mxu1 }
  0xe9   :  { %791 = vst.msk [vmem:[%s1905_s4 + $0x8] sm:$0xff] %vm789_vm5, %v733_v23  ;;  %820 = vst.msk [vmem:[%s1905_s4 + $0xf0] sm:$0xff] %vm789_vm5, %v762_v24  ;;  %v677_v29 = vadd.f32 %v1557_v3, %v613_v25  ;;  %v706_v30 = vadd.f32 %v1557_v3, %v642_v27 }
  0xea   :  { %v335_v31 = vpop.f32.mrb[6].mxu0  ;;  %v480_v32 = vpop.f32.mrb[6].mxu1 }
  0xeb   :  { %v734_v33 = vmax.f32 %v677_v29, 0.0  ;;  %v763_v34 = vmax.f32 %v706_v30, 0.0  ;;  %v614_v35 = vmul.f32 %v1552_v1, %v335_v31  ;;  %v991_v36 = vpop.f32.mrb[7].mxu0  ;;  %v643_v37 = vmul.f32 %v1552_v1, %v480_v32  ;;  %v1078_v38 = vpop.f32.mrb[7].mxu1 }
  0xed   :  { %792 = vst.msk [vmem:[%s1905_s4 + $0x10] sm:$0xff] %vm789_vm5, %v734_v33  ;;  %821 = vst.msk [vmem:[%s1905_s4 + $0xf8] sm:$0xff] %vm789_vm5, %v763_v34  ;;  %v678_v39 = vadd.f32 %v1557_v3, %v614_v35  ;;  %v707_v40 = vadd.f32 %v1557_v3, %v643_v37 }
  0xee   :  { %v340_v41 = vpop.f32.mrb[8].mxu0  ;;  %v485_v42 = vpop.f32.mrb[8].mxu1 }
  0xef   :  { %v735_v43 = vmax.f32 %v678_v39, 0.0  ;;  %v764_v44 = vmax.f32 %v707_v40, 0.0  ;;  %v615_v45 = vmul.f32 %v1552_v1, %v340_v41  ;;  %v994_v46 = vpop.f32.mrb[9].mxu0  ;;  %v644_v47 = vmul.f32 %v1552_v1, %v485_v42  ;;  %v1081_v48 = vpop.f32.mrb[9].mxu1 }
  0xf1   :  { %793 = vst.msk [vmem:[%s1905_s4 + $0x18] sm:$0xff] %vm789_vm5, %v735_v43  ;;  %822 = vst.msk [vmem:[%s1905_s4 + $0x100] sm:$0xff] %vm789_vm5, %v764_v44  ;;  %v679_v49 = vadd.f32 %v1557_v3, %v615_v45  ;;  %v708_v50 = vadd.f32 %v1557_v3, %v644_v47 }
  0xf2   :  { %v345_v51 = vpop.f32.mrb[10].mxu0  ;;  %v490_v52 = vpop.f32.mrb[10].mxu1 }
  0xf3   :  { %v736_v53 = vmax.f32 %v679_v49, 0.0  ;;  %v765_v54 = vmax.f32 %v708_v50, 0.0  ;;  %v616_v55 = vmul.f32 %v1552_v1, %v345_v51  ;;  %v997_v56 = vpop.f32.mrb[11].mxu0  ;;  %v645_v57 = vmul.f32 %v1552_v1, %v490_v52  ;;  %v1084_v58 = vpop.f32.mrb[11].mxu1 }
  0xf5   :  { %794 = vst.msk [vmem:[%s1905_s4 + $0x20] sm:$0xff] %vm789_vm5, %v736_v53  ;;  %823 = vst.msk [vmem:[%s1905_s4 + $0x108] sm:$0xff] %vm789_vm5, %v765_v54  ;;  %v680_v59 = vadd.f32 %v1557_v3, %v616_v55  ;;  %v709_v60 = vadd.f32 %v1557_v3, %v645_v57 }
  0xf6   :  { %v350_v61 = vpop.f32.mrb[12].mxu0  ;;  %v495_v62 = vpop.f32.mrb[12].mxu1 }
  0xf7   :  { %v737_v63 = vmax.f32 %v680_v59, 0.0  ;;  %v766_v0 = vmax.f32 %v709_v60, 0.0  ;;  %v617_v2 = vmul.f32 %v1552_v1, %v350_v61  ;;  %v1000_v4 = vpop.f32.mrb[13].mxu0  ;;  %v646_v5 = vmul.f32 %v1552_v1, %v495_v62  ;;  %v1087_v6 = vpop.f32.mrb[13].mxu1 }
  0xf9   :  { %795 = vst.msk [vmem:[%s1905_s4 + $0x28] sm:$0xff] %vm789_vm5, %v737_v63  ;;  %824 = vst.msk [vmem:[%s1905_s4 + $0x110] sm:$0xff] %vm789_vm5, %v766_v0  ;;  %v681_v7 = vadd.f32 %v1557_v3, %v617_v2  ;;  %v710_v8 = vadd.f32 %v1557_v3, %v646_v5 }
  0xfa   :  { %v355_v9 = vpop.f32.mrb[14].mxu0  ;;  %v500_v10 = vpop.f32.mrb[14].mxu1 }
  0xfb   :  { %v738_v11 = vmax.f32 %v681_v7, 0.0  ;;  %v767_v12 = vmax.f32 %v710_v8, 0.0  ;;  %v618_v13 = vmul.f32 %v1552_v1, %v355_v9  ;;  %v1003_v14 = vpop.f32.mrb[15].mxu0  ;;  %v647_v15 = vmul.f32 %v1552_v1, %v500_v10  ;;  %v1090_v16 = vpop.f32.mrb[15].mxu1 }
  0xfd   :  { %796 = vst.msk [vmem:[%s1905_s4 + $0x30] sm:$0xff] %vm789_vm5, %v738_v11  ;;  %825 = vst.msk [vmem:[%s1905_s4 + $0x118] sm:$0xff] %vm789_vm5, %v767_v12  ;;  %v682_v17 = vadd.f32 %v1557_v3, %v618_v13  ;;  %v711_v18 = vadd.f32 %v1557_v3, %v647_v15 }
  0xfe   :  { %v360_v19 = vpop.f32.mrb[16].mxu0  ;;  %v505_v20 = vpop.f32.mrb[16].mxu1 }
  0xff   :  { %v739_v21 = vmax.f32 %v682_v17, 0.0  ;;  %v768_v22 = vmax.f32 %v711_v18, 0.0  ;;  %v619_v23 = vmul.f32 %v1552_v1, %v360_v19  ;;  %v1006_v24 = vpop.f32.mrb[17].mxu0  ;;  %v648_v25 = vmul.f32 %v1552_v1, %v505_v20  ;;  %v1093_v26 = vpop.f32.mrb[17].mxu1 }
 0x101   :  { %797 = vst.msk [vmem:[%s1905_s4 + $0x38] sm:$0xff] %vm789_vm5, %v739_v21  ;;  %826 = vst.msk [vmem:[%s1905_s4 + $0x120] sm:$0xff] %vm789_vm5, %v768_v22  ;;  %v683_v27 = vadd.f32 %v1557_v3, %v619_v23  ;;  %v712_v28 = vadd.f32 %v1557_v3, %v648_v25 }
 0x102   :  { %v365_v29 = vpop.f32.mrb[18].mxu0  ;;  %v510_v30 = vpop.f32.mrb[18].mxu1 }
 0x103   :  { %v740_v31 = vmax.f32 %v683_v27, 0.0  ;;  %v769_v32 = vmax.f32 %v712_v28, 0.0  ;;  %v620_v33 = vmul.f32 %v1552_v1, %v365_v29  ;;  %v1009_v34 = vpop.f32.mrb[19].mxu0  ;;  %v649_v35 = vmul.f32 %v1552_v1, %v510_v30  ;;  %v1096_v36 = vpop.f32.mrb[19].mxu1 }
 0x105   :  { %798 = vst.msk [vmem:[%s1905_s4 + $0x40] sm:$0xff] %vm789_vm5, %v740_v31  ;;  %827 = vst.msk [vmem:[%s1905_s4 + $0x128] sm:$0xff] %vm789_vm5, %v769_v32  ;;  %v684_v37 = vadd.f32 %v1557_v3, %v620_v33  ;;  %v713_v38 = vadd.f32 %v1557_v3, %v649_v35 }
 0x106   :  { %v370_v39 = vpop.f32.mrb[20].mxu0  ;;  %v515_v40 = vpop.f32.mrb[20].mxu1 }
 0x107   :  { %v741_v41 = vmax.f32 %v684_v37, 0.0  ;;  %v770_v42 = vmax.f32 %v713_v38, 0.0  ;;  %v621_v43 = vmul.f32 %v1552_v1, %v370_v39  ;;  %v1012_v44 = vpop.f32.mrb[21].mxu0  ;;  %v650_v45 = vmul.f32 %v1552_v1, %v515_v40  ;;  %v1099_v46 = vpop.f32.mrb[21].mxu1 }
 0x109   :  { %799 = vst.msk [vmem:[%s1905_s4 + $0x48] sm:$0xff] %vm789_vm5, %v741_v41  ;;  %828 = vst.msk [vmem:[%s1905_s4 + $0x130] sm:$0xff] %vm789_vm5, %v770_v42  ;;  %v685_v47 = vadd.f32 %v1557_v3, %v621_v43  ;;  %v714_v48 = vadd.f32 %v1557_v3, %v650_v45 }
 0x10a   :  { %v375_v49 = vpop.f32.mrb[22].mxu0  ;;  %v520_v50 = vpop.f32.mrb[22].mxu1 }
 0x10b   :  { %v742_v51 = vmax.f32 %v685_v47, 0.0  ;;  %v771_v52 = vmax.f32 %v714_v48, 0.0  ;;  %v622_v53 = vmul.f32 %v1552_v1, %v375_v49  ;;  %v1015_v54 = vpop.f32.mrb[23].mxu0  ;;  %v651_v55 = vmul.f32 %v1552_v1, %v520_v50  ;;  %v1102_v56 = vpop.f32.mrb[23].mxu1 }
 0x10d   :  { %800 = vst.msk [vmem:[%s1905_s4 + $0x50] sm:$0xff] %vm789_vm5, %v742_v51  ;;  %829 = vst.msk [vmem:[%s1905_s4 + $0x138] sm:$0xff] %vm789_vm5, %v771_v52  ;;  %v686_v57 = vadd.f32 %v1557_v3, %v622_v53  ;;  %v715_v58 = vadd.f32 %v1557_v3, %v651_v55 }
 0x10e   :  { %v380_v59 = vpop.f32.mrb[24].mxu0  ;;  %v525_v60 = vpop.f32.mrb[24].mxu1 }
 0x10f   :  { %v743_v61 = vmax.f32 %v686_v57, 0.0  ;;  %v772_v62 = vmax.f32 %v715_v58, 0.0  ;;  %v623_v63 = vmul.f32 %v1552_v1, %v380_v59  ;;  %v1018_v0 = vpop.f32.mrb[25].mxu0  ;;  %v652_v2 = vmul.f32 %v1552_v1, %v525_v60  ;;  %v1105_v4 = vpop.f32.mrb[25].mxu1 }
 0x111   :  { %801 = vst.msk [vmem:[%s1905_s4 + $0x58] sm:$0xff] %vm789_vm5, %v743_v61  ;;  %830 = vst.msk [vmem:[%s1905_s4 + $0x140] sm:$0xff] %vm789_vm5, %v772_v62  ;;  %v687_v5 = vadd.f32 %v1557_v3, %v623_v63  ;;  %v716_v6 = vadd.f32 %v1557_v3, %v652_v2 }
 0x112   :  { %v385_v7 = vpop.f32.mrb[26].mxu0  ;;  %v530_v8 = vpop.f32.mrb[26].mxu1 }
 0x113   :  { %v744_v9 = vmax.f32 %v687_v5, 0.0  ;;  %v773_v10 = vmax.f32 %v716_v6, 0.0  ;;  %v624_v11 = vmul.f32 %v1552_v1, %v385_v7  ;;  %v1021_v12 = vpop.f32.mrb[27].mxu0  ;;  %v653_v13 = vmul.f32 %v1552_v1, %v530_v8  ;;  %v1108_v14 = vpop.f32.mrb[27].mxu1 }
 0x115   :  { %802 = vst.msk [vmem:[%s1905_s4 + $0x60] sm:$0xff] %vm789_vm5, %v744_v9  ;;  %831 = vst.msk [vmem:[%s1905_s4 + $0x148] sm:$0xff] %vm789_vm5, %v773_v10  ;;  %v688_v15 = vadd.f32 %v1557_v3, %v624_v11  ;;  %v717_v16 = vadd.f32 %v1557_v3, %v653_v13 }
 0x116   :  { %v390_v17 = vpop.f32.mrb[28].mxu0  ;;  %v535_v18 = vpop.f32.mrb[28].mxu1 }
 0x117   :  { %v745_v19 = vmax.f32 %v688_v15, 0.0  ;;  %v774_v20 = vmax.f32 %v717_v16, 0.0  ;;  %v625_v21 = vmul.f32 %v1552_v1, %v390_v17  ;;  %v1024_v22 = vpop.f32.mrb[29].mxu0  ;;  %v654_v23 = vmul.f32 %v1552_v1, %v535_v18  ;;  %v1111_v24 = vpop.f32.mrb[29].mxu1 }
 0x119   :  { %803 = vst.msk [vmem:[%s1905_s4 + $0x68] sm:$0xff] %vm789_vm5, %v745_v19  ;;  %832 = vst.msk [vmem:[%s1905_s4 + $0x150] sm:$0xff] %vm789_vm5, %v774_v20  ;;  %v689_v25 = vadd.f32 %v1557_v3, %v625_v21  ;;  %v718_v26 = vadd.f32 %v1557_v3, %v654_v23 }
 0x11a   :  { %v395_v27 = vpop.f32.mrb[30].mxu0  ;;  %v540_v28 = vpop.f32.mrb[30].mxu1 }
 0x11b   :  { %v746_v29 = vmax.f32 %v689_v25, 0.0  ;;  %v775_v30 = vmax.f32 %v718_v26, 0.0  ;;  %v626_v31 = vmul.f32 %v1552_v1, %v395_v27  ;;  %v1027_v32 = vpop.f32.mrb[31].mxu0  ;;  %v655_v33 = vmul.f32 %v1552_v1, %v540_v28  ;;  %v1114_v34 = vpop.f32.mrb[31].mxu1 }
 0x11d   :  { %804 = vst.msk [vmem:[%s1905_s4 + $0x70] sm:$0xff] %vm789_vm5, %v746_v29  ;;  %833 = vst.msk [vmem:[%s1905_s4 + $0x158] sm:$0xff] %vm789_vm5, %v775_v30  ;;  %v690_v35 = vadd.f32 %v1557_v3, %v626_v31  ;;  %v719_v36 = vadd.f32 %v1557_v3, %v655_v33 }
 0x11e   :  { %v400_v37 = vpop.f32.mrb[32].mxu0  ;;  %v545_v38 = vpop.f32.mrb[32].mxu1 }
 0x11f   :  { %v747_v39 = vmax.f32 %v690_v35, 0.0  ;;  %v776_v40 = vmax.f32 %v719_v36, 0.0  ;;  %v627_v41 = vmul.f32 %v1552_v1, %v400_v37  ;;  %v1030_v42 = vpop.f32.mrb[33].mxu0  ;;  %v656_v43 = vmul.f32 %v1552_v1, %v545_v38  ;;  %v1117_v44 = vpop.f32.mrb[33].mxu1 }
 0x121   :  { %805 = vst.msk [vmem:[%s1905_s4 + $0x78] sm:$0xff] %vm789_vm5, %v747_v39  ;;  %834 = vst.msk [vmem:[%s1905_s4 + $0x160] sm:$0xff] %vm789_vm5, %v776_v40  ;;  %v691_v45 = vadd.f32 %v1557_v3, %v627_v41  ;;  %v720_v46 = vadd.f32 %v1557_v3, %v656_v43 }
 0x122   :  { %v405_v47 = vpop.f32.mrb[34].mxu0  ;;  %v550_v48 = vpop.f32.mrb[34].mxu1 }
 0x123   :  { %v748_v49 = vmax.f32 %v691_v45, 0.0  ;;  %v777_v50 = vmax.f32 %v720_v46, 0.0  ;;  %v628_v51 = vmul.f32 %v1552_v1, %v405_v47  ;;  %v1033_v52 = vpop.f32.mrb[35].mxu0  ;;  %v657_v53 = vmul.f32 %v1552_v1, %v550_v48  ;;  %v1120_v54 = vpop.f32.mrb[35].mxu1 }
 0x125   :  { %806 = vst.msk [vmem:[%s1905_s4 + $0x80] sm:$0xff] %vm789_vm5, %v748_v49  ;;  %835 = vst.msk [vmem:[%s1905_s4 + $0x168] sm:$0xff] %vm789_vm5, %v777_v50  ;;  %v692_v55 = vadd.f32 %v1557_v3, %v628_v51  ;;  %v721_v56 = vadd.f32 %v1557_v3, %v657_v53 }
 0x126   :  { %v410_v57 = vpop.f32.mrb[36].mxu0  ;;  %v555_v58 = vpop.f32.mrb[36].mxu1 }
 0x127   :  { %v749_v59 = vmax.f32 %v692_v55, 0.0  ;;  %v778_v60 = vmax.f32 %v721_v56, 0.0  ;;  %v629_v61 = vmul.f32 %v1552_v1, %v410_v57  ;;  %v1036_v62 = vpop.f32.mrb[37].mxu0  ;;  %v658_v63 = vmul.f32 %v1552_v1, %v555_v58  ;;  %v1123_v0 = vpop.f32.mrb[37].mxu1 }
 0x129   :  { %807 = vst.msk [vmem:[%s1905_s4 + $0x88] sm:$0xff] %vm789_vm5, %v749_v59  ;;  %836 = vst.msk [vmem:[%s1905_s4 + $0x170] sm:$0xff] %vm789_vm5, %v778_v60  ;;  %v693_v2 = vadd.f32 %v1557_v3, %v629_v61  ;;  %v722_v4 = vadd.f32 %v1557_v3, %v658_v63 }
 0x12a   :  { %v415_v5 = vpop.f32.mrb[38].mxu0  ;;  %v560_v6 = vpop.f32.mrb[38].mxu1 }
 0x12b   :  { %v750_v7 = vmax.f32 %v693_v2, 0.0  ;;  %v779_v8 = vmax.f32 %v722_v4, 0.0  ;;  %v630_v9 = vmul.f32 %v1552_v1, %v415_v5  ;;  %v1039_v10 = vpop.f32.mrb[39].mxu0  ;;  %v659_v11 = vmul.f32 %v1552_v1, %v560_v6  ;;  %v1126_v12 = vpop.f32.mrb[39].mxu1 }
 0x12d   :  { %808 = vst.msk [vmem:[%s1905_s4 + $0x90] sm:$0xff] %vm789_vm5, %v750_v7  ;;  %837 = vst.msk [vmem:[%s1905_s4 + $0x178] sm:$0xff] %vm789_vm5, %v779_v8  ;;  %v694_v13 = vadd.f32 %v1557_v3, %v630_v9  ;;  %v723_v14 = vadd.f32 %v1557_v3, %v659_v11 }
 0x12e   :  { %v420_v15 = vpop.f32.mrb[40].mxu0  ;;  %v565_v16 = vpop.f32.mrb[40].mxu1 }
 0x12f   :  { %v751_v17 = vmax.f32 %v694_v13, 0.0  ;;  %v780_v18 = vmax.f32 %v723_v14, 0.0  ;;  %v631_v19 = vmul.f32 %v1552_v1, %v420_v15  ;;  %v1042_v20 = vpop.f32.mrb[41].mxu0  ;;  %v660_v21 = vmul.f32 %v1552_v1, %v565_v16  ;;  %v1129_v22 = vpop.f32.mrb[41].mxu1 }
 0x131   :  { %809 = vst.msk [vmem:[%s1905_s4 + $0x98] sm:$0xff] %vm789_vm5, %v751_v17  ;;  %838 = vst.msk [vmem:[%s1905_s4 + $0x180] sm:$0xff] %vm789_vm5, %v780_v18  ;;  %v695_v23 = vadd.f32 %v1557_v3, %v631_v19  ;;  %v724_v24 = vadd.f32 %v1557_v3, %v660_v21 }
 0x132   :  { %v425_v25 = vpop.f32.mrb[42].mxu0  ;;  %v570_v26 = vpop.f32.mrb[42].mxu1 }
 0x133   :  { %v752_v27 = vmax.f32 %v695_v23, 0.0  ;;  %v781_v28 = vmax.f32 %v724_v24, 0.0  ;;  %v632_v29 = vmul.f32 %v1552_v1, %v425_v25  ;;  %v1045_v30 = vpop.f32.mrb[43].mxu0  ;;  %v661_v31 = vmul.f32 %v1552_v1, %v570_v26  ;;  %v1132_v32 = vpop.f32.mrb[43].mxu1 }
 0x135   :  { %810 = vst.msk [vmem:[%s1905_s4 + $0xa0] sm:$0xff] %vm789_vm5, %v752_v27  ;;  %839 = vst.msk [vmem:[%s1905_s4 + $0x188] sm:$0xff] %vm789_vm5, %v781_v28  ;;  %v696_v33 = vadd.f32 %v1557_v3, %v632_v29  ;;  %v725_v34 = vadd.f32 %v1557_v3, %v661_v31 }
 0x136   :  { %v430_v35 = vpop.f32.mrb[44].mxu0  ;;  %v575_v36 = vpop.f32.mrb[44].mxu1 }
 0x137   :  { %v753_v37 = vmax.f32 %v696_v33, 0.0  ;;  %v782_v38 = vmax.f32 %v725_v34, 0.0  ;;  %v633_v39 = vmul.f32 %v1552_v1, %v430_v35  ;;  %v1048_v40 = vpop.f32.mrb[45].mxu0  ;;  %v662_v41 = vmul.f32 %v1552_v1, %v575_v36  ;;  %v1135_v42 = vpop.f32.mrb[45].mxu1 }
 0x139   :  { %811 = vst.msk [vmem:[%s1905_s4 + $0xa8] sm:$0xff] %vm789_vm5, %v753_v37  ;;  %840 = vst.msk [vmem:[%s1905_s4 + $0x190] sm:$0xff] %vm789_vm5, %v782_v38  ;;  %v697_v43 = vadd.f32 %v1557_v3, %v633_v39  ;;  %v726_v44 = vadd.f32 %v1557_v3, %v662_v41 }
 0x13a   :  { %v435_v45 = vpop.f32.mrb[46].mxu0  ;;  %v580_v46 = vpop.f32.mrb[46].mxu1 }
 0x13b   :  { %v754_v47 = vmax.f32 %v697_v43, 0.0  ;;  %v783_v48 = vmax.f32 %v726_v44, 0.0  ;;  %v634_v49 = vmul.f32 %v1552_v1, %v435_v45  ;;  %v1051_v50 = vpop.f32.mrb[47].mxu0  ;;  %v663_v51 = vmul.f32 %v1552_v1, %v580_v46  ;;  %v1138_v52 = vpop.f32.mrb[47].mxu1 }
 0x13d   :  { %812 = vst.msk [vmem:[%s1905_s4 + $0xb0] sm:$0xff] %vm789_vm5, %v754_v47  ;;  %841 = vst.msk [vmem:[%s1905_s4 + $0x198] sm:$0xff] %vm789_vm5, %v783_v48  ;;  %v698_v53 = vadd.f32 %v1557_v3, %v634_v49  ;;  %v727_v54 = vadd.f32 %v1557_v3, %v663_v51 }
 0x13e   :  { %v440_v55 = vpop.f32.mrb[48].mxu0  ;;  %v585_v56 = vpop.f32.mrb[48].mxu1 }
 0x13f   :  { %v755_v57 = vmax.f32 %v698_v53, 0.0  ;;  %v784_v58 = vmax.f32 %v727_v54, 0.0  ;;  %v635_v59 = vmul.f32 %v1552_v1, %v440_v55  ;;  %v1054_v60 = vpop.f32.mrb[49].mxu0  ;;  %v664_v61 = vmul.f32 %v1552_v1, %v585_v56  ;;  %v1141_v62 = vpop.f32.mrb[49].mxu1 }
 0x141   :  { %813 = vst.msk [vmem:[%s1905_s4 + $0xb8] sm:$0xff] %vm789_vm5, %v755_v57  ;;  %842 = vst.msk [vmem:[%s1905_s4 + $0x1a0] sm:$0xff] %vm789_vm5, %v784_v58  ;;  %v699_v63 = vadd.f32 %v1557_v3, %v635_v59  ;;  %v728_v0 = vadd.f32 %v1557_v3, %v664_v61 }
 0x142   :  { %v445_v2 = vpop.f32.mrb[50].mxu0  ;;  %v590_v4 = vpop.f32.mrb[50].mxu1 }
 0x143   :  { %v756_v5 = vmax.f32 %v699_v63, 0.0  ;;  %v785_v6 = vmax.f32 %v728_v0, 0.0  ;;  %v636_v7 = vmul.f32 %v1552_v1, %v445_v2  ;;  %v1057_v8 = vpop.f32.mrb[51].mxu0  ;;  %v665_v9 = vmul.f32 %v1552_v1, %v590_v4  ;;  %v1144_v10 = vpop.f32.mrb[51].mxu1 }
 0x145   :  { %814 = vst.msk [vmem:[%s1905_s4 + $0xc0] sm:$0xff] %vm789_vm5, %v756_v5  ;;  %843 = vst.msk [vmem:[%s1905_s4 + $0x1a8] sm:$0xff] %vm789_vm5, %v785_v6  ;;  %v700_v11 = vadd.f32 %v1557_v3, %v636_v7  ;;  %v729_v12 = vadd.f32 %v1557_v3, %v665_v9 }
 0x146   :  { %v450_v13 = vpop.f32.mrb[52].mxu0  ;;  %v595_v14 = vpop.f32.mrb[52].mxu1 }
 0x147   :  { %v757_v15 = vmax.f32 %v700_v11, 0.0  ;;  %v786_v16 = vmax.f32 %v729_v12, 0.0  ;;  %v637_v17 = vmul.f32 %v1552_v1, %v450_v13  ;;  %v1060_v18 = vpop.f32.mrb[53].mxu0  ;;  %v666_v19 = vmul.f32 %v1552_v1, %v595_v14  ;;  %v1147_v20 = vpop.f32.mrb[53].mxu1 }
 0x149   :  { %815 = vst.msk [vmem:[%s1905_s4 + $0xc8] sm:$0xff] %vm789_vm5, %v757_v15  ;;  %844 = vst.msk [vmem:[%s1905_s4 + $0x1b0] sm:$0xff] %vm789_vm5, %v786_v16  ;;  %v701_v21 = vadd.f32 %v1557_v3, %v637_v17  ;;  %v730_v22 = vadd.f32 %v1557_v3, %v666_v19 }
 0x14a   :  { %v455_v23 = vpop.f32.mrb[54].mxu0  ;;  %v600_v24 = vpop.f32.mrb[54].mxu1 }
 0x14b   :  { %v758_v25 = vmax.f32 %v701_v21, 0.0  ;;  %v787_v26 = vmax.f32 %v730_v22, 0.0  ;;  %v638_v27 = vmul.f32 %v1552_v1, %v455_v23  ;;  %v1063_v28 = vpop.f32.mrb[55].mxu0  ;;  %v667_v29 = vmul.f32 %v1552_v1, %v600_v24  ;;  %v1150_v30 = vpop.f32.mrb[55].mxu1 }
 0x14d   :  { %816 = vst.msk [vmem:[%s1905_s4 + $0xd0] sm:$0xff] %vm789_vm5, %v758_v25  ;;  %845 = vst.msk [vmem:[%s1905_s4 + $0x1b8] sm:$0xff] %vm789_vm5, %v787_v26  ;;  %v702_v31 = vadd.f32 %v1557_v3, %v638_v27  ;;  %v731_v32 = vadd.f32 %v1557_v3, %v667_v29 }
 0x14e   :  { %v460_v33 = vpop.f32.mrb[56].mxu0 }
 0x14f   :  { %v759_v34 = vmax.f32 %v702_v31, 0.0  ;;  %v788_v35 = vmax.f32 %v731_v32, 0.0  ;;  %v639_v36 = vmul.f32 %v1552_v1, %v460_v33  ;;  %v1066_v37 = vpop.f32.mrb[57].mxu0 }
 0x151   :  { %817 = vst.msk [vmem:[%s1905_s4 + $0xd8] sm:$0xff] %vm789_vm5, %v759_v34  ;;  %846 = vst.msk [vmem:[%s1905_s4 + $0x1c0] sm:$0xff] %vm789_vm5, %v788_v35  ;;  %v703_v38 = vadd.f32 %v1557_v3, %v639_v36 }
 0x153   :  { %v760_v39 = vmax.f32 %v703_v38, 0.0 }
 0x155   :  { %818 = vst.msk [vmem:[%s1905_s4 + $0xe0] sm:$0xff] %vm789_vm5, %v760_v39 }

// kernel: inception_v3_forward.9
= control target key start
LH: loop header
LB: loop body
LE: loop exit
PB: predicated region body
PF: predicated region fallthrough
CT: control target
= control target key end

     0   :  { %s483_s6 = smov 0   ;;  %s584_s0 = inlined_call_operand.vmem [shape: f32[2,13,16,64], index: 0, kind: input, shape index: {}]   ;;  %s585_s1 = inlined_call_operand.vmem [shape: f32[2,6,14,64], index: 1, kind: output, shape index: {}]  }
   0x1 LB: > { %s446_s7 = sadd.s32 4294967295, %s471_s6   ;;  %p450_p0 = scmp.ge.s32.totalorder %s471_s6, 1  ;;  %s471_s6 = sphi %s483_s6, %s11_s6  }
   0x2   : > { %p87_p1 = scmp.lt.s32.totalorder %s471_s6, 3 }
   0x4   : > { %p88_p2 = pnand %p450_p0, %p87_p1 }
   0x5   : > { %p107_p3 = scmp.lt.s32.totalorder (!%p88_p2), %s446_s7, 1  ;;  %vm169_vm0 = vcmask (!%p88_p2), 1046528   ;;  %vm261_vm1 = vcmask (!%p88_p2), 1045504   ;;  %vm377_vm2 = vcmask (!%p88_p2), 523264   ;;  %vm379_vm3 = vcmask (!%p88_p2), 521216  }
   0x6   : > { %91 = sbr.rel (%p88_p2) target bundleno = 62 (0x3e), region = 24 }
   0xd   : > { %s587_s7 = smov (!%p107_p3, %s446_s7), 1 }
   0xe   : > { %s455_s8 = smul.u32 208, %s587_s7 }
   0xf   : > { %s456_s12 = smul.u32 96, %s587_s7 }
  0x10   : > { %s497_s11 = scalar_lea.vmem %s584_s0, %s455_s8 }
  0x11   : > { %v117_v0 = vld [vmem:[%s497_s11] sm:$0xff]  ;;  %v118_v1 = vld [vmem:[%s497_s11 + $0x8] sm:$0xff]  ;;  %v119_v2 = vld [vmem:[%s497_s11 + $0x10] sm:$0xff]  ;;  %s520_s15 = scalar_lea.vmem %s585_s1, %s456_s12 }
  0x12   : > { %v120_v3 = vld [vmem:[%s497_s11 + $0x18] sm:$0xff]  ;;  %v121_v4 = vld [vmem:[%s497_s11 + $0x20] sm:$0xff]  ;;  %v122_v5 = vld [vmem:[%s497_s11 + $0x28] sm:$0xff]  ;;  %v170_v6 = vrot.slane %v117_v0, 1  ;;  %v171_v7 = vrot.slane %v118_v1, 1  ;;  %v173_v8 = vrot.slane %v119_v2, 1 }
  0x13   : > { %v174_v9 = vrot.slane %v120_v3, 1  ;;  %v176_v10 = vrot.slane %v121_v4, 1  ;;  %v177_v11 = vrot.slane %v122_v5, 1  ;;  %v262_v12 = vrot.slane %v117_v0, 2  ;;  %v123_v21 = vld [vmem:[%s497_s11 + $0x30] sm:$0xff]  ;;  %v124_v22 = vld [vmem:[%s497_s11 + $0x38] sm:$0xff] }
  0x14   : > { %v172_v13 = vsel %vm169_vm0, %v170_v6, %v171_v7  ;;  %v263_v14 = vrot.slane %v118_v1, 2  ;;  %v265_v15 = vrot.slane %v119_v2, 2  ;;  %v266_v16 = vrot.slane %v120_v3, 2  ;;  %v125_v27 = vld [vmem:[%s497_s11 + $0x40] sm:$0xff]  ;;  %v126_v34 = vld [vmem:[%s497_s11 + $0x48] sm:$0xff]  ;;  %v127_v49 = vld [vmem:[%s497_s11 + $0x50] sm:$0xff] }
  0x15   : > { %v175_v17 = vsel %vm169_vm0, %v173_v8, %v174_v9  ;;  %v178_v18 = vsel %vm169_vm0, %v176_v10, %v177_v11  ;;  %v235_v19 = vmax.f32 %v117_v0, %v172_v13  ;;  %v268_v20 = vrot.slane %v121_v4, 2  ;;  %v128_v54 = vld [vmem:[%s497_s11 + $0x58] sm:$0xff]  ;;  %v129_v59 = vld [vmem:[%s497_s11 + $0x60] sm:$0xff]  ;;  %v130_v60 = vld [vmem:[%s497_s11 + $0x68] sm:$0xff] }
  0x16   : > { %v237_v23 = vmax.f32 %v119_v2, %v175_v17  ;;  %v239_v24 = vmax.f32 %v121_v4, %v178_v18  ;;  %v264_v25 = vsel %vm261_vm1, %v262_v12, %v263_v14  ;;  %v267_v26 = vsel %vm261_vm1, %v265_v15, %v266_v16  ;;  %v131_v17 = vld [vmem:[%s497_s11 + $0x70] sm:$0xff]  ;;  %v132_v18 = vld [vmem:[%s497_s11 + $0x78] sm:$0xff] }
  0x17   : > { %v269_v28 = vrot.slane %v122_v5, 2  ;;  %v327_v29 = vmax.f32 %v235_v19, %v264_v25  ;;  %v236_v30 = vmax.f32 %v118_v1, %v171_v7  ;;  %v238_v31 = vmax.f32 %v120_v3, %v174_v9  ;;  %v133_v19 = vld [vmem:[%s497_s11 + $0x80] sm:$0xff] }
  0x18   : > { %v329_v32 = vmax.f32 %v237_v23, %v267_v26  ;;  %v240_v33 = vmax.f32 %v122_v5, %v177_v11  ;;  %v179_v35 = vrot.slane %v123_v21, 1  ;;  %v180_v36 = vrot.slane %v124_v22, 1 }
  0x19   : > { %v270_v37 = vsel %vm261_vm1, %v268_v20, %v269_v28  ;;  %v328_v38 = vmax.f32 %v236_v30, %v263_v14  ;;  %v330_v39 = vmax.f32 %v238_v31, %v266_v16  ;;  %v182_v40 = vrot.slane %v125_v27, 1 }
  0x1a   : > { %v331_v41 = vmax.f32 %v239_v24, %v270_v37  ;;  %v353_v42 = vmax.f32 %v327_v29, %v329_v32  ;;  %v332_v43 = vmax.f32 %v240_v33, %v269_v28  ;;  %v181_v44 = vsel %vm169_vm0, %v179_v35, %v180_v36  ;;  %v134_v24 = vld [vmem:[%s497_s11 + $0x88] sm:$0xff] }
  0x1b   : > { %v354_v45 = vmax.f32 %v328_v38, %v330_v39  ;;  %v183_v46 = vrot.slane %v126_v34, 1  ;;  %v241_v47 = vmax.f32 %v123_v21, %v181_v44  ;;  %v271_v48 = vrot.slane %v123_v21, 2 }
  0x1c   : > { %v365_v50 = vmax.f32 %v353_v42, %v331_v41  ;;  %v272_v51 = vrot.slane %v124_v22, 2  ;;  %v274_v52 = vrot.slane %v125_v27, 2  ;;  %v275_v53 = vrot.slane %v126_v34, 2 }
  0x1d   : > { %v366_v55 = vmax.f32 %v354_v45, %v332_v43  ;;  %v184_v56 = vsel %vm169_vm0, %v182_v40, %v183_v46  ;;  %v242_v57 = vmax.f32 %v124_v22, %v180_v36  ;;  %v244_v58 = vmax.f32 %v126_v34, %v183_v46  ;;  %v136_v46 = vld [vmem:[%s497_s11 + $0x98] sm:$0xff] }
  0x1e   : > { %378 = vst.msk [vmem:[%s520_s15] sm:$0xff] %vm377_vm2, %v365_v50  ;;  %v243_v61 = vmax.f32 %v125_v27, %v184_v56  ;;  %v273_v62 = vsel %vm261_vm1, %v271_v48, %v272_v51  ;;  %v276_v63 = vsel %vm261_vm1, %v274_v52, %v275_v53  ;;  %v185_v0 = vrot.slane %v127_v49, 1  ;;  %v138_v52 = vld [vmem:[%s497_s11 + $0xa8] sm:$0xff] }
  0x1f   : > { %380 = vst.msk [vmem:[%s520_s15 + $0x8] sm:$0x3f] %vm379_vm3, %v366_v55  ;;  %v333_v1 = vmax.f32 %v241_v47, %v273_v62  ;;  %v334_v2 = vmax.f32 %v242_v57, %v272_v51  ;;  %v336_v3 = vmax.f32 %v244_v58, %v275_v53  ;;  %v186_v4 = vrot.slane %v128_v54, 1  ;;  %v137_v47 = vld [vmem:[%s497_s11 + $0xa0] sm:$0xff] }
  0x20   : > { %v335_v5 = vmax.f32 %v243_v61, %v276_v63  ;;  %v188_v6 = vrot.slane %v129_v59, 1  ;;  %v189_v7 = vrot.slane %v130_v60, 1  ;;  %v277_v8 = vrot.slane %v127_v49, 2 }
  0x21   : > { %v355_v9 = vmax.f32 %v331_v41, %v333_v1  ;;  %v356_v10 = vmax.f32 %v332_v43, %v334_v2  ;;  %v187_v11 = vsel %vm169_vm0, %v185_v0, %v186_v4  ;;  %v278_v12 = vrot.slane %v128_v54, 2  ;;  %v135_v41 = vld [vmem:[%s497_s11 + $0x90] sm:$0xff] }
  0x22   : > { %v190_v13 = vsel %vm169_vm0, %v188_v6, %v189_v7  ;;  %v245_v14 = vmax.f32 %v127_v49, %v187_v11  ;;  %v280_v15 = vrot.slane %v129_v59, 2  ;;  %v281_v16 = vrot.slane %v130_v60, 2  ;;  %v141_v11 = vld [vmem:[%s497_s11 + $0xc0] sm:$0xff] }
  0x23   : > { %v367_v20 = vmax.f32 %v355_v9, %v335_v5  ;;  %v368_v21 = vmax.f32 %v356_v10, %v336_v3  ;;  %v247_v22 = vmax.f32 %v129_v59, %v190_v13  ;;  %v279_v23 = vsel %vm261_vm1, %v277_v8, %v278_v12  ;;  %v140_v10 = vld [vmem:[%s497_s11 + $0xb8] sm:$0xff] }
  0x24   : > { %v282_v25 = vsel %vm261_vm1, %v280_v15, %v281_v16  ;;  %v337_v26 = vmax.f32 %v245_v14, %v279_v23  ;;  %v246_v27 = vmax.f32 %v128_v54, %v186_v4  ;;  %v248_v28 = vmax.f32 %v130_v60, %v189_v7 }
  0x25   : > { %381 = vst.msk [vmem:[%s520_s15 + $0x10] sm:$0xff] %vm377_vm2, %v367_v20  ;;  %v339_v29 = vmax.f32 %v247_v22, %v282_v25  ;;  %v191_v30 = vrot.slane %v131_v17, 1  ;;  %v192_v31 = vrot.slane %v132_v18, 1  ;;  %v194_v32 = vrot.slane %v133_v19, 1 }
  0x26   : > { %382 = vst.msk [vmem:[%s520_s15 + $0x18] sm:$0x3f] %vm379_vm3, %v368_v21  ;;  %v357_v33 = vmax.f32 %v335_v5, %v337_v26  ;;  %v338_v34 = vmax.f32 %v246_v27, %v278_v12  ;;  %v340_v35 = vmax.f32 %v248_v28, %v281_v16  ;;  %v195_v36 = vrot.slane %v134_v24, 1  ;;  %v139_v5 = vld [vmem:[%s497_s11 + $0xb0] sm:$0xff]  ;;  %v142_v12 = vld [vmem:[%s497_s11 + $0xc8] sm:$0xff] }
  0x27   : > { %v193_v37 = vsel %vm169_vm0, %v191_v30, %v192_v31  ;;  %v283_v38 = vrot.slane %v131_v17, 2  ;;  %v284_v39 = vrot.slane %v132_v18, 2  ;;  %v286_v40 = vrot.slane %v133_v19, 2 }
  0x28   : > { %v369_v42 = vmax.f32 %v357_v33, %v339_v29  ;;  %v358_v43 = vmax.f32 %v336_v3, %v338_v34  ;;  %v196_v44 = vsel %vm169_vm0, %v194_v32, %v195_v36  ;;  %v249_v45 = vmax.f32 %v131_v17, %v193_v37 }
  0x29   : > { %v251_v48 = vmax.f32 %v133_v19, %v196_v44  ;;  %v285_v49 = vsel %vm261_vm1, %v283_v38, %v284_v39  ;;  %v287_v50 = vrot.slane %v134_v24, 2  ;;  %v250_v51 = vmax.f32 %v132_v18, %v192_v31 }
  0x2a   : > { %383 = vst.msk [vmem:[%s520_s15 + $0x20] sm:$0xff] %vm377_vm2, %v369_v42  ;;  %v370_v53 = vmax.f32 %v358_v43, %v340_v35  ;;  %v341_v54 = vmax.f32 %v249_v45, %v285_v49  ;;  %v252_v55 = vmax.f32 %v134_v24, %v195_v36  ;;  %v197_v56 = vrot.slane %v135_v41, 1 }
  0x2b   : > { %v288_v57 = vsel %vm261_vm1, %v286_v40, %v287_v50  ;;  %v342_v58 = vmax.f32 %v250_v51, %v284_v39  ;;  %v198_v59 = vrot.slane %v136_v46, 1  ;;  %v200_v60 = vrot.slane %v137_v47, 1 }
  0x2c   : > { %384 = vst.msk [vmem:[%s520_s15 + $0x28] sm:$0x3f] %vm379_vm3, %v370_v53  ;;  %v343_v61 = vmax.f32 %v251_v48, %v288_v57  ;;  %v359_v62 = vmax.f32 %v339_v29, %v341_v54  ;;  %v344_v63 = vmax.f32 %v252_v55, %v287_v50  ;;  %v201_v0 = vrot.slane %v138_v52, 1 }
  0x2d   : > { %v360_v1 = vmax.f32 %v340_v35, %v342_v58  ;;  %v199_v2 = vsel %vm169_vm0, %v197_v56, %v198_v59  ;;  %v289_v3 = vrot.slane %v135_v41, 2  ;;  %v290_v4 = vrot.slane %v136_v46, 2 }
  0x2e   : > { %v371_v6 = vmax.f32 %v359_v62, %v343_v61  ;;  %v202_v7 = vsel %vm169_vm0, %v200_v60, %v201_v0  ;;  %v253_v8 = vmax.f32 %v135_v41, %v199_v2  ;;  %v292_v9 = vrot.slane %v137_v47, 2 }
  0x2f   : > { %v372_v13 = vmax.f32 %v360_v1, %v344_v63  ;;  %v255_v14 = vmax.f32 %v137_v47, %v202_v7  ;;  %v291_v15 = vsel %vm261_vm1, %v289_v3, %v290_v4  ;;  %v293_v16 = vrot.slane %v138_v52, 2 }
  0x30   : > { %385 = vst.msk [vmem:[%s520_s15 + $0x30] sm:$0xff] %vm377_vm2, %v371_v6  ;;  %v345_v17 = vmax.f32 %v253_v8, %v291_v15  ;;  %v254_v18 = vmax.f32 %v136_v46, %v198_v59  ;;  %v256_v19 = vmax.f32 %v138_v52, %v201_v0  ;;  %v203_v20 = vrot.slane %v139_v5, 1 }
  0x31   : > { %386 = vst.msk [vmem:[%s520_s15 + $0x38] sm:$0x3f] %vm379_vm3, %v372_v13  ;;  %v294_v21 = vsel %vm261_vm1, %v292_v9, %v293_v16  ;;  %v204_v22 = vrot.slane %v140_v10, 1  ;;  %v206_v23 = vrot.slane %v141_v11, 1  ;;  %v207_v24 = vrot.slane %v142_v12, 1 }
  0x32   : > { %v347_v25 = vmax.f32 %v255_v14, %v294_v21  ;;  %v361_v26 = vmax.f32 %v343_v61, %v345_v17  ;;  %v346_v27 = vmax.f32 %v254_v18, %v290_v4  ;;  %v348_v28 = vmax.f32 %v256_v19, %v293_v16 }
  0x33   : > { %v205_v29 = vsel %vm169_vm0, %v203_v20, %v204_v22  ;;  %v208_v30 = vsel %vm169_vm0, %v206_v23, %v207_v24  ;;  %v295_v31 = vrot.slane %v139_v5, 2  ;;  %v296_v32 = vrot.slane %v140_v10, 2 }
  0x34   : > { %v373_v33 = vmax.f32 %v361_v26, %v347_v25  ;;  %v362_v34 = vmax.f32 %v344_v63, %v346_v27  ;;  %v257_v35 = vmax.f32 %v139_v5, %v205_v29  ;;  %v259_v36 = vmax.f32 %v141_v11, %v208_v30 }
  0x35   : > { %v297_v37 = vsel %vm261_vm1, %v295_v31, %v296_v32  ;;  %v298_v38 = vrot.slane %v141_v11, 2  ;;  %v299_v39 = vrot.slane %v142_v12, 2  ;;  %v258_v40 = vmax.f32 %v140_v10, %v204_v22 }
  0x36   : > { %387 = vst.msk [vmem:[%s520_s15 + $0x40] sm:$0xff] %vm377_vm2, %v373_v33  ;;  %v374_v41 = vmax.f32 %v362_v34, %v348_v28  ;;  %v349_v42 = vmax.f32 %v257_v35, %v297_v37  ;;  %v260_v43 = vmax.f32 %v142_v12, %v207_v24 }
  0x37   : > { %v300_v44 = vsel %vm261_vm1, %v298_v38, %v299_v39  ;;  %v350_v45 = vmax.f32 %v258_v40, %v296_v32 }
  0x38   : > { %388 = vst.msk [vmem:[%s520_s15 + $0x48] sm:$0x3f] %vm379_vm3, %v374_v41  ;;  %v351_v46 = vmax.f32 %v259_v36, %v300_v44  ;;  %v363_v47 = vmax.f32 %v347_v25, %v349_v42  ;;  %v352_v48 = vmax.f32 %v260_v43, %v299_v39 }
  0x39   : > { %v364_v49 = vmax.f32 %v348_v28, %v350_v45 }
  0x3a   : > { %v375_v50 = vmax.f32 %v363_v47, %v351_v46 }
  0x3b   : > { %v376_v51 = vmax.f32 %v364_v49, %v352_v48 }
  0x3c   : > { %389 = vst.msk [vmem:[%s520_s15 + $0x50] sm:$0xff] %vm377_vm2, %v375_v50 }
  0x3d   : > { %390 = vst.msk [vmem:[%s520_s15 + $0x58] sm:$0x3f] %vm379_vm3, %v376_v51 }
  0x3e PF: > { %s11_s6 = sadd.s32 1, %s471_s6  }
  0x3f   : > { %p8_p4 = scmp.ge.s32.totalorder %s11_s6, 4  }
  0x41   :  { %10 = sbr.rel (!%p8_p4) target bundleno = 1 (0x1), region = 54 }

// kernel: inception_v3_forward.10
= control target key start
LH: loop header
LB: loop body
LE: loop exit
PB: predicated region body
PF: predicated region fallthrough
CT: control target
= control target key end

     0   :  { %vm37_vm0 = vcmask 523264   ;;  %vm249_vm1 = vcmask 654336   ;;  %s509_s1 = inlined_call_operand.vmem [shape: f32[64,80], index: 1, kind: input, shape index: {}]   ;;  %s510_s0 = inlined_call_operand.vmem [shape: f32[96,64], index: 0, kind: input, shape index: {}]   ;;  %s511_s2 = inlined_call_operand.vmem [shape: f32[1,80], index: 2, kind: input, shape index: {}]   ;;  %s512_s3 = inlined_call_operand.vmem [shape: f32[1,80], index: 3, kind: input, shape index: {}]   ;;  %s513_s4 = inlined_call_operand.vmem [shape: f32[96,80], index: 4, kind: output, shape index: {}]  }
   0x1   :  { %v29_v0 = vld [vmem:[%s509_s1] sm:$0xff]  ;;  %v30_v1 = vld [vmem:[%s509_s1 + $0x8] sm:$0xff]  ;;  %v31_v2 = vld [vmem:[%s509_s1 + $0x10] sm:$0xff] }
   0x2   :  { %v334_v3 = vpack.c.bf16 %v30_v1, %v29_v0  ;;  %v32_v4 = vld [vmem:[%s509_s1 + $0x18] sm:$0xff]  ;;  %v33_v6 = vld [vmem:[%s509_s1 + $0x20] sm:$0xff]  ;;  %v34_v7 = vld [vmem:[%s509_s1 + $0x28] sm:$0xff] }
   0x3   :  { %v338_v5 = vpack.c.bf16 %v32_v4, %v31_v2  ;;  %v17_v8 = vld [vmem:[%s510_s0] sm:$0xff]  ;;  %v23_v9 = vld [vmem:[%s510_s0 + $0x30] sm:$0xff]  ;;  %v342_v10 = vpack.c.bf16 %v34_v7, %v33_v6  ;;  %v36_v12 = vld [vmem:[%s509_s1 + $0x38] sm:$0xff] }
   0x4   :  { %335 = vmatprep.subr.bf16.mxu0 %v334_v3  ;;  %350 = vmatprep.subr.bf16.mxu1 %v334_v3  ;;  %v35_v11 = vld [vmem:[%s509_s1 + $0x30] sm:$0xff]  ;;  %v18_v14 = vld [vmem:[%s510_s0 + $0x8] sm:$0xff]  ;;  %v24_v15 = vld [vmem:[%s510_s0 + $0x38] sm:$0xff] }
   0x5   :  { %337 = vmatpush3.bf16.msra.mxu0 %v334_v3  ;;  %354 = vmatpush3.bf16.msra.mxu1 %v334_v3  ;;  %v346_v13 = vpack.c.bf16 %v36_v12, %v35_v11  ;;  %v19_v16 = vld [vmem:[%s510_s0 + $0x10] sm:$0xff]  ;;  %v25_v17 = vld [vmem:[%s510_s0 + $0x40] sm:$0xff]  ;;  %v20_v18 = vld [vmem:[%s510_s0 + $0x18] sm:$0xff] }
   0x6   :  { %339 = vmatprep.subr.bf16.mxu0 %v338_v5  ;;  %351 = vmatprep.subr.bf16.mxu1 %v338_v5  ;;  %v26_v19 = vld [vmem:[%s510_s0 + $0x48] sm:$0xff]  ;;  %v21_v20 = vld [vmem:[%s510_s0 + $0x20] sm:$0xff]  ;;  %v27_v21 = vld [vmem:[%s510_s0 + $0x50] sm:$0xff] }
   0x7   :  { %316 = vmatprep.mubr.msk.f32.mxu0 %vm37_vm0, %v17_v8  ;;  %325 = vmatprep.mubr.msk.f32.mxu1 %vm37_vm0, %v23_v9  ;;  %v22_v22 = vld [vmem:[%s510_s0 + $0x28] sm:$0xff]  ;;  %v28_v23 = vld [vmem:[%s510_s0 + $0x58] sm:$0xff]  ;;  %v278_v24 = vld [vmem:[%s511_s2] ss:$0 sm:$0xff] }
   0x8   :  { %v279_v26 = vld [vmem:[%s512_s3] ss:$0 sm:$0xff] }
   0x9   :  { %341 = vmatpush3.bf16.msra.mxu0 %v338_v5  ;;  %355 = vmatpush3.bf16.msra.mxu1 %v338_v5 }
   0xa   :  { %343 = vmatprep.subr.bf16.mxu0 %v342_v10  ;;  %352 = vmatprep.subr.bf16.mxu1 %v342_v10 }
   0xd   :  { %345 = vmatpush3.bf16.msra.mxu0 %v342_v10  ;;  %356 = vmatpush3.bf16.msra.mxu1 %v342_v10 }
   0xe   :  { %347 = vmatprep.subr.bf16.mxu0 %v346_v13  ;;  %353 = vmatprep.subr.bf16.mxu1 %v346_v13 }
  0x11   :  { %349 = vmatpush3.bf16.msra.mxu0 %v346_v13  ;;  %357 = vmatpush3.bf16.msra.mxu1 %v346_v13 }
  0x14   :  { %317 = vmatmul.mubr.msk.f32.vlgmr.msra.gmra.mrb[0].mxu0 %vm37_vm0, %v18_v14  ;;  %326 = vmatmul.mubr.msk.f32.vlgmr.msra.gmra.mrb[0].mxu1 %vm37_vm0, %v24_v15 }
  0x15   :  { %319 = vmatprep.mubr.msk.f32.mxu0 %vm37_vm0, %v19_v16  ;;  %328 = vmatprep.mubr.msk.f32.mxu1 %vm37_vm0, %v25_v17 }
  0x18   :  { %320 = vmatmul.mubr.msk.f32.gmra.mrb[2].mxu0 %vm37_vm0, %v20_v18  ;;  %329 = vmatmul.mubr.msk.f32.gmra.mrb[2].mxu1 %vm37_vm0, %v26_v19 }
  0x19   :  { %322 = vmatprep.mubr.msk.f32.mxu0 %vm37_vm0, %v21_v20  ;;  %331 = vmatprep.mubr.msk.f32.mxu1 %vm37_vm0, %v27_v21 }
  0x1c   :  { %323 = vmatmul.mubr.msk.f32.gmra.mrb[4].mxu0 %vm37_vm0, %v22_v22  ;;  %332 = vmatmul.mubr.msk.f32.gmra.mrb[4].mxu1 %vm37_vm0, %v28_v23 }
  0xe7   :  { %v318_v25 = vpop.f32.mrb[0].mxu0  ;;  %v327_v27 = vpop.f32.mrb[0].mxu1 }
  0xe8   :  { %v207_v28 = vmul.f32 %v318_v25, %v278_v24  ;;  %v213_v29 = vmul.f32 %v327_v27, %v278_v24  ;;  %v140_v30 = vpop.f32.mrb[1].mxu0  ;;  %v170_v31 = vpop.f32.mrb[1].mxu1 }
  0xe9   :  { %v206_v32 = vmul.f32 %v278_v24, %v140_v30  ;;  %v212_v33 = vmul.f32 %v278_v24, %v170_v31 }
  0xea   :  { %v226_v34 = vadd.f32 %v279_v26, %v207_v28  ;;  %v232_v35 = vadd.f32 %v279_v26, %v213_v29 }
  0xeb   :  { %v225_v36 = vadd.f32 %v279_v26, %v206_v32  ;;  %v231_v37 = vadd.f32 %v279_v26, %v212_v33  ;;  %v321_v38 = vpop.f32.mrb[2].mxu0  ;;  %v330_v39 = vpop.f32.mrb[2].mxu1 }
  0xec   :  { %v238_v40 = vmax.f32 %v226_v34, 0.0  ;;  %v244_v41 = vmax.f32 %v232_v35, 0.0  ;;  %v209_v42 = vmul.f32 %v321_v38, %v278_v24  ;;  %v215_v43 = vmul.f32 %v330_v39, %v278_v24  ;;  %v150_v44 = vpop.f32.mrb[3].mxu0  ;;  %v180_v45 = vpop.f32.mrb[3].mxu1 }
  0xed   :  { %v237_v46 = vmax.f32 %v225_v36, 0.0  ;;  %v243_v47 = vmax.f32 %v231_v37, 0.0  ;;  %v208_v48 = vmul.f32 %v278_v24, %v150_v44  ;;  %v214_v49 = vmul.f32 %v278_v24, %v180_v45 }
  0xee   :  { %251 = vst.msk [vmem:[%s513_s4 + $0x8] sm:$0xff] %vm249_vm1, %v238_v40  ;;  %257 = vst.msk [vmem:[%s513_s4 + $0x38] sm:$0xff] %vm249_vm1, %v244_v41  ;;  %v228_v50 = vadd.f32 %v279_v26, %v209_v42  ;;  %v234_v51 = vadd.f32 %v279_v26, %v215_v43 }
  0xef   :  { %250 = vst.msk [vmem:[%s513_s4] sm:$0xff] %vm249_vm1, %v237_v46  ;;  %256 = vst.msk [vmem:[%s513_s4 + $0x30] sm:$0xff] %vm249_vm1, %v243_v47  ;;  %v227_v52 = vadd.f32 %v279_v26, %v208_v48  ;;  %v233_v53 = vadd.f32 %v279_v26, %v214_v49  ;;  %v324_v54 = vpop.f32.mrb[4].mxu0  ;;  %v333_v55 = vpop.f32.mrb[4].mxu1 }
  0xf0   :  { %v240_v56 = vmax.f32 %v228_v50, 0.0  ;;  %v246_v57 = vmax.f32 %v234_v51, 0.0  ;;  %v211_v58 = vmul.f32 %v324_v54, %v278_v24  ;;  %v217_v59 = vmul.f32 %v333_v55, %v278_v24  ;;  %v160_v60 = vpop.f32.mrb[5].mxu0  ;;  %v190_v61 = vpop.f32.mrb[5].mxu1 }
  0xf1   :  { %v239_v62 = vmax.f32 %v227_v52, 0.0  ;;  %v245_v63 = vmax.f32 %v233_v53, 0.0  ;;  %v210_v0 = vmul.f32 %v278_v24, %v160_v60  ;;  %v216_v1 = vmul.f32 %v278_v24, %v190_v61 }
  0xf2   :  { %253 = vst.msk [vmem:[%s513_s4 + $0x18] sm:$0xff] %vm249_vm1, %v240_v56  ;;  %259 = vst.msk [vmem:[%s513_s4 + $0x48] sm:$0xff] %vm249_vm1, %v246_v57  ;;  %v230_v2 = vadd.f32 %v279_v26, %v211_v58  ;;  %v236_v3 = vadd.f32 %v279_v26, %v217_v59 }
  0xf3   :  { %252 = vst.msk [vmem:[%s513_s4 + $0x10] sm:$0xff] %vm249_vm1, %v239_v62  ;;  %258 = vst.msk [vmem:[%s513_s4 + $0x40] sm:$0xff] %vm249_vm1, %v245_v63  ;;  %v229_v4 = vadd.f32 %v279_v26, %v210_v0  ;;  %v235_v5 = vadd.f32 %v279_v26, %v216_v1 }
  0xf4   :  { %v242_v6 = vmax.f32 %v230_v2, 0.0  ;;  %v248_v7 = vmax.f32 %v236_v3, 0.0 }
  0xf5   :  { %v241_v8 = vmax.f32 %v229_v4, 0.0  ;;  %v247_v9 = vmax.f32 %v235_v5, 0.0 }
  0xf6   :  { %255 = vst.msk [vmem:[%s513_s4 + $0x28] sm:$0xff] %vm249_vm1, %v242_v6  ;;  %261 = vst.msk [vmem:[%s513_s4 + $0x58] sm:$0xff] %vm249_vm1, %v248_v7 }
  0xf7   :  { %254 = vst.msk [vmem:[%s513_s4 + $0x20] sm:$0xff] %vm249_vm1, %v241_v8  ;;  %260 = vst.msk [vmem:[%s513_s4 + $0x50] sm:$0xff] %vm249_vm1, %v247_v9 }

// kernel: inception_v3_forward.7
= control target key start
LH: loop header
LB: loop body
LE: loop exit
PB: predicated region body
PF: predicated region fallthrough
CT: control target
= control target key end

     0   :  { %s4103_s15 = smov 0   ;;  %s5191_s0 = inlined_call_operand.vmem [shape: f32[2,15,16,32], index: 0, kind: input, shape index: {}]   ;;  %s5192_s1 = inlined_call_operand.vmem [shape: f32[9,32,32], index: 1, kind: input, shape index: {}]   ;;  %s5193_s2 = inlined_call_operand.vmem [shape: f32[1,32], index: 2, kind: input, shape index: {}]   ;;  %s5194_s3 = inlined_call_operand.vmem [shape: f32[1,32], index: 3, kind: input, shape index: {}]   ;;  %s5195_s4 = inlined_call_operand.vmem [shape: f32[2,13,16,32], index: 4, kind: output, shape index: {}]  }
   0x1 LB: > { %s2806_s16 = sadd.s32 4294967295, %s4076_s15   ;;  %p2810_p0 = scmp.ge.s32.totalorder %s4076_s15, 1  ;;  %s4076_s15 = sphi %s4103_s15, %s14_s15  }
   0x2   : > { %p162_p1 = scmp.lt.s32.totalorder %s4076_s15, 3 }
   0x4   : > { %p163_p2 = pnand %p2810_p0, %p162_p1 }
   0x6   : > { %166 = sbr.rel (%p163_p2) target bundleno = 479 (0x1df), region = 36 }
   0xd   : > { %v2929_v0 = vld [vmem:[%s5192_s1 + $0x80] sm:$0xff]  ;;  %v2930_v1 = vld [vmem:[%s5192_s1 + $0x88] sm:$0xff]  ;;  %p188_p3 = scmp.lt.s32.totalorder %s2806_s16, 1  ;;  %v2931_v5 = vld [vmem:[%s5192_s1 + $0x90] sm:$0xff]  ;;  %vm258_vm0 = vcmask 1046528   ;;  %vm329_vm1 = vcmask 261120  }
   0xe   : > { %v2813_v2 = vld [vmem:[%s5192_s1 + $0x20] sm:$0xff]  ;;  %v4120_v3 = vpack.c.bf16 %v2930_v1, %v2929_v0  ;;  %v2814_v4 = vld [vmem:[%s5192_s1 + $0x28] sm:$0xff]  ;;  %v2932_v6 = vld [vmem:[%s5192_s1 + $0x98] sm:$0xff]  ;;  %vm837_vm2 = vcmask 1045504  }
   0xf   : > { %v3776_v7 = vpack.c.bf16 %v2814_v4, %v2813_v2  ;;  %v4131_v8 = vpack.c.bf16 %v2932_v6, %v2931_v5  ;;  %v2815_v9 = vld [vmem:[%s5192_s1 + $0x30] sm:$0xff]  ;;  %v2816_v10 = vld [vmem:[%s5192_s1 + $0x38] sm:$0xff]  ;;  %s5275_s16 = smov (!%p188_p3, %s2806_s16), 1  ;;  %v2959_v11 = vld [vmem:[%s5192_s1 + $0xa0] sm:$0xff] }
  0x10   : > { %3809 = vmatprep.subr.bf16.mxu0 %v4120_v3  ;;  %v3780_v12 = vpack.c.bf16 %v2816_v10, %v2815_v9  ;;  %v2960_v13 = vld [vmem:[%s5192_s1 + $0xa8] sm:$0xff]  ;;  %v228_v14 = vld [vmem:[%s5192_s1] sm:$0xff]  ;;  %s4060_s17 = smul.u32 240, %s5275_s16  ;;  %v2961_v18 = vld [vmem:[%s5192_s1 + $0xb0] sm:$0xff] }
  0x11   : > { %5231 = vst [vmem:[#allocation2_spill] sm:$0xff] %v4131_v8  ;;  %v229_v15 = vld [vmem:[%s5192_s1 + $0x8] sm:$0xff]  ;;  %3777 = vmatprep.subr.bf16.mxu1 %v3776_v7  ;;  %3811 = vmatpush3.bf16.msra.mxu0 %v4120_v3  ;;  %v3816_v16 = vpack.c.bf16 %v2960_v13, %v2959_v11  ;;  %v2962_v19 = vld [vmem:[%s5192_s1 + $0xb8] sm:$0xff]  ;;  %v230_v23 = vld [vmem:[%s5192_s1 + $0x10] sm:$0xff]  ;;  %s4061_s26 = smul.u32 208, %s5275_s16 }
  0x12   : > { %3779 = vmatpush3.bf16.msra.mxu1 %v3776_v7  ;;  %3813 = vmatprep.subr.bf16.mxu0 %v4131_v8  ;;  %s4160_s20 = scalar_lea.vmem %s5191_s0, %s4060_s17  ;;  %v3784_v17 = vpack.c.bf16 %v229_v15, %v228_v14  ;;  %v231_v35 = vld [vmem:[%s5192_s1 + $0x18] sm:$0xff]  ;;  %v3820_v39 = vpack.c.bf16 %v2962_v19, %v2961_v18  ;;  %v2989_v44 = vld [vmem:[%s5192_s1 + $0xc0] sm:$0xff]  ;;  %v2990_v47 = vld [vmem:[%s5192_s1 + $0xc8] sm:$0xff] }
  0x13   : > { %3781 = vmatprep.subr.bf16.mxu1 %v3780_v12  ;;  %v4169_v20 = vld [vmem:[%s4160_s20] sm:$0xff]  ;;  %v4172_v21 = vld [vmem:[%s4160_s20 + $0x8] sm:$0xff]  ;;  %v4175_v22 = vld [vmem:[%s4160_s20 + $0x10] sm:$0xff]  ;;  %v3788_v48 = vpack.c.bf16 %v231_v35, %v230_v23  ;;  %v4241_v53 = vpack.c.bf16 %v2990_v47, %v2989_v44  ;;  %s5055_s29 = scalar_lea.vmem %s5195_s4, %s4061_s26 }
  0x14   : > { %5232 = vst [vmem:[#allocation3_spill] sm:$0xff] %v4175_v22  ;;  %v259_v24 = vrot.slane %v4169_v20, 1  ;;  %v260_v25 = vrot.slane %v4172_v21, 1  ;;  %v4184_v26 = vld [vmem:[%s4160_s20 + $0x18] sm:$0xff]  ;;  %v262_v27 = vrot.slane %v4175_v22, 1  ;;  %v4188_v28 = vld [vmem:[%s4160_s20 + $0x20] sm:$0xff] }
  0x15   : > { %3815 = vmatpush3.bf16.msra.mxu0 %v4131_v8  ;;  %5233 = vst [vmem:[#allocation4_spill] sm:$0xff] %v4184_v26  ;;  %v4191_v29 = vld [vmem:[%s4160_s20 + $0x28] sm:$0xff]  ;;  %v263_v30 = vrot.slane %v4184_v26, 1  ;;  %v265_v31 = vrot.slane %v4188_v28, 1  ;;  %v4197_v33 = vld [vmem:[%s4160_s20 + $0x30] sm:$0xff]  ;;  %v4200_v34 = vld [vmem:[%s4160_s20 + $0x38] sm:$0xff] }
  0x16   : > { %3783 = vmatpush3.bf16.msra.mxu1 %v3780_v12  ;;  %3817 = vmatprep.subr.bf16.mxu0 %v3816_v16  ;;  %v266_v32 = vrot.slane %v4191_v29, 1  ;;  %v261_v36 = vsel %vm258_vm0, %v259_v24, %v260_v25  ;;  %v311_v37 = vsel %vm258_vm0, %v260_v25, 0.0  ;;  %v268_v38 = vrot.slane %v4197_v33, 1  ;;  %v4221_v45 = vld [vmem:[%s4160_s20 + $0x40] sm:$0xff]  ;;  %v4224_v46 = vld [vmem:[%s4160_s20 + $0x48] sm:$0xff]  ;;  %v4245_v54 = vld [vmem:[%s4160_s20 + $0x50] sm:$0xff] }
  0x17   : > { %3785 = vmatprep.subr.bf16.mxu1 %v3784_v17  ;;  %3361 = vmatprep.mubr.msk.f32.mxu1 %vm329_vm1, %v261_v36  ;;  %v264_v40 = vsel %vm258_vm0, %v262_v27, %v263_v30  ;;  %v312_v41 = vsel %vm258_vm0, %v263_v30, 0.0  ;;  %v269_v43 = vrot.slane %v4200_v34, 1  ;;  %v271_v51 = vrot.slane %v4221_v45, 1  ;;  %v4248_v55 = vld [vmem:[%s4160_s20 + $0x58] sm:$0xff]  ;;  %v4268_v60 = vld [vmem:[%s4160_s20 + $0x60] sm:$0xff]  ;;  %v4271_v61 = vld [vmem:[%s4160_s20 + $0x68] sm:$0xff] }
  0x18   : > { %v4212_v42 = vsel %vm258_vm0, %v265_v31, %v266_v32  ;;  %3549 = vmatprep.mubr.msk.f32.mxu0 %vm329_vm1, %v264_v40  ;;  %v4234_v49 = vsel %vm258_vm0, %v266_v32, 0.0  ;;  %v272_v52 = vrot.slane %v4224_v46, 1  ;;  %v274_v58 = vrot.slane %v4245_v54, 1  ;;  %v4290_v2 = vld [vmem:[%s4160_s20 + $0x70] sm:$0xff]  ;;  %v4293_v4 = vld [vmem:[%s4160_s20 + $0x78] sm:$0xff]  ;;  %v2869_v5 = vld [vmem:[%s5192_s1 + $0x40] sm:$0xff] }
  0x19   : > { %3362 = vmatmul.mubr.msk.f32.vlgmr.msra.gmra.mrb[0].mxu1 %vm329_vm1, %v311_v37  ;;  %3550 = vmatmul.mubr.msk.f32.vlgmr.msra.gmra.mrb[0].mxu0 %vm329_vm1, %v312_v41  ;;  %v4237_v50 = vsel %vm258_vm0, %v268_v38, %v269_v43  ;;  %v4257_v56 = vsel %vm258_vm0, %v269_v43, 0.0  ;;  %v275_v59 = vrot.slane %v4248_v55, 1  ;;  %v277_v0 = vrot.slane %v4268_v60, 1  ;;  %v2870_v6 = vld [vmem:[%s5192_s1 + $0x48] sm:$0xff]  ;;  %v4361_v35 = vld [vmem:[%s4160_s20 + $0x90] sm:$0xff]  ;;  %v4364_v36 = vld [vmem:[%s4160_s20 + $0x98] sm:$0xff] }
  0x1a   : > { %3364 = vmatprep.mubr.msk.f32.mxu1 %vm329_vm1, %v264_v40  ;;  %3819 = vmatpush3.bf16.msra.mxu0 %v3816_v16  ;;  %v4260_v57 = vsel %vm258_vm0, %v271_v51, %v272_v52  ;;  %v4280_v62 = vsel %vm258_vm0, %v272_v52, 0.0  ;;  %v278_v1 = vrot.slane %v4271_v61, 1  ;;  %v280_v10 = vrot.slane %v4290_v2, 1  ;;  %v4338_v18 = vld [vmem:[%s4160_s20 + $0x88] sm:$0xff]  ;;  %v2991_v37 = vld [vmem:[%s5192_s1 + $0xd0] sm:$0xff]  ;;  %v2992_v38 = vld [vmem:[%s5192_s1 + $0xd8] sm:$0xff] }
  0x1b   : > { %3552 = vmatprep.mubr.msk.f32.mxu0 %vm329_vm1, %v4212_v42  ;;  %3787 = vmatpush3.bf16.msra.mxu1 %v3784_v17  ;;  %v4283_v63 = vsel %vm258_vm0, %v274_v58, %v275_v59  ;;  %v4308_v7 = vsel %vm258_vm0, %v275_v59, 0.0  ;;  %v281_v11 = vrot.slane %v4293_v4, 1  ;;  %v4317_v12 = vpack.c.bf16 %v2870_v6, %v2869_v5  ;;  %v4335_v17 = vld [vmem:[%s4160_s20 + $0x80] sm:$0xff]  ;;  %v4402_v58 = vld [vmem:[%s4160_s20 + $0xa8] sm:$0xff] }
  0x1c   : > { %3821 = vmatprep.subr.bf16.mxu0 %v3820_v39  ;;  %3789 = vmatprep.subr.bf16.mxu1 %v3788_v48  ;;  %5234 = vst [vmem:[#allocation5_spill] sm:$0xff] %v4308_v7  ;;  %v4311_v9 = vsel %vm258_vm0, %v277_v0, %v278_v1  ;;  %v4326_v13 = vsel %vm258_vm0, %v278_v1, 0.0  ;;  %v841_v15 = vrot.slane %v4175_v22, 2  ;;  %v842_v16 = vrot.slane %v4184_v26, 2  ;;  %v4399_v52 = vld [vmem:[%s4160_s20 + $0xa0] sm:$0xff]  ;;  %v3020_v1 = vld [vmem:[%s5192_s1 + $0xe8] sm:$0xff] }
  0x1d   : > { %3365 = vmatmul.mubr.msk.f32.gmra.mrb[2].mxu1 %vm329_vm1, %v312_v41  ;;  %3553 = vmatmul.mubr.msk.f32.gmra.mrb[2].mxu0 %vm329_vm1, %v4234_v49  ;;  %5235 = vst [vmem:[#allocation6_spill] sm:$0xff] %v4311_v9  ;;  %5236 = vst [vmem:[#allocation7_spill] sm:$0xff] %v4326_v13  ;;  %v4330_v14 = vsel %vm258_vm0, %v280_v10, %v281_v11  ;;  %v4347_v19 = vsel %vm258_vm0, %v281_v11, 0.0  ;;  %v283_v23 = vrot.slane %v4335_v17, 1  ;;  %v284_v24 = vrot.slane %v4338_v18, 1  ;;  %v3019_v0 = vld [vmem:[%s5192_s1 + $0xe0] sm:$0xff] }
  0x1e   : > { %3367 = vmatprep.mubr.msk.f32.mxu1 %vm329_vm1, %v4212_v42  ;;  %3555 = vmatprep.mubr.msk.f32.mxu0 %vm329_vm1, %v4237_v50  ;;  %5237 = vst [vmem:[#allocation8_spill] sm:$0xff] %v4330_v14  ;;  %5238 = vst [vmem:[#allocation9_spill] sm:$0xff] %v4347_v19  ;;  %v838_v25 = vrot.slane %v4169_v20, 2  ;;  %v5196_v27 = vrot.slane %v4172_v21, 2  ;;  %v4356_v30 = vsel %vm837_vm2, %v841_v15, %v842_v16  ;;  %v844_v31 = vrot.slane %v4188_v28, 2  ;;  %v4471_v8 = vld [vmem:[%s4160_s20 + $0xc8] sm:$0xff] }
  0x1f   : > { %3823 = vmatpush3.bf16.msra.mxu0 %v3820_v39  ;;  %3791 = vmatpush3.bf16.msra.mxu1 %v3788_v48  ;;  %v845_v32 = vrot.slane %v4191_v29, 2  ;;  %v4386_v40 = vsel %vm837_vm2, %v842_v16, 0.0  ;;  %v4389_v41 = vsel %vm258_vm0, %v283_v23, %v284_v24  ;;  %v286_v43 = vrot.slane %v4361_v35, 1 }
  0x20   : > { %3825 = vmatprep.subr.bf16.mxu0 %v4241_v53  ;;  %3793 = vmatprep.subr.bf16.mxu1 %v4317_v12  ;;  %v4377_v39 = vsel %vm837_vm2, %v838_v25, %v5196_v27  ;;  %5239 = vst [vmem:[#allocation10_spill] sm:$0xff] %v4389_v41  ;;  %v287_v44 = vrot.slane %v4364_v36, 1  ;;  %v847_v48 = vrot.slane %v4197_v33, 2  ;;  %v848_v51 = vrot.slane %v4200_v34, 2  ;;  %v4439_v25 = vld [vmem:[%s4160_s20 + $0xb8] sm:$0xff]  ;;  %v4468_v27 = vld [vmem:[%s4160_s20 + $0xc0] sm:$0xff] }
  0x21   : > { %3368 = vmatmul.mubr.msk.f32.gmra.mrb[4].mxu1 %vm329_vm1, %v4234_v49  ;;  %3556 = vmatmul.mubr.msk.f32.gmra.mrb[4].mxu0 %vm329_vm1, %v4257_v56  ;;  %v4394_v47 = vsel %vm837_vm2, %v844_v31, %v845_v32  ;;  %v3828_v59 = vpack.c.bf16 %v2992_v38, %v2991_v37  ;;  %v4417_v5 = vsel %vm258_vm0, %v284_v24, 0.0  ;;  %v4423_v6 = vsel %vm837_vm2, %v845_v32, 0.0  ;;  %v4436_v24 = vld [vmem:[%s4160_s20 + $0xb0] sm:$0xff] }
  0x22   : > { %3370 = vmatprep.mubr.msk.f32.mxu1 %vm329_vm1, %v4237_v50  ;;  %3558 = vmatprep.mubr.msk.f32.mxu0 %vm329_vm1, %v4260_v57  ;;  %5240 = vst [vmem:[#allocation11_spill] sm:$0xff] %v4417_v5  ;;  %v4426_v10 = vsel %vm258_vm0, %v286_v43, %v287_v44  ;;  %v289_v11 = vrot.slane %v4399_v52, 1  ;;  %v290_v15 = vrot.slane %v4402_v58, 1  ;;  %v4431_v16 = vsel %vm837_vm2, %v847_v48, %v848_v51 }
  0x23   : > { %5241 = vst [vmem:[#allocation12_spill] sm:$0xff] %v4426_v10  ;;  %v850_v23 = vrot.slane %v4221_v45, 2  ;;  %v4441_v31 = vpack.c.bf16 %v3020_v1, %v3019_v0  ;;  %v4450_v32 = vsel %vm258_vm0, %v287_v44, 0.0  ;;  %v4455_v37 = vsel %vm837_vm2, %v848_v51, 0.0 }
  0x24   : > { %5242 = vst [vmem:[#allocation13_spill] sm:$0xff] %v4450_v32  ;;  %v4458_v38 = vsel %vm258_vm0, %v289_v11, %v290_v15  ;;  %v292_v43 = vrot.slane %v4436_v24, 1  ;;  %v293_v48 = vrot.slane %v4439_v25, 1  ;;  %v853_v44 = vrot.slane %v4245_v54, 2 }
  0x25   : > { %3371 = vmatmul.mubr.msk.f32.gmra.mrb[6].mxu1 %vm329_vm1, %v4257_v56  ;;  %3559 = vmatmul.mubr.msk.f32.gmra.mrb[6].mxu0 %vm329_vm1, %v4280_v62  ;;  %5243 = vst [vmem:[#allocation14_spill] sm:$0xff] %v4458_v38  ;;  %v854_v1 = vrot.slane %v4248_v55, 2  ;;  %v4481_v51 = vsel %vm258_vm0, %v290_v15, 0.0  ;;  %v857_v15 = vrot.slane %v4271_v61, 2 }
  0x26   : > { %3373 = vmatprep.mubr.msk.f32.mxu1 %vm329_vm1, %v4260_v57  ;;  %3561 = vmatprep.mubr.msk.f32.mxu0 %vm329_vm1, %v4283_v63  ;;  %5244 = vst [vmem:[#allocation15_spill] sm:$0xff] %v4481_v51  ;;  %v4489_v11 = vsel %vm258_vm0, %v292_v43, %v293_v48 }
  0x27   : > { %5245 = vst [vmem:[#allocation16_spill] sm:$0xff] %v4489_v11  ;;  %v4510_v43 = vsel %vm837_vm2, %v854_v1, 0.0 }
  0x29   : > { %3374 = vmatmul.mubr.msk.f32.gmra.mrb[8].mxu1 %vm329_vm1, %v4280_v62  ;;  %3562 = vmatmul.mubr.msk.f32.gmra.mrb[8].mxu0 %vm329_vm1, %v4308_v7 }
  0x2a   : > { %3376 = vmatprep.mubr.msk.f32.mxu1 %vm329_vm1, %v4283_v63  ;;  %3564 = vmatprep.mubr.msk.f32.mxu0 %vm329_vm1, %v4311_v9 }
  0x2d   : > { %3377 = vmatmul.mubr.msk.f32.gmra.mrb[10].mxu1 %vm329_vm1, %v4308_v7  ;;  %3565 = vmatmul.mubr.msk.f32.gmra.mrb[10].mxu0 %vm329_vm1, %v4326_v13 }
  0x2e   : > { %3379 = vmatprep.mubr.msk.f32.mxu1 %vm329_vm1, %v4311_v9  ;;  %3567 = vmatprep.mubr.msk.f32.mxu0 %vm329_vm1, %v4330_v14 }
  0x31   : > { %3380 = vmatmul.mubr.msk.f32.gmra.mrb[12].mxu1 %vm329_vm1, %v4326_v13  ;;  %3568 = vmatmul.mubr.msk.f32.gmra.mrb[12].mxu0 %vm329_vm1, %v4347_v19 }
  0x32   : > { %3382 = vmatprep.mubr.msk.f32.mxu1 %vm329_vm1, %v4330_v14  ;;  %3596 = vmatprep.mubr.msk.f32.mxu0 %vm329_vm1, %v4356_v30  ;;  %v869_v14 = vrot.slane %v4402_v58, 2 }
  0x35   : > { %3383 = vmatmul.mubr.msk.f32.gmra.mrb[14].mxu1 %vm329_vm1, %v4347_v19  ;;  %3597 = vmatmul.mubr.msk.f32.vlgmr.msra.gmra.mrb[0].mxu0 %vm329_vm1, %v4386_v40 }
  0x36   : > { %3385 = vmatprep.mubr.msk.f32.mxu1 %vm329_vm1, %v4389_v41  ;;  %3827 = vmatpush3.bf16.msra.mxu0 %v4241_v53  ;;  %v851_v53 = vrot.slane %v4224_v46, 2  ;;  %v860_v41 = vrot.slane %v4293_v4, 2 }
  0x37   : > { %3599 = vmatprep.mubr.msk.f32.mxu0 %vm329_vm1, %v4394_v47  ;;  %3829 = vmatprep.subr.bf16.mxu0 %v3828_v59 }
  0x38   : > { %v4463_v0 = vsel %vm837_vm2, %v850_v23, %v851_v53  ;;  %v295_v23 = vrot.slane %v4468_v27, 1 }
  0x39   : > { %3386 = vmatmul.mubr.msk.f32.gmra.mrb[16].mxu1 %vm329_vm1, %v4417_v5  ;;  %3600 = vmatmul.mubr.msk.f32.gmra.mrb[2].mxu0 %vm329_vm1, %v4423_v6  ;;  %v859_v5 = vrot.slane %v4290_v2, 2 }
  0x3a   : > { %3388 = vmatprep.mubr.msk.f32.mxu1 %vm329_vm1, %v4426_v10  ;;  %3602 = vmatprep.mubr.msk.f32.mxu0 %vm329_vm1, %v4431_v16  ;;  %v4494_v10 = vsel %vm837_vm2, %v853_v44, %v854_v1 }
  0x3b   : > { %3831 = vmatpush3.bf16.msra.mxu0 %v3828_v59  ;;  %v4486_v59 = vsel %vm837_vm2, %v851_v53, 0.0  ;;  %v4505_v53 = vsel %vm258_vm0, %v293_v48, 0.0  ;;  %v4535_v1 = vsel %vm837_vm2, %v859_v5, %v860_v41  ;;  %v4554_v5 = vsel %vm837_vm2, %v860_v41, 0.0  ;;  %v2900_v41 = vld [vmem:[%s5192_s1 + $0x68] sm:$0xff] }
  0x3c   : > { %3833 = vmatprep.subr.bf16.mxu0 %v4441_v31  ;;  %5246 = vst [vmem:[#allocation17_spill] sm:$0xff] %v4505_v53 }
  0x3d   : > { %3389 = vmatmul.mubr.msk.f32.gmra.mrb[18].mxu1 %vm329_vm1, %v4450_v32  ;;  %3603 = vmatmul.mubr.msk.f32.gmra.mrb[4].mxu0 %vm329_vm1, %v4455_v37  ;;  %v296_v32 = vrot.slane %v4471_v8, 1 }
  0x3e   : > { %3391 = vmatprep.mubr.msk.f32.mxu1 %vm329_vm1, %v4458_v38  ;;  %3605 = vmatprep.mubr.msk.f32.mxu0 %vm329_vm1, %v4463_v0  ;;  %v856_v38 = vrot.slane %v4268_v60, 2 }
  0x3f   : > { %v4513_v44 = vsel %vm258_vm0, %v295_v23, %v296_v32  ;;  %v4527_v48 = vsel %vm258_vm0, %v296_v32, 0.0  ;;  %v862_v23 = vrot.slane %v4335_v17, 2  ;;  %v2871_v32 = vld [vmem:[%s5192_s1 + $0x50] sm:$0xff] }
  0x40   : > { %5247 = vst [vmem:[#allocation18_spill] sm:$0xff] %v4513_v44  ;;  %5248 = vst [vmem:[#allocation19_spill] sm:$0xff] %v4527_v48 }
  0x41   : > { %3392 = vmatmul.mubr.msk.f32.gmra.mrb[20].mxu1 %vm329_vm1, %v4481_v51  ;;  %3606 = vmatmul.mubr.msk.f32.gmra.mrb[6].mxu0 %vm329_vm1, %v4486_v59  ;;  %v4516_v51 = vsel %vm837_vm2, %v856_v38, %v857_v15  ;;  %v4532_v38 = vsel %vm837_vm2, %v857_v15, 0.0 }
  0x42   : > { %3394 = vmatprep.mubr.msk.f32.mxu1 %vm329_vm1, %v4489_v11  ;;  %3608 = vmatprep.mubr.msk.f32.mxu0 %vm329_vm1, %v4494_v10  ;;  %v866_v11 = vrot.slane %v4364_v36, 2 }
  0x45   : > { %3395 = vmatmul.mubr.msk.f32.gmra.mrb[22].mxu1 %vm329_vm1, %v4505_v53  ;;  %3609 = vmatmul.mubr.msk.f32.gmra.mrb[8].mxu0 %vm329_vm1, %v4510_v43  ;;  %v863_v53 = vrot.slane %v4338_v18, 2 }
  0x46   : > { %3397 = vmatprep.mubr.msk.f32.mxu1 %vm329_vm1, %v4513_v44  ;;  %3611 = vmatprep.mubr.msk.f32.mxu0 %vm329_vm1, %v4516_v51  ;;  %v2872_v44 = vld [vmem:[%s5192_s1 + $0x58] sm:$0xff] }
  0x47   : > { %v4557_v15 = vsel %vm837_vm2, %v862_v23, %v863_v53  ;;  %v3796_v19 = vpack.c.bf16 %v2872_v44, %v2871_v32  ;;  %v4577_v44 = vsel %vm837_vm2, %v863_v53, 0.0  ;;  %v868_v32 = vrot.slane %v4399_v52, 2 }
  0x49   : > { %3398 = vmatmul.mubr.msk.f32.gmra.mrb[24].mxu1 %vm329_vm1, %v4527_v48  ;;  %3612 = vmatmul.mubr.msk.f32.gmra.mrb[10].mxu0 %vm329_vm1, %v4532_v38  ;;  %v865_v48 = vrot.slane %v4361_v35, 2  ;;  %v4598_v53 = vsel %vm837_vm2, %v868_v32, %v869_v14  ;;  %v875_v32 = vrot.slane %v4471_v8, 2 }
  0x4a   : > { %3408 = vmatprep.mubr.msk.f32.mxu1 %vm329_vm1, %v4169_v20  ;;  %3614 = vmatprep.mubr.msk.f32.mxu0 %vm329_vm1, %v4535_v1  ;;  %v2899_v20 = vld [vmem:[%s5192_s1 + $0x60] sm:$0xff] }
  0x4b   : > { %v4580_v23 = vsel %vm837_vm2, %v865_v48, %v866_v11  ;;  %v4584_v13 = vpack.c.bf16 %v2900_v41, %v2899_v20  ;;  %v871_v48 = vrot.slane %v4436_v24, 2  ;;  %v872_v20 = vrot.slane %v4439_v25, 2 }
  0x4c   : > { %v874_v41 = vrot.slane %v4468_v27, 2 }
  0x4d   : > { %3409 = vmatmul.mubr.msk.f32.vlgmr.msra.gmra.mrb[0].mxu1 %vm329_vm1, %v4172_v21  ;;  %3615 = vmatmul.mubr.msk.f32.gmra.mrb[12].mxu0 %vm329_vm1, %v4554_v5 }
  0x4e   : > { %3411 = vmatprep.mubr.msk.f32.mxu1 %vm329_vm1, %v4175_v22  ;;  %3617 = vmatprep.mubr.msk.f32.mxu0 %vm329_vm1, %v4557_v15  ;;  %v4625_v22 = vld [vmem:[%s4160_s20 + $0xd8] sm:$0xff] }
  0x4f   : > { %3795 = vmatpush3.bf16.msra.mxu1 %v4317_v12  ;;  %v4595_v12 = vsel %vm837_vm2, %v866_v11, 0.0  ;;  %v4615_v11 = vsel %vm837_vm2, %v871_v48, %v872_v20  ;;  %v4637_v48 = vsel %vm837_vm2, %v874_v41, %v875_v32  ;;  %v1663_v7 = vrot.slane %v4625_v22, 2 }
  0x50   : > { %3797 = vmatprep.subr.bf16.mxu1 %v3796_v19  ;;  %5249 = vst [vmem:[#allocation20_spill] sm:$0xff] %v4637_v48 }
  0x51   : > { %3412 = vmatmul.mubr.msk.f32.gmra.mrb[2].mxu1 %vm329_vm1, %v4184_v26  ;;  %3618 = vmatmul.mubr.msk.f32.gmra.mrb[14].mxu0 %vm329_vm1, %v4577_v44  ;;  %v4622_v26 = vld [vmem:[%s4160_s20 + $0xd0] sm:$0xff] }
  0x52   : > { %3414 = vmatprep.mubr.msk.f32.mxu1 %vm329_vm1, %v4188_v28  ;;  %3620 = vmatprep.mubr.msk.f32.mxu0 %vm329_vm1, %v4580_v23  ;;  %v1662_v9 = vrot.slane %v4622_v26, 2 }
  0x53   : > { %3799 = vmatpush3.bf16.msra.mxu1 %v3796_v19  ;;  %v4612_v19 = vsel %vm837_vm2, %v869_v14, 0.0  ;;  %v4634_v14 = vsel %vm837_vm2, %v872_v20, 0.0  ;;  %v4650_v20 = vsel %vm837_vm2, %v875_v32, 0.0  ;;  %v3022_v32 = vld [vmem:[%s5192_s1 + $0xf8] sm:$0xff] }
  0x54   : > { %3801 = vmatprep.subr.bf16.mxu1 %v4584_v13  ;;  %5250 = vst [vmem:[#allocation21_spill] sm:$0xff] %v4650_v20  ;;  %v4653_v41 = vsel %vm837_vm2, %v1662_v9, %v1663_v7  ;;  %v3021_v9 = vld [vmem:[%s5192_s1 + $0xf0] sm:$0xff] }
  0x55   : > { %3415 = vmatmul.mubr.msk.f32.gmra.mrb[4].mxu1 %vm329_vm1, %v4191_v29  ;;  %3621 = vmatmul.mubr.msk.f32.gmra.mrb[16].mxu0 %vm329_vm1, %v4595_v12  ;;  %5251 = vst [vmem:[#allocation22_spill] sm:$0xff] %v4653_v41 }
  0x56   : > { %3417 = vmatprep.mubr.msk.f32.mxu1 %vm329_vm1, %v4197_v33  ;;  %3623 = vmatprep.mubr.msk.f32.mxu0 %vm329_vm1, %v4598_v53 }
  0x59   : > { %3418 = vmatmul.mubr.msk.f32.gmra.mrb[6].mxu1 %vm329_vm1, %v4200_v34  ;;  %3624 = vmatmul.mubr.msk.f32.gmra.mrb[18].mxu0 %vm329_vm1, %v4612_v19 }
  0x5a   : > { %3420 = vmatprep.mubr.msk.f32.mxu1 %vm329_vm1, %v4221_v45  ;;  %3626 = vmatprep.mubr.msk.f32.mxu0 %vm329_vm1, %v4615_v11 }
  0x5d   : > { %3421 = vmatmul.mubr.msk.f32.gmra.mrb[8].mxu1 %vm329_vm1, %v4224_v46  ;;  %3627 = vmatmul.mubr.msk.f32.gmra.mrb[20].mxu0 %vm329_vm1, %v4634_v14 }
  0x5e   : > { %3423 = vmatprep.mubr.msk.f32.mxu1 %vm329_vm1, %v4245_v54  ;;  %3629 = vmatprep.mubr.msk.f32.mxu0 %vm329_vm1, %v4637_v48  ;;  %v4664_v48 = vsel %vm837_vm2, %v1663_v7, 0.0  ;;  %v3836_v7 = vpack.c.bf16 %v3022_v32, %v3021_v9 }
  0x61   : > { %3424 = vmatmul.mubr.msk.f32.gmra.mrb[10].mxu1 %vm329_vm1, %v4248_v55  ;;  %3630 = vmatmul.mubr.msk.f32.gmra.mrb[22].mxu0 %vm329_vm1, %v4650_v20  ;;  %v3050_v20 = vld [vmem:[%s5192_s1 + $0x108] sm:$0xff] }
  0x62   : > { %3426 = vmatprep.mubr.msk.f32.mxu1 %vm329_vm1, %v4268_v60  ;;  %3632 = vmatprep.mubr.msk.f32.mxu0 %vm329_vm1, %v4653_v41  ;;  %v3049_v41 = vld [vmem:[%s5192_s1 + $0x100] sm:$0xff] }
  0x63   : > { %v4695_v9 = vpack.c.bf16 %v3050_v20, %v3049_v41  ;;  %v2902_v20 = vld [vmem:[%s5192_s1 + $0x78] sm:$0xff]  ;;  %v5252_v41 = vrot.slane %v4172_v21, 2  ;;  %v4789_v21 = vld [vmem:[%s4160_s20 + $0xe0] sm:$0xff] }
  0x65   : > { %3427 = vmatmul.mubr.msk.f32.gmra.mrb[12].mxu1 %vm329_vm1, %v4271_v61  ;;  %3633 = vmatmul.mubr.msk.f32.gmra.mrb[24].mxu0 %vm329_vm1, %v4664_v48  ;;  %v890_v32 = vsel %vm837_vm2, %v5252_v41, 0.0  ;;  %v5263_v41 = vld [vmem:[#allocation11_spill] sm:$0xff] }
  0x66   : > { %3429 = vmatprep.mubr.msk.f32.mxu1 %vm329_vm1, %v4290_v2  ;;  %3643 = vmatprep.mubr.msk.f32.mxu0 %vm329_vm1, %v4188_v28 }
  0x69   : > { %3430 = vmatmul.mubr.msk.f32.gmra.mrb[14].mxu1 %vm329_vm1, %v4293_v4  ;;  %3644 = vmatmul.mubr.msk.f32.vlgmr.msra.gmra.mrb[0].mxu0 %vm329_vm1, %v4191_v29 }
  0x6a   : > { %3432 = vmatprep.mubr.msk.f32.mxu1 %vm329_vm1, %v4335_v17  ;;  %3835 = vmatpush3.bf16.msra.mxu0 %v4441_v31  ;;  %v2901_v31 = vld [vmem:[%s5192_s1 + $0x70] sm:$0xff] }
  0x6b   : > { %3646 = vmatprep.mubr.msk.f32.mxu0 %vm329_vm1, %v4197_v33  ;;  %3837 = vmatprep.subr.bf16.mxu0 %v3836_v7 }
  0x6d   : > { %3433 = vmatmul.mubr.msk.f32.gmra.mrb[16].mxu1 %vm329_vm1, %v4338_v18  ;;  %3647 = vmatmul.mubr.msk.f32.gmra.mrb[2].mxu0 %vm329_vm1, %v4200_v34 }
  0x6e   : > { %3435 = vmatprep.mubr.msk.f32.mxu1 %vm329_vm1, %v4361_v35  ;;  %3649 = vmatprep.mubr.msk.f32.mxu0 %vm329_vm1, %v4221_v45 }
  0x6f   : > { %3839 = vmatpush3.bf16.msra.mxu0 %v3836_v7  ;;  %v3804_v7 = vpack.c.bf16 %v2902_v20, %v2901_v31  ;;  %v5261_v31 = vld [vmem:[#allocation10_spill] sm:$0xff]  ;;  %v5262_v20 = vld [vmem:[#allocation4_spill] sm:$0xff] }
  0x70   : > { %3841 = vmatprep.subr.bf16.mxu0 %v4695_v9 }
  0x71   : > { %3436 = vmatmul.mubr.msk.f32.gmra.mrb[18].mxu1 %vm329_vm1, %v4364_v36  ;;  %3650 = vmatmul.mubr.msk.f32.gmra.mrb[4].mxu0 %vm329_vm1, %v4224_v46 }
  0x72   : > { %3438 = vmatprep.mubr.msk.f32.mxu1 %vm329_vm1, %v4399_v52  ;;  %3652 = vmatprep.mubr.msk.f32.mxu0 %vm329_vm1, %v4245_v54 }
  0x75   : > { %3439 = vmatmul.mubr.msk.f32.gmra.mrb[20].mxu1 %vm329_vm1, %v4402_v58  ;;  %3653 = vmatmul.mubr.msk.f32.gmra.mrb[6].mxu0 %vm329_vm1, %v4248_v55 }
  0x76   : > { %3441 = vmatprep.mubr.msk.f32.mxu1 %vm329_vm1, %v4436_v24  ;;  %3655 = vmatprep.mubr.msk.f32.mxu0 %vm329_vm1, %v4268_v60 }
  0x79   : > { %3442 = vmatmul.mubr.msk.f32.gmra.mrb[22].mxu1 %vm329_vm1, %v4439_v25  ;;  %3656 = vmatmul.mubr.msk.f32.gmra.mrb[8].mxu0 %vm329_vm1, %v4271_v61 }
  0x7a   : > { %3444 = vmatprep.mubr.msk.f32.mxu1 %vm329_vm1, %v4468_v27  ;;  %3658 = vmatprep.mubr.msk.f32.mxu0 %vm329_vm1, %v4290_v2 }
  0x7d   : > { %3445 = vmatmul.mubr.msk.f32.gmra.mrb[24].mxu1 %vm329_vm1, %v4471_v8  ;;  %3659 = vmatmul.mubr.msk.f32.gmra.mrb[10].mxu0 %vm329_vm1, %v4293_v4 }
  0x7e   : > { %3455 = vmatprep.mubr.msk.f32.mxu1 %vm329_vm1, %v4377_v39  ;;  %3661 = vmatprep.mubr.msk.f32.mxu0 %vm329_vm1, %v4335_v17  ;;  %v3052_v39 = vld [vmem:[%s5192_s1 + $0x118] sm:$0xff] }
  0x81   : > { %3456 = vmatmul.mubr.msk.f32.vlgmr.msra.gmra.mrb[0].mxu1 %vm329_vm1, %v890_v32  ;;  %3662 = vmatmul.mubr.msk.f32.gmra.mrb[12].mxu0 %vm329_vm1, %v4338_v18  ;;  %v5264_v32 = vld [vmem:[#allocation12_spill] sm:$0xff] }
  0x82   : > { %3458 = vmatprep.mubr.msk.f32.mxu1 %vm329_vm1, %v4356_v30  ;;  %3664 = vmatprep.mubr.msk.f32.mxu0 %vm329_vm1, %v4361_v35  ;;  %v3051_v30 = vld [vmem:[%s5192_s1 + $0x110] sm:$0xff] }
  0x83   : > { %3803 = vmatpush3.bf16.msra.mxu1 %v4584_v13  ;;  %v4800_v13 = vld [vmem:[%s4160_s20 + $0xe8] sm:$0xff] }
  0x84   : > { %3805 = vmatprep.subr.bf16.mxu1 %v3804_v7 }
  0x85   : > { %3459 = vmatmul.mubr.msk.f32.gmra.mrb[2].mxu1 %vm329_vm1, %v4386_v40  ;;  %3665 = vmatmul.mubr.msk.f32.gmra.mrb[14].mxu0 %vm329_vm1, %v4364_v36  ;;  %v3844_v40 = vpack.c.bf16 %v3052_v39, %v3051_v30  ;;  %v5266_v30 = vld [vmem:[#allocation13_spill] sm:$0xff]  ;;  %v5267_v39 = vld [vmem:[#allocation14_spill] sm:$0xff] }
  0x86   : > { %3461 = vmatprep.mubr.msk.f32.mxu1 %vm329_vm1, %v4394_v47  ;;  %3667 = vmatprep.mubr.msk.f32.mxu0 %vm329_vm1, %v4399_v52 }
  0x87   : > { %3807 = vmatpush3.bf16.msra.mxu1 %v3804_v7  ;;  %v5265_v7 = vld [vmem:[#allocation2_spill] sm:$0xff] }
  0x88   : > { %3848 = vmatprep.subr.bf16.mxu1 %v4120_v3 }
  0x89   : > { %3462 = vmatmul.mubr.msk.f32.gmra.mrb[4].mxu1 %vm329_vm1, %v4423_v6  ;;  %3668 = vmatmul.mubr.msk.f32.gmra.mrb[16].mxu0 %vm329_vm1, %v4402_v58 }
  0x8a   : > { %3464 = vmatprep.mubr.msk.f32.mxu1 %vm329_vm1, %v4431_v16  ;;  %3670 = vmatprep.mubr.msk.f32.mxu0 %vm329_vm1, %v4436_v24 }
  0x8d   : > { %3465 = vmatmul.mubr.msk.f32.gmra.mrb[6].mxu1 %vm329_vm1, %v4455_v37  ;;  %3671 = vmatmul.mubr.msk.f32.gmra.mrb[18].mxu0 %vm329_vm1, %v4439_v25 }
  0x8e   : > { %3467 = vmatprep.mubr.msk.f32.mxu1 %vm329_vm1, %v4463_v0  ;;  %3673 = vmatprep.mubr.msk.f32.mxu0 %vm329_vm1, %v4468_v27 }
  0x91   : > { %3468 = vmatmul.mubr.msk.f32.gmra.mrb[8].mxu1 %vm329_vm1, %v4486_v59  ;;  %3674 = vmatmul.mubr.msk.f32.gmra.mrb[20].mxu0 %vm329_vm1, %v4471_v8 }
  0x92   : > { %3470 = vmatprep.mubr.msk.f32.mxu1 %vm329_vm1, %v4494_v10  ;;  %3676 = vmatprep.mubr.msk.f32.mxu0 %vm329_vm1, %v4622_v26 }
  0x95   : > { %3471 = vmatmul.mubr.msk.f32.gmra.mrb[10].mxu1 %vm329_vm1, %v4510_v43  ;;  %3677 = vmatmul.mubr.msk.f32.gmra.mrb[22].mxu0 %vm329_vm1, %v4625_v22 }
  0x96   : > { %3473 = vmatprep.mubr.msk.f32.mxu1 %vm329_vm1, %v4516_v51  ;;  %3679 = vmatprep.mubr.msk.f32.mxu0 %vm329_vm1, %v4789_v21 }
  0x99   : > { %3474 = vmatmul.mubr.msk.f32.gmra.mrb[12].mxu1 %vm329_vm1, %v4532_v38  ;;  %3680 = vmatmul.mubr.msk.f32.gmra.mrb[24].mxu0 %vm329_vm1, %v4800_v13 }
  0x9a   : > { %3476 = vmatprep.mubr.msk.f32.mxu1 %vm329_vm1, %v4535_v1  ;;  %3690 = vmatprep.mubr.msk.f32.mxu0 %vm329_vm1, %v4212_v42  ;;  %v5253_v42 = vld [vmem:[#allocation5_spill] sm:$0xff] }
  0x9d   : > { %3477 = vmatmul.mubr.msk.f32.gmra.mrb[14].mxu1 %vm329_vm1, %v4554_v5  ;;  %3691 = vmatmul.mubr.msk.f32.vlgmr.msra.gmra.mrb[0].mxu0 %vm329_vm1, %v4234_v49  ;;  %v5254_v49 = vld [vmem:[#allocation6_spill] sm:$0xff] }
  0x9e   : > { %3479 = vmatprep.mubr.msk.f32.mxu1 %vm329_vm1, %v4557_v15  ;;  %3843 = vmatpush3.bf16.msra.mxu0 %v4695_v9  ;;  %v5260_v9 = vld [vmem:[#allocation3_spill] sm:$0xff] }
  0x9f   : > { %3693 = vmatprep.mubr.msk.f32.mxu0 %vm329_vm1, %v4237_v50  ;;  %3845 = vmatprep.subr.bf16.mxu0 %v3844_v40  ;;  %v5255_v50 = vld [vmem:[#allocation7_spill] sm:$0xff] }
  0xa1   : > { %3480 = vmatmul.mubr.msk.f32.gmra.mrb[16].mxu1 %vm329_vm1, %v4577_v44  ;;  %3694 = vmatmul.mubr.msk.f32.gmra.mrb[2].mxu0 %vm329_vm1, %v4257_v56  ;;  %v5256_v56 = vld [vmem:[#allocation20_spill] sm:$0xff] }
  0xa2   : > { %3482 = vmatprep.mubr.msk.f32.mxu1 %vm329_vm1, %v4580_v23  ;;  %3696 = vmatprep.mubr.msk.f32.mxu0 %vm329_vm1, %v4260_v57  ;;  %v5257_v57 = vld [vmem:[#allocation8_spill] sm:$0xff] }
  0xa3   : > { %3847 = vmatpush3.bf16.msra.mxu0 %v3844_v40  ;;  %v5270_v40 = vld [vmem:[#allocation17_spill] sm:$0xff] }
  0xa5   : > { %3483 = vmatmul.mubr.msk.f32.gmra.mrb[18].mxu1 %vm329_vm1, %v4595_v12  ;;  %3697 = vmatmul.mubr.msk.f32.gmra.mrb[4].mxu0 %vm329_vm1, %v4280_v62  ;;  %v5258_v62 = vld [vmem:[#allocation21_spill] sm:$0xff] }
  0xa6   : > { %3485 = vmatprep.mubr.msk.f32.mxu1 %vm329_vm1, %v4598_v53  ;;  %3699 = vmatprep.mubr.msk.f32.mxu0 %vm329_vm1, %v4283_v63  ;;  %v5259_v63 = vld [vmem:[#allocation9_spill] sm:$0xff] }
  0xa9   : > { %3486 = vmatmul.mubr.msk.f32.gmra.mrb[20].mxu1 %vm329_vm1, %v4612_v19  ;;  %3700 = vmatmul.mubr.msk.f32.gmra.mrb[6].mxu0 %vm329_vm1, %v5253_v42  ;;  %v2131_v42 = vrot.slane %v4800_v13, 1 }
  0xaa   : > { %3488 = vmatprep.mubr.msk.f32.mxu1 %vm329_vm1, %v4615_v11  ;;  %3702 = vmatprep.mubr.msk.f32.mxu0 %vm329_vm1, %v5254_v49 }
  0xad   : > { %3489 = vmatmul.mubr.msk.f32.gmra.mrb[22].mxu1 %vm329_vm1, %v4634_v14  ;;  %3703 = vmatmul.mubr.msk.f32.gmra.mrb[8].mxu0 %vm329_vm1, %v5255_v50  ;;  %v5272_v50 = vld [vmem:[#allocation19_spill] sm:$0xff] }
  0xae   : > { %3491 = vmatprep.mubr.msk.f32.mxu1 %vm329_vm1, %v5256_v56  ;;  %3705 = vmatprep.mubr.msk.f32.mxu0 %vm329_vm1, %v5257_v57 }
  0xb1   : > { %3492 = vmatmul.mubr.msk.f32.gmra.mrb[24].mxu1 %vm329_vm1, %v5258_v62  ;;  %3706 = vmatmul.mubr.msk.f32.gmra.mrb[10].mxu0 %vm329_vm1, %v5259_v63 }
  0xb2   : > { %3502 = vmatprep.mubr.msk.f32.mxu1 %vm329_vm1, %v5260_v9  ;;  %3708 = vmatprep.mubr.msk.f32.mxu0 %vm329_vm1, %v5261_v31 }
  0xb5   : > { %3503 = vmatmul.mubr.msk.f32.vlgmr.msra.gmra.mrb[0].mxu1 %vm329_vm1, %v5262_v20  ;;  %3709 = vmatmul.mubr.msk.f32.gmra.mrb[12].mxu0 %vm329_vm1, %v5263_v41 }
  0xb6   : > { %3505 = vmatprep.mubr.msk.f32.mxu1 %vm329_vm1, %v4188_v28  ;;  %3711 = vmatprep.mubr.msk.f32.mxu0 %vm329_vm1, %v5264_v32  ;;  %v5269_v28 = vld [vmem:[#allocation16_spill] sm:$0xff] }
  0xb7   : > { %3850 = vmatpush3.bf16.msra.mxu1 %v4120_v3  ;;  %v5268_v3 = vld [vmem:[#allocation15_spill] sm:$0xff] }
  0xb8   : > { %3849 = vmatprep.subr.bf16.mxu1 %v5265_v7 }
  0xb9   : > { %3506 = vmatmul.mubr.msk.f32.gmra.mrb[2].mxu1 %vm329_vm1, %v4191_v29  ;;  %3712 = vmatmul.mubr.msk.f32.gmra.mrb[14].mxu0 %vm329_vm1, %v5266_v30  ;;  %v1426_v29 = vrot.slane %v4622_v26, 1 }
  0xba   : > { %3508 = vmatprep.mubr.msk.f32.mxu1 %vm329_vm1, %v4197_v33  ;;  %3714 = vmatprep.mubr.msk.f32.mxu0 %vm329_vm1, %v5267_v39  ;;  %v1427_v33 = vrot.slane %v4625_v22, 1 }
  0xbb   : > { %3851 = vmatpush3.bf16.msra.mxu1 %v5265_v7 }
  0xbc   : > { %v1428_v49 = vsel %vm258_vm0, %v1426_v29, %v1427_v33 }
  0xbd   : > { %3509 = vmatmul.mubr.msk.f32.gmra.mrb[4].mxu1 %vm329_vm1, %v4200_v34  ;;  %3715 = vmatmul.mubr.msk.f32.gmra.mrb[16].mxu0 %vm329_vm1, %v5268_v3  ;;  %v5271_v34 = vld [vmem:[#allocation18_spill] sm:$0xff] }
  0xbe   : > { %3511 = vmatprep.mubr.msk.f32.mxu1 %vm329_vm1, %v4221_v45  ;;  %3717 = vmatprep.mubr.msk.f32.mxu0 %vm329_vm1, %v5269_v28  ;;  %v2130_v45 = vrot.slane %v4789_v21, 1 }
  0xc1   : > { %3512 = vmatmul.mubr.msk.f32.gmra.mrb[6].mxu1 %vm329_vm1, %v4224_v46  ;;  %3718 = vmatmul.mubr.msk.f32.gmra.mrb[18].mxu0 %vm329_vm1, %v5270_v40  ;;  %v1430_v46 = vsel %vm258_vm0, %v1427_v33, 0.0 }
  0xc2   : > { %3514 = vmatprep.mubr.msk.f32.mxu1 %vm329_vm1, %v4245_v54  ;;  %3720 = vmatprep.mubr.msk.f32.mxu0 %vm329_vm1, %v5271_v34  ;;  %v2132_v54 = vsel %vm258_vm0, %v2130_v45, %v2131_v42 }
  0xc5   : > { %3515 = vmatmul.mubr.msk.f32.gmra.mrb[8].mxu1 %vm329_vm1, %v4248_v55  ;;  %3721 = vmatmul.mubr.msk.f32.gmra.mrb[20].mxu0 %vm329_vm1, %v5272_v50  ;;  %v2134_v55 = vsel %vm258_vm0, %v2131_v42, 0.0 }
  0xc6   : > { %3517 = vmatprep.mubr.msk.f32.mxu1 %vm329_vm1, %v4268_v60  ;;  %3723 = vmatprep.mubr.msk.f32.mxu0 %vm329_vm1, %v1428_v49 }
  0xc9   : > { %3518 = vmatmul.mubr.msk.f32.gmra.mrb[10].mxu1 %vm329_vm1, %v4271_v61  ;;  %3724 = vmatmul.mubr.msk.f32.gmra.mrb[22].mxu0 %vm329_vm1, %v1430_v46 }
  0xca   : > { %3520 = vmatprep.mubr.msk.f32.mxu1 %vm329_vm1, %v4290_v2  ;;  %3726 = vmatprep.mubr.msk.f32.mxu0 %vm329_vm1, %v2132_v54 }
  0xcd   : > { %3521 = vmatmul.mubr.msk.f32.gmra.mrb[12].mxu1 %vm329_vm1, %v4293_v4  ;;  %3727 = vmatmul.mubr.msk.f32.gmra.mrb[24].mxu0 %vm329_vm1, %v2134_v55 }
  0xce   : > { %3523 = vmatprep.mubr.msk.f32.mxu1 %vm329_vm1, %v4335_v17  ;;  %3737 = vmatprep.mubr.msk.f32.mxu0 %vm329_vm1, %v4394_v47 }
  0xd1   : > { %3524 = vmatmul.mubr.msk.f32.gmra.mrb[14].mxu1 %vm329_vm1, %v4338_v18  ;;  %3738 = vmatmul.mubr.msk.f32.vlgmr.msra.gmra.mrb[0].mxu0 %vm329_vm1, %v4423_v6 }
  0xd2   : > { %3526 = vmatprep.mubr.msk.f32.mxu1 %vm329_vm1, %v4361_v35  ;;  %3740 = vmatprep.mubr.msk.f32.mxu0 %vm329_vm1, %v4431_v16  ;;  %v2694_v16 = vlaneseq }
  0xd5   : > { %3527 = vmatmul.mubr.msk.f32.gmra.mrb[16].mxu1 %vm329_vm1, %v4364_v36  ;;  %3741 = vmatmul.mubr.msk.f32.gmra.mrb[2].mxu0 %vm329_vm1, %v4455_v37  ;;  %v2695_v37 = vshrl.u32 %v2694_v16, 7 }
  0xd6   : > { %3529 = vmatprep.mubr.msk.f32.mxu1 %vm329_vm1, %v4399_v52  ;;  %3743 = vmatprep.mubr.msk.f32.mxu0 %vm329_vm1, %v4463_v0 }
  0xd9   : > { %3530 = vmatmul.mubr.msk.f32.gmra.mrb[18].mxu1 %vm329_vm1, %v4402_v58  ;;  %3744 = vmatmul.mubr.msk.f32.gmra.mrb[4].mxu0 %vm329_vm1, %v4486_v59 }
  0xda   : > { %3532 = vmatprep.mubr.msk.f32.mxu1 %vm329_vm1, %v4436_v24  ;;  %3746 = vmatprep.mubr.msk.f32.mxu0 %vm329_vm1, %v4494_v10 }
  0xdd   : > { %3533 = vmatmul.mubr.msk.f32.gmra.mrb[20].mxu1 %vm329_vm1, %v4439_v25  ;;  %3747 = vmatmul.mubr.msk.f32.gmra.mrb[6].mxu0 %vm329_vm1, %v4510_v43 }
  0xde   : > { %3535 = vmatprep.mubr.msk.f32.mxu1 %vm329_vm1, %v4468_v27  ;;  %3749 = vmatprep.mubr.msk.f32.mxu0 %vm329_vm1, %v4516_v51  ;;  %v5037_v51 = vld [vmem:[%s5193_s2] ss:$0 sm:$0xff] }
  0xe1   : > { %3536 = vmatmul.mubr.msk.f32.gmra.mrb[22].mxu1 %vm329_vm1, %v4471_v8  ;;  %3750 = vmatmul.mubr.msk.f32.gmra.mrb[8].mxu0 %vm329_vm1, %v4532_v38  ;;  %v2366_v8 = vrot.slane %v4789_v21, 2  ;;  %v5042_v38 = vld [vmem:[%s5194_s3] ss:$0 sm:$0xff] }
  0xe2   : > { %3538 = vmatprep.mubr.msk.f32.mxu1 %vm329_vm1, %v4622_v26  ;;  %3752 = vmatprep.mubr.msk.f32.mxu0 %vm329_vm1, %v4535_v1  ;;  %v5273_v26 = vld [vmem:[#allocation22_spill] sm:$0xff]  ;;  %v5044_v1 = vadd.s32 8, %v2695_v37 }
  0xe4   : > { %vm2698_vm3 = vcmp.lt.s32.totalorder %v5044_v1, 13 }
  0xe5   : > { %3539 = vmatmul.mubr.msk.f32.gmra.mrb[24].mxu1 %vm329_vm1, %v4625_v22  ;;  %3753 = vmatmul.mubr.msk.f32.gmra.mrb[10].mxu0 %vm329_vm1, %v4554_v5  ;;  %v2367_v22 = vrot.slane %v4800_v13, 2 }
  0xe6   : > { %3570 = vmatprep.mubr.msk.f32.mxu1 %vm329_vm1, %v5261_v31  ;;  %3755 = vmatprep.mubr.msk.f32.mxu0 %vm329_vm1, %v4557_v15 }
  0xe7   : > { %v2368_v60 = vsel %vm837_vm2, %v2366_v8, %v2367_v22  ;;  %v2370_v61 = vsel %vm837_vm2, %v2367_v22, 0.0 }
  0xe9   : > { %3571 = vmatmul.mubr.msk.f32.vlgmr.msra.gmra.mrb[14].mxu1 %vm329_vm1, %v5263_v41  ;;  %3756 = vmatmul.mubr.msk.f32.gmra.mrb[12].mxu0 %vm329_vm1, %v4577_v44 }
  0xea   : > { %3573 = vmatprep.mubr.msk.f32.mxu1 %vm329_vm1, %v5264_v32  ;;  %3758 = vmatprep.mubr.msk.f32.mxu0 %vm329_vm1, %v4580_v23 }
  0xed   : > { %3574 = vmatmul.mubr.msk.f32.gmra.mrb[16].mxu1 %vm329_vm1, %v5266_v30  ;;  %3759 = vmatmul.mubr.msk.f32.gmra.mrb[14].mxu0 %vm329_vm1, %v4595_v12 }
  0xee   : > { %3576 = vmatprep.mubr.msk.f32.mxu1 %vm329_vm1, %v5267_v39  ;;  %3761 = vmatprep.mubr.msk.f32.mxu0 %vm329_vm1, %v4598_v53 }
  0xf1   : > { %3577 = vmatmul.mubr.msk.f32.gmra.mrb[18].mxu1 %vm329_vm1, %v5268_v3  ;;  %3762 = vmatmul.mubr.msk.f32.gmra.mrb[16].mxu0 %vm329_vm1, %v4612_v19 }
  0xf2   : > { %3579 = vmatprep.mubr.msk.f32.mxu1 %vm329_vm1, %v5269_v28  ;;  %3764 = vmatprep.mubr.msk.f32.mxu0 %vm329_vm1, %v4615_v11 }
  0xf5   : > { %3580 = vmatmul.mubr.msk.f32.gmra.mrb[20].mxu1 %vm329_vm1, %v5270_v40  ;;  %3765 = vmatmul.mubr.msk.f32.gmra.mrb[18].mxu0 %vm329_vm1, %v4634_v14 }
  0xf6   : > { %3582 = vmatprep.mubr.msk.f32.mxu1 %vm329_vm1, %v5271_v34  ;;  %3767 = vmatprep.mubr.msk.f32.mxu0 %vm329_vm1, %v5256_v56 }
  0xf9   : > { %3583 = vmatmul.mubr.msk.f32.gmra.mrb[22].mxu1 %vm329_vm1, %v5272_v50  ;;  %3768 = vmatmul.mubr.msk.f32.gmra.mrb[20].mxu0 %vm329_vm1, %v5258_v62 }
  0xfa   : > { %3585 = vmatprep.mubr.msk.f32.mxu1 %vm329_vm1, %v1428_v49  ;;  %3770 = vmatprep.mubr.msk.f32.mxu0 %vm329_vm1, %v5273_v26 }
  0xfd   : > { %3586 = vmatmul.mubr.msk.f32.gmra.mrb[24].mxu1 %vm329_vm1, %v1430_v46  ;;  %3771 = vmatmul.mubr.msk.f32.gmra.mrb[22].mxu0 %vm329_vm1, %v4664_v48 }
  0xfe   : > { %3773 = vmatprep.mubr.msk.f32.mxu0 %vm329_vm1, %v2368_v60 }
 0x101   : > { %3774 = vmatmul.mubr.msk.f32.gmra.mrb[24].mxu0 %vm329_vm1, %v2370_v61 }
 0x188   : > { %v3504_v2 = vpop.f32.mrb[0].mxu1 }
 0x189   : > { %v1271_v4 = vpop.f32.mrb[1].mxu1 }
 0x18c   : > { %v3507_v17 = vpop.f32.mrb[2].mxu1 }
 0x18d   : > { %v1281_v18 = vpop.f32.mrb[3].mxu1 }
 0x190   : > { %v3510_v27 = vpop.f32.mrb[4].mxu1 }
 0x191   : > { %v1291_v35 = vpop.f32.mrb[5].mxu1 }
 0x194   : > { %v3513_v36 = vpop.f32.mrb[6].mxu1 }
 0x195   : > { %v1301_v47 = vpop.f32.mrb[7].mxu1 }
 0x198   : > { %v3516_v52 = vpop.f32.mrb[8].mxu1 }
 0x199   : > { %v5024_v58 = vpop.f32.mrb[9].mxu1 }
 0x19c   : > { %v5026_v6 = vpop.f32.mrb[10].mxu1 }
 0x19d   : > { %v5028_v10 = vpop.f32.mrb[11].mxu1 }
 0x1a0   : > { %v5030_v24 = vpop.f32.mrb[12].mxu1 }
 0x1a1   : > { %v5032_v25 = vpop.f32.mrb[13].mxu1 }
 0x1a4   : > { %v3739_v0 = vpop.f32.mrb[0].mxu0 }
 0x1a5   : > { %v3852_v59 = vadd.f32 %v3739_v0, %v3504_v2  ;;  %v2447_v43 = vpop.f32.mrb[1].mxu0 }
 0x1a6   : > { %v3853_v5 = vadd.f32 %v2447_v43, %v1271_v4 }
 0x1a7   : > { %v2610_v15 = vmul.f32 %v3852_v59, %v5037_v51 }
 0x1a8   : > { %v2609_v44 = vmul.f32 %v3853_v5, %v5037_v51  ;;  %v3742_v23 = vpop.f32.mrb[2].mxu0 }
 0x1a9   : > { %v2643_v12 = vadd.f32 %v5042_v38, %v2610_v15  ;;  %v3854_v53 = vadd.f32 %v3742_v23, %v3507_v17  ;;  %v2457_v19 = vpop.f32.mrb[3].mxu0 }
 0x1aa   : > { %v2642_v11 = vadd.f32 %v5042_v38, %v2609_v44  ;;  %v3855_v14 = vadd.f32 %v2457_v19, %v1281_v18 }
 0x1ab   : > { %v2669_v48 = vmax.f32 %v2643_v12, 0.0  ;;  %v2612_v21 = vmul.f32 %v3854_v53, %v5037_v51 }
 0x1ac   : > { %v2668_v13 = vmax.f32 %v2642_v11, 0.0  ;;  %v2611_v56 = vmul.f32 %v3855_v14, %v5037_v51  ;;  %v3745_v57 = vpop.f32.mrb[4].mxu0 }
 0x1ad   : > { %v2700_v62 = vsel %vm2698_vm3, %v2669_v48, 0.0  ;;  %v2645_v63 = vadd.f32 %v5042_v38, %v2612_v21  ;;  %v3856_v9 = vadd.f32 %v3745_v57, %v3510_v27  ;;  %v2467_v31 = vpop.f32.mrb[5].mxu0 }
 0x1ae   : > { %2726 = vst.msk [vmem:[%s5055_s29 + $0x8] sm:$0xff] %vm329_vm1, %v2700_v62  ;;  %2725 = vst.msk [vmem:[%s5055_s29] sm:$0xff] %vm329_vm1, %v2668_v13  ;;  %v2644_v20 = vadd.f32 %v5042_v38, %v2611_v56  ;;  %v3857_v41 = vadd.f32 %v2467_v31, %v1291_v35 }
 0x1af   : > { %v2671_v32 = vmax.f32 %v2645_v63, 0.0  ;;  %v2614_v7 = vmul.f32 %v3856_v9, %v5037_v51 }
 0x1b0   : > { %v2670_v30 = vmax.f32 %v2644_v20, 0.0  ;;  %v2613_v39 = vmul.f32 %v3857_v41, %v5037_v51  ;;  %v3748_v3 = vpop.f32.mrb[6].mxu0 }
 0x1b1   : > { %v2702_v28 = vsel %vm2698_vm3, %v2671_v32, 0.0  ;;  %v2647_v29 = vadd.f32 %v5042_v38, %v2614_v7  ;;  %v3858_v33 = vadd.f32 %v3748_v3, %v3513_v36  ;;  %v2477_v40 = vpop.f32.mrb[7].mxu0 }
 0x1b2   : > { %2728 = vst.msk [vmem:[%s5055_s29 + $0x18] sm:$0xff] %vm329_vm1, %v2702_v28  ;;  %2727 = vst.msk [vmem:[%s5055_s29 + $0x10] sm:$0xff] %vm329_vm1, %v2670_v30  ;;  %v2646_v34 = vadd.f32 %v5042_v38, %v2613_v39  ;;  %v3859_v45 = vadd.f32 %v2477_v40, %v1301_v47 }
 0x1b3   : > { %v2673_v42 = vmax.f32 %v2647_v29, 0.0  ;;  %v2616_v49 = vmul.f32 %v3858_v33, %v5037_v51 }
 0x1b4   : > { %v2672_v50 = vmax.f32 %v2646_v34, 0.0  ;;  %v2615_v46 = vmul.f32 %v3859_v45, %v5037_v51  ;;  %v3751_v54 = vpop.f32.mrb[8].mxu0 }
 0x1b5   : > { %v2704_v55 = vsel %vm2698_vm3, %v2673_v42, 0.0  ;;  %v2649_v8 = vadd.f32 %v5042_v38, %v2616_v49  ;;  %v3860_v22 = vadd.f32 %v3751_v54, %v3516_v52  ;;  %v2487_v26 = vpop.f32.mrb[9].mxu0 }
 0x1b6   : > { %2730 = vst.msk [vmem:[%s5055_s29 + $0x28] sm:$0xff] %vm329_vm1, %v2704_v55  ;;  %2729 = vst.msk [vmem:[%s5055_s29 + $0x20] sm:$0xff] %vm329_vm1, %v2672_v50  ;;  %v2648_v60 = vadd.f32 %v5042_v38, %v2615_v46  ;;  %v3861_v61 = vadd.f32 %v2487_v26, %v5024_v58 }
 0x1b7   : > { %v2675_v2 = vmax.f32 %v2649_v8, 0.0  ;;  %v2618_v4 = vmul.f32 %v3860_v22, %v5037_v51 }
 0x1b8   : > { %v2674_v17 = vmax.f32 %v2648_v60, 0.0  ;;  %v2617_v18 = vmul.f32 %v3861_v61, %v5037_v51  ;;  %v3754_v27 = vpop.f32.mrb[10].mxu0 }
 0x1b9   : > { %v2706_v35 = vsel %vm2698_vm3, %v2675_v2, 0.0  ;;  %v2651_v36 = vadd.f32 %v5042_v38, %v2618_v4  ;;  %v3862_v47 = vadd.f32 %v3754_v27, %v5026_v6  ;;  %v2497_v52 = vpop.f32.mrb[11].mxu0 }
 0x1ba   : > { %2732 = vst.msk [vmem:[%s5055_s29 + $0x38] sm:$0xff] %vm329_vm1, %v2706_v35  ;;  %2731 = vst.msk [vmem:[%s5055_s29 + $0x30] sm:$0xff] %vm329_vm1, %v2674_v17  ;;  %v2650_v58 = vadd.f32 %v5042_v38, %v2617_v18  ;;  %v3863_v16 = vadd.f32 %v2497_v52, %v5028_v10 }
 0x1bb   : > { %v2677_v37 = vmax.f32 %v2651_v36, 0.0  ;;  %v2620_v0 = vmul.f32 %v3862_v47, %v5037_v51 }
 0x1bc   : > { %v3572_v59 = vpop.f32.mrb[14].mxu1  ;;  %v2676_v43 = vmax.f32 %v2650_v58, 0.0  ;;  %v2619_v5 = vmul.f32 %v3863_v16, %v5037_v51  ;;  %v3757_v15 = vpop.f32.mrb[12].mxu0 }
 0x1bd   : > { %v1577_v6 = vpop.f32.mrb[15].mxu1  ;;  %v2708_v44 = vsel %vm2698_vm3, %v2677_v37, 0.0  ;;  %v2653_v23 = vadd.f32 %v5042_v38, %v2620_v0  ;;  %v3864_v12 = vadd.f32 %v3757_v15, %v5030_v24  ;;  %v2507_v53 = vpop.f32.mrb[13].mxu0 }
 0x1be   : > { %2734 = vst.msk [vmem:[%s5055_s29 + $0x48] sm:$0xff] %vm329_vm1, %v2708_v44  ;;  %2733 = vst.msk [vmem:[%s5055_s29 + $0x40] sm:$0xff] %vm329_vm1, %v2676_v43  ;;  %v2652_v10 = vadd.f32 %v5042_v38, %v2619_v5  ;;  %v3865_v19 = vadd.f32 %v2507_v53, %v5032_v25 }
 0x1bf   : > { %v2679_v11 = vmax.f32 %v2653_v23, 0.0  ;;  %v2622_v14 = vmul.f32 %v3864_v12, %v5037_v51 }
 0x1c0   : > { %v3575_v48 = vpop.f32.mrb[16].mxu1  ;;  %v2678_v21 = vmax.f32 %v2652_v10, 0.0  ;;  %v2621_v13 = vmul.f32 %v3865_v19, %v5037_v51  ;;  %v3760_v56 = vpop.f32.mrb[14].mxu0 }
 0x1c1   : > { %v1587_v24 = vpop.f32.mrb[17].mxu1  ;;  %v2710_v57 = vsel %vm2698_vm3, %v2679_v11, 0.0  ;;  %v2655_v62 = vadd.f32 %v5042_v38, %v2622_v14  ;;  %v3866_v63 = vadd.f32 %v3760_v56, %v3572_v59  ;;  %v2517_v9 = vpop.f32.mrb[15].mxu0 }
 0x1c2   : > { %2736 = vst.msk [vmem:[%s5055_s29 + $0x58] sm:$0xff] %vm329_vm1, %v2710_v57  ;;  %2735 = vst.msk [vmem:[%s5055_s29 + $0x50] sm:$0xff] %vm329_vm1, %v2678_v21  ;;  %v2654_v25 = vadd.f32 %v5042_v38, %v2621_v13  ;;  %v3867_v31 = vadd.f32 %v2517_v9, %v1577_v6 }
 0x1c3   : > { %v2681_v20 = vmax.f32 %v2655_v62, 0.0  ;;  %v2624_v41 = vmul.f32 %v3866_v63, %v5037_v51 }
 0x1c4   : > { %v3578_v32 = vpop.f32.mrb[18].mxu1  ;;  %v2680_v7 = vmax.f32 %v2654_v25, 0.0  ;;  %v2623_v30 = vmul.f32 %v3867_v31, %v5037_v51  ;;  %v3763_v39 = vpop.f32.mrb[16].mxu0 }
 0x1c5   : > { %v1597_v3 = vpop.f32.mrb[19].mxu1  ;;  %v2712_v28 = vsel %vm2698_vm3, %v2681_v20, 0.0  ;;  %v2657_v29 = vadd.f32 %v5042_v38, %v2624_v41  ;;  %v3868_v33 = vadd.f32 %v3763_v39, %v3575_v48  ;;  %v2527_v40 = vpop.f32.mrb[17].mxu0 }
 0x1c6   : > { %2738 = vst.msk [vmem:[%s5055_s29 + $0x68] sm:$0xff] %vm329_vm1, %v2712_v28  ;;  %2737 = vst.msk [vmem:[%s5055_s29 + $0x60] sm:$0xff] %vm329_vm1, %v2680_v7  ;;  %v2656_v34 = vadd.f32 %v5042_v38, %v2623_v30  ;;  %v3869_v45 = vadd.f32 %v2527_v40, %v1587_v24 }
 0x1c7   : > { %v2683_v42 = vmax.f32 %v2657_v29, 0.0  ;;  %v2626_v49 = vmul.f32 %v3868_v33, %v5037_v51 }
 0x1c8   : > { %v3581_v50 = vpop.f32.mrb[20].mxu1  ;;  %v2682_v46 = vmax.f32 %v2656_v34, 0.0  ;;  %v2625_v54 = vmul.f32 %v3869_v45, %v5037_v51  ;;  %v3766_v55 = vpop.f32.mrb[18].mxu0 }
 0x1c9   : > { %v1607_v8 = vpop.f32.mrb[21].mxu1  ;;  %v2714_v22 = vsel %vm2698_vm3, %v2683_v42, 0.0  ;;  %v2659_v26 = vadd.f32 %v5042_v38, %v2626_v49  ;;  %v3870_v60 = vadd.f32 %v3766_v55, %v3578_v32  ;;  %v2537_v61 = vpop.f32.mrb[19].mxu0 }
 0x1ca   : > { %2740 = vst.msk [vmem:[%s5055_s29 + $0x78] sm:$0xff] %vm329_vm1, %v2714_v22  ;;  %2739 = vst.msk [vmem:[%s5055_s29 + $0x70] sm:$0xff] %vm329_vm1, %v2682_v46  ;;  %v2658_v2 = vadd.f32 %v5042_v38, %v2625_v54  ;;  %v3871_v4 = vadd.f32 %v2537_v61, %v1597_v3 }
 0x1cb   : > { %v2685_v17 = vmax.f32 %v2659_v26, 0.0  ;;  %v2628_v18 = vmul.f32 %v3870_v60, %v5037_v51 }
 0x1cc   : > { %v3584_v27 = vpop.f32.mrb[22].mxu1  ;;  %v2684_v35 = vmax.f32 %v2658_v2, 0.0  ;;  %v2627_v36 = vmul.f32 %v3871_v4, %v5037_v51  ;;  %v3769_v47 = vpop.f32.mrb[20].mxu0 }
 0x1cd   : > { %v1617_v52 = vpop.f32.mrb[23].mxu1  ;;  %v2716_v58 = vsel %vm2698_vm3, %v2685_v17, 0.0  ;;  %v2661_v16 = vadd.f32 %v5042_v38, %v2628_v18  ;;  %v3872_v37 = vadd.f32 %v3769_v47, %v3581_v50  ;;  %v2547_v0 = vpop.f32.mrb[21].mxu0 }
 0x1ce   : > { %2742 = vst.msk [vmem:[%s5055_s29 + $0x88] sm:$0xff] %vm329_vm1, %v2716_v58  ;;  %2741 = vst.msk [vmem:[%s5055_s29 + $0x80] sm:$0xff] %vm329_vm1, %v2684_v35  ;;  %v2660_v59 = vadd.f32 %v5042_v38, %v2627_v36  ;;  %v3873_v43 = vadd.f32 %v2547_v0, %v1607_v8 }
 0x1cf   : > { %v2687_v5 = vmax.f32 %v2661_v16, 0.0  ;;  %v2630_v15 = vmul.f32 %v3872_v37, %v5037_v51 }
 0x1d0   : > { %v3587_v6 = vpop.f32.mrb[24].mxu1  ;;  %v2686_v44 = vmax.f32 %v2660_v59, 0.0  ;;  %v2629_v23 = vmul.f32 %v3873_v43, %v5037_v51  ;;  %v3772_v12 = vpop.f32.mrb[22].mxu0 }
 0x1d1   : > { %v1627_v53 = vpop.f32.mrb[25].mxu1  ;;  %v2718_v10 = vsel %vm2698_vm3, %v2687_v5, 0.0  ;;  %v2663_v19 = vadd.f32 %v5042_v38, %v2630_v15  ;;  %v3874_v11 = vadd.f32 %v3772_v12, %v3584_v27  ;;  %v2557_v14 = vpop.f32.mrb[23].mxu0 }
 0x1d2   : > { %2744 = vst.msk [vmem:[%s5055_s29 + $0x98] sm:$0xff] %vm329_vm1, %v2718_v10  ;;  %2743 = vst.msk [vmem:[%s5055_s29 + $0x90] sm:$0xff] %vm329_vm1, %v2686_v44  ;;  %v2662_v48 = vadd.f32 %v5042_v38, %v2629_v23  ;;  %v3875_v21 = vadd.f32 %v2557_v14, %v1617_v52 }
 0x1d3   : > { %v2689_v13 = vmax.f32 %v2663_v19, 0.0  ;;  %v2632_v56 = vmul.f32 %v3874_v11, %v5037_v51 }
 0x1d4   : > { %v2688_v24 = vmax.f32 %v2662_v48, 0.0  ;;  %v2631_v57 = vmul.f32 %v3875_v21, %v5037_v51  ;;  %v3775_v62 = vpop.f32.mrb[24].mxu0 }
 0x1d5   : > { %v2720_v63 = vsel %vm2698_vm3, %v2689_v13, 0.0  ;;  %v2665_v9 = vadd.f32 %v5042_v38, %v2632_v56  ;;  %v3876_v25 = vadd.f32 %v3775_v62, %v3587_v6  ;;  %v2567_v31 = vpop.f32.mrb[25].mxu0 }
 0x1d6   : > { %2746 = vst.msk [vmem:[%s5055_s29 + $0xa8] sm:$0xff] %vm329_vm1, %v2720_v63  ;;  %2745 = vst.msk [vmem:[%s5055_s29 + $0xa0] sm:$0xff] %vm329_vm1, %v2688_v24  ;;  %v2664_v20 = vadd.f32 %v5042_v38, %v2631_v57  ;;  %v3877_v41 = vadd.f32 %v2567_v31, %v1627_v53 }
 0x1d7   : > { %v2691_v32 = vmax.f32 %v2665_v9, 0.0  ;;  %v2634_v7 = vmul.f32 %v3876_v25, %v5037_v51 }
 0x1d8   : > { %v2690_v30 = vmax.f32 %v2664_v20, 0.0  ;;  %v2633_v39 = vmul.f32 %v3877_v41, %v5037_v51 }
 0x1d9   : > { %v2722_v3 = vsel %vm2698_vm3, %v2691_v32, 0.0  ;;  %v2667_v28 = vadd.f32 %v5042_v38, %v2634_v7 }
 0x1da   : > { %2748 = vst.msk [vmem:[%s5055_s29 + $0xb8] sm:$0xff] %vm329_vm1, %v2722_v3  ;;  %2747 = vst.msk [vmem:[%s5055_s29 + $0xb0] sm:$0xff] %vm329_vm1, %v2690_v30  ;;  %v2666_v29 = vadd.f32 %v5042_v38, %v2633_v39 }
 0x1db   : > { %v2693_v33 = vmax.f32 %v2667_v28, 0.0 }
 0x1dc   : > { %v2692_v40 = vmax.f32 %v2666_v29, 0.0 }
 0x1dd   : > { %v2724_v34 = vsel %vm2698_vm3, %v2693_v33, 0.0 }
 0x1de   : > { %2750 = vst.msk [vmem:[%s5055_s29 + $0xc8] sm:$0xff] %vm329_vm1, %v2724_v34  ;;  %2749 = vst.msk [vmem:[%s5055_s29 + $0xc0] sm:$0xff] %vm329_vm1, %v2692_v40 }
 0x1df PF: > { %s14_s15 = sadd.s32 1, %s4076_s15  }
 0x1e0   : > { %p11_p4 = scmp.ge.s32.totalorder %s14_s15, 4  }
 0x1e2   :  { %13 = sbr.rel (!%p11_p4) target bundleno = 1 (0x1), region = 74 }

// kernel: inception_v3_forward.8
= control target key start
LH: loop header
LB: loop body
LE: loop exit
PB: predicated region body
PF: predicated region fallthrough
CT: control target
= control target key end

     0   :  { %s4104_s15 = smov 0   ;;  %s5192_s0 = inlined_call_operand.vmem [shape: f32[2,15,16,32], index: 0, kind: input, shape index: {}]   ;;  %s5193_s1 = inlined_call_operand.vmem [shape: f32[9,32,64], index: 1, kind: input, shape index: {}]   ;;  %s5194_s2 = inlined_call_operand.vmem [shape: f32[1,64], index: 2, kind: input, shape index: {}]   ;;  %s5195_s3 = inlined_call_operand.vmem [shape: f32[1,64], index: 3, kind: input, shape index: {}]   ;;  %s5196_s4 = inlined_call_operand.vmem [shape: f32[2,13,16,64], index: 4, kind: output, shape index: {}]  }
   0x1 LB: > { %s2807_s16 = sadd.s32 4294967295, %s4077_s15   ;;  %p2811_p0 = scmp.ge.s32.totalorder %s4077_s15, 1  ;;  %s4077_s15 = sphi %s4104_s15, %s14_s15  }
   0x2   : > { %p162_p1 = scmp.lt.s32.totalorder %s4077_s15, 3 }
   0x4   : > { %p163_p2 = pnand %p2811_p0, %p162_p1 }
   0x6   : > { %166 = sbr.rel (%p163_p2) target bundleno = 479 (0x1df), region = 36 }
   0xd   : > { %v2930_v0 = vld [vmem:[%s5193_s1 + $0x80] sm:$0xff]  ;;  %v2931_v1 = vld [vmem:[%s5193_s1 + $0x88] sm:$0xff]  ;;  %p188_p3 = scmp.lt.s32.totalorder %s2807_s16, 1  ;;  %v2932_v5 = vld [vmem:[%s5193_s1 + $0x90] sm:$0xff]  ;;  %vm258_vm0 = vcmask 1046528   ;;  %vm329_vm1 = vcmask 261120  }
   0xe   : > { %v2814_v2 = vld [vmem:[%s5193_s1 + $0x20] sm:$0xff]  ;;  %v4121_v3 = vpack.c.bf16 %v2931_v1, %v2930_v0  ;;  %v2815_v4 = vld [vmem:[%s5193_s1 + $0x28] sm:$0xff]  ;;  %v2933_v6 = vld [vmem:[%s5193_s1 + $0x98] sm:$0xff]  ;;  %vm837_vm2 = vcmask 1045504   ;;  %vm2725_vm4 = vcmask 523264  }
   0xf   : > { %v3777_v7 = vpack.c.bf16 %v2815_v4, %v2814_v2  ;;  %v4132_v8 = vpack.c.bf16 %v2933_v6, %v2932_v5  ;;  %v2816_v9 = vld [vmem:[%s5193_s1 + $0x30] sm:$0xff]  ;;  %v2817_v10 = vld [vmem:[%s5193_s1 + $0x38] sm:$0xff]  ;;  %s5276_s16 = smov (!%p188_p3, %s2807_s16), 1  ;;  %v2960_v11 = vld [vmem:[%s5193_s1 + $0xa0] sm:$0xff] }
  0x10   : > { %3810 = vmatprep.subr.bf16.mxu0 %v4121_v3  ;;  %v3781_v12 = vpack.c.bf16 %v2817_v10, %v2816_v9  ;;  %v2961_v13 = vld [vmem:[%s5193_s1 + $0xa8] sm:$0xff]  ;;  %v228_v14 = vld [vmem:[%s5193_s1] sm:$0xff]  ;;  %s4061_s17 = smul.u32 240, %s5276_s16  ;;  %v2962_v18 = vld [vmem:[%s5193_s1 + $0xb0] sm:$0xff] }
  0x11   : > { %5232 = vst [vmem:[#allocation2_spill] sm:$0xff] %v4132_v8  ;;  %v229_v15 = vld [vmem:[%s5193_s1 + $0x8] sm:$0xff]  ;;  %3778 = vmatprep.subr.bf16.mxu1 %v3777_v7  ;;  %3812 = vmatpush3.bf16.msra.mxu0 %v4121_v3  ;;  %v3817_v16 = vpack.c.bf16 %v2961_v13, %v2960_v11  ;;  %v2963_v19 = vld [vmem:[%s5193_s1 + $0xb8] sm:$0xff]  ;;  %v230_v23 = vld [vmem:[%s5193_s1 + $0x10] sm:$0xff]  ;;  %s4062_s26 = smul.u32 208, %s5276_s16 }
  0x12   : > { %3780 = vmatpush3.bf16.msra.mxu1 %v3777_v7  ;;  %3814 = vmatprep.subr.bf16.mxu0 %v4132_v8  ;;  %s4161_s20 = scalar_lea.vmem %s5192_s0, %s4061_s17  ;;  %v3785_v17 = vpack.c.bf16 %v229_v15, %v228_v14  ;;  %v231_v35 = vld [vmem:[%s5193_s1 + $0x18] sm:$0xff]  ;;  %v3821_v39 = vpack.c.bf16 %v2963_v19, %v2962_v18  ;;  %v2990_v44 = vld [vmem:[%s5193_s1 + $0xc0] sm:$0xff]  ;;  %v2991_v47 = vld [vmem:[%s5193_s1 + $0xc8] sm:$0xff] }
  0x13   : > { %3782 = vmatprep.subr.bf16.mxu1 %v3781_v12  ;;  %v4170_v20 = vld [vmem:[%s4161_s20] sm:$0xff]  ;;  %v4173_v21 = vld [vmem:[%s4161_s20 + $0x8] sm:$0xff]  ;;  %v4176_v22 = vld [vmem:[%s4161_s20 + $0x10] sm:$0xff]  ;;  %v3789_v48 = vpack.c.bf16 %v231_v35, %v230_v23  ;;  %v4242_v53 = vpack.c.bf16 %v2991_v47, %v2990_v44  ;;  %s5056_s29 = scalar_lea.vmem %s5196_s4, %s4062_s26 }
  0x14   : > { %5233 = vst [vmem:[#allocation3_spill] sm:$0xff] %v4176_v22  ;;  %v259_v24 = vrot.slane %v4170_v20, 1  ;;  %v260_v25 = vrot.slane %v4173_v21, 1  ;;  %v4185_v26 = vld [vmem:[%s4161_s20 + $0x18] sm:$0xff]  ;;  %v262_v27 = vrot.slane %v4176_v22, 1  ;;  %v4189_v28 = vld [vmem:[%s4161_s20 + $0x20] sm:$0xff] }
  0x15   : > { %3816 = vmatpush3.bf16.msra.mxu0 %v4132_v8  ;;  %5234 = vst [vmem:[#allocation4_spill] sm:$0xff] %v4185_v26  ;;  %v4192_v29 = vld [vmem:[%s4161_s20 + $0x28] sm:$0xff]  ;;  %v263_v30 = vrot.slane %v4185_v26, 1  ;;  %v265_v31 = vrot.slane %v4189_v28, 1  ;;  %v4198_v33 = vld [vmem:[%s4161_s20 + $0x30] sm:$0xff]  ;;  %v4201_v34 = vld [vmem:[%s4161_s20 + $0x38] sm:$0xff] }
  0x16   : > { %3784 = vmatpush3.bf16.msra.mxu1 %v3781_v12  ;;  %3818 = vmatprep.subr.bf16.mxu0 %v3817_v16  ;;  %v266_v32 = vrot.slane %v4192_v29, 1  ;;  %v261_v36 = vsel %vm258_vm0, %v259_v24, %v260_v25  ;;  %v311_v37 = vsel %vm258_vm0, %v260_v25, 0.0  ;;  %v268_v38 = vrot.slane %v4198_v33, 1  ;;  %v4222_v45 = vld [vmem:[%s4161_s20 + $0x40] sm:$0xff]  ;;  %v4225_v46 = vld [vmem:[%s4161_s20 + $0x48] sm:$0xff]  ;;  %v4246_v54 = vld [vmem:[%s4161_s20 + $0x50] sm:$0xff] }
  0x17   : > { %3786 = vmatprep.subr.bf16.mxu1 %v3785_v17  ;;  %3362 = vmatprep.mubr.msk.f32.mxu1 %vm329_vm1, %v261_v36  ;;  %v264_v40 = vsel %vm258_vm0, %v262_v27, %v263_v30  ;;  %v312_v41 = vsel %vm258_vm0, %v263_v30, 0.0  ;;  %v269_v43 = vrot.slane %v4201_v34, 1  ;;  %v271_v51 = vrot.slane %v4222_v45, 1  ;;  %v4249_v55 = vld [vmem:[%s4161_s20 + $0x58] sm:$0xff]  ;;  %v4269_v60 = vld [vmem:[%s4161_s20 + $0x60] sm:$0xff]  ;;  %v4272_v61 = vld [vmem:[%s4161_s20 + $0x68] sm:$0xff] }
  0x18   : > { %v4213_v42 = vsel %vm258_vm0, %v265_v31, %v266_v32  ;;  %3550 = vmatprep.mubr.msk.f32.mxu0 %vm329_vm1, %v264_v40  ;;  %v4235_v49 = vsel %vm258_vm0, %v266_v32, 0.0  ;;  %v272_v52 = vrot.slane %v4225_v46, 1  ;;  %v274_v58 = vrot.slane %v4246_v54, 1  ;;  %v4291_v2 = vld [vmem:[%s4161_s20 + $0x70] sm:$0xff]  ;;  %v4294_v4 = vld [vmem:[%s4161_s20 + $0x78] sm:$0xff]  ;;  %v2870_v5 = vld [vmem:[%s5193_s1 + $0x40] sm:$0xff] }
  0x19   : > { %3363 = vmatmul.mubr.msk.f32.vlgmr.msra.gmra.mrb[0].mxu1 %vm329_vm1, %v311_v37  ;;  %3551 = vmatmul.mubr.msk.f32.vlgmr.msra.gmra.mrb[0].mxu0 %vm329_vm1, %v312_v41  ;;  %v4238_v50 = vsel %vm258_vm0, %v268_v38, %v269_v43  ;;  %v4258_v56 = vsel %vm258_vm0, %v269_v43, 0.0  ;;  %v275_v59 = vrot.slane %v4249_v55, 1  ;;  %v277_v0 = vrot.slane %v4269_v60, 1  ;;  %v2871_v6 = vld [vmem:[%s5193_s1 + $0x48] sm:$0xff]  ;;  %v4362_v35 = vld [vmem:[%s4161_s20 + $0x90] sm:$0xff]  ;;  %v4365_v36 = vld [vmem:[%s4161_s20 + $0x98] sm:$0xff] }
  0x1a   : > { %3365 = vmatprep.mubr.msk.f32.mxu1 %vm329_vm1, %v264_v40  ;;  %3820 = vmatpush3.bf16.msra.mxu0 %v3817_v16  ;;  %v4261_v57 = vsel %vm258_vm0, %v271_v51, %v272_v52  ;;  %v4281_v62 = vsel %vm258_vm0, %v272_v52, 0.0  ;;  %v278_v1 = vrot.slane %v4272_v61, 1  ;;  %v280_v10 = vrot.slane %v4291_v2, 1  ;;  %v4339_v18 = vld [vmem:[%s4161_s20 + $0x88] sm:$0xff]  ;;  %v2992_v37 = vld [vmem:[%s5193_s1 + $0xd0] sm:$0xff]  ;;  %v2993_v38 = vld [vmem:[%s5193_s1 + $0xd8] sm:$0xff] }
  0x1b   : > { %3553 = vmatprep.mubr.msk.f32.mxu0 %vm329_vm1, %v4213_v42  ;;  %3788 = vmatpush3.bf16.msra.mxu1 %v3785_v17  ;;  %v4284_v63 = vsel %vm258_vm0, %v274_v58, %v275_v59  ;;  %v4309_v7 = vsel %vm258_vm0, %v275_v59, 0.0  ;;  %v281_v11 = vrot.slane %v4294_v4, 1  ;;  %v4318_v12 = vpack.c.bf16 %v2871_v6, %v2870_v5  ;;  %v4336_v17 = vld [vmem:[%s4161_s20 + $0x80] sm:$0xff]  ;;  %v4403_v58 = vld [vmem:[%s4161_s20 + $0xa8] sm:$0xff] }
  0x1c   : > { %3822 = vmatprep.subr.bf16.mxu0 %v3821_v39  ;;  %3790 = vmatprep.subr.bf16.mxu1 %v3789_v48  ;;  %5235 = vst [vmem:[#allocation5_spill] sm:$0xff] %v4309_v7  ;;  %v4312_v9 = vsel %vm258_vm0, %v277_v0, %v278_v1  ;;  %v4327_v13 = vsel %vm258_vm0, %v278_v1, 0.0  ;;  %v841_v15 = vrot.slane %v4176_v22, 2  ;;  %v842_v16 = vrot.slane %v4185_v26, 2  ;;  %v4400_v52 = vld [vmem:[%s4161_s20 + $0xa0] sm:$0xff]  ;;  %v3021_v1 = vld [vmem:[%s5193_s1 + $0xe8] sm:$0xff] }
  0x1d   : > { %3366 = vmatmul.mubr.msk.f32.gmra.mrb[2].mxu1 %vm329_vm1, %v312_v41  ;;  %3554 = vmatmul.mubr.msk.f32.gmra.mrb[2].mxu0 %vm329_vm1, %v4235_v49  ;;  %5236 = vst [vmem:[#allocation6_spill] sm:$0xff] %v4312_v9  ;;  %5237 = vst [vmem:[#allocation7_spill] sm:$0xff] %v4327_v13  ;;  %v4331_v14 = vsel %vm258_vm0, %v280_v10, %v281_v11  ;;  %v4348_v19 = vsel %vm258_vm0, %v281_v11, 0.0  ;;  %v283_v23 = vrot.slane %v4336_v17, 1  ;;  %v284_v24 = vrot.slane %v4339_v18, 1  ;;  %v3020_v0 = vld [vmem:[%s5193_s1 + $0xe0] sm:$0xff] }
  0x1e   : > { %3368 = vmatprep.mubr.msk.f32.mxu1 %vm329_vm1, %v4213_v42  ;;  %3556 = vmatprep.mubr.msk.f32.mxu0 %vm329_vm1, %v4238_v50  ;;  %5238 = vst [vmem:[#allocation8_spill] sm:$0xff] %v4331_v14  ;;  %5239 = vst [vmem:[#allocation9_spill] sm:$0xff] %v4348_v19  ;;  %v838_v25 = vrot.slane %v4170_v20, 2  ;;  %v5197_v27 = vrot.slane %v4173_v21, 2  ;;  %v4357_v30 = vsel %vm837_vm2, %v841_v15, %v842_v16  ;;  %v844_v31 = vrot.slane %v4189_v28, 2  ;;  %v4472_v8 = vld [vmem:[%s4161_s20 + $0xc8] sm:$0xff] }
  0x1f   : > { %3824 = vmatpush3.bf16.msra.mxu0 %v3821_v39  ;;  %3792 = vmatpush3.bf16.msra.mxu1 %v3789_v48  ;;  %v845_v32 = vrot.slane %v4192_v29, 2  ;;  %v4387_v40 = vsel %vm837_vm2, %v842_v16, 0.0  ;;  %v4390_v41 = vsel %vm258_vm0, %v283_v23, %v284_v24  ;;  %v286_v43 = vrot.slane %v4362_v35, 1 }
  0x20   : > { %3826 = vmatprep.subr.bf16.mxu0 %v4242_v53  ;;  %3794 = vmatprep.subr.bf16.mxu1 %v4318_v12  ;;  %v4378_v39 = vsel %vm837_vm2, %v838_v25, %v5197_v27  ;;  %5240 = vst [vmem:[#allocation10_spill] sm:$0xff] %v4390_v41  ;;  %v287_v44 = vrot.slane %v4365_v36, 1  ;;  %v847_v48 = vrot.slane %v4198_v33, 2  ;;  %v848_v51 = vrot.slane %v4201_v34, 2  ;;  %v4440_v25 = vld [vmem:[%s4161_s20 + $0xb8] sm:$0xff]  ;;  %v4469_v27 = vld [vmem:[%s4161_s20 + $0xc0] sm:$0xff] }
  0x21   : > { %3369 = vmatmul.mubr.msk.f32.gmra.mrb[4].mxu1 %vm329_vm1, %v4235_v49  ;;  %3557 = vmatmul.mubr.msk.f32.gmra.mrb[4].mxu0 %vm329_vm1, %v4258_v56  ;;  %v4395_v47 = vsel %vm837_vm2, %v844_v31, %v845_v32  ;;  %v3829_v59 = vpack.c.bf16 %v2993_v38, %v2992_v37  ;;  %v4418_v5 = vsel %vm258_vm0, %v284_v24, 0.0  ;;  %v4424_v6 = vsel %vm837_vm2, %v845_v32, 0.0  ;;  %v4437_v24 = vld [vmem:[%s4161_s20 + $0xb0] sm:$0xff] }
  0x22   : > { %3371 = vmatprep.mubr.msk.f32.mxu1 %vm329_vm1, %v4238_v50  ;;  %3559 = vmatprep.mubr.msk.f32.mxu0 %vm329_vm1, %v4261_v57  ;;  %5241 = vst [vmem:[#allocation11_spill] sm:$0xff] %v4418_v5  ;;  %v4427_v10 = vsel %vm258_vm0, %v286_v43, %v287_v44  ;;  %v289_v11 = vrot.slane %v4400_v52, 1  ;;  %v290_v15 = vrot.slane %v4403_v58, 1  ;;  %v4432_v16 = vsel %vm837_vm2, %v847_v48, %v848_v51 }
  0x23   : > { %5242 = vst [vmem:[#allocation12_spill] sm:$0xff] %v4427_v10  ;;  %v850_v23 = vrot.slane %v4222_v45, 2  ;;  %v4442_v31 = vpack.c.bf16 %v3021_v1, %v3020_v0  ;;  %v4451_v32 = vsel %vm258_vm0, %v287_v44, 0.0  ;;  %v4456_v37 = vsel %vm837_vm2, %v848_v51, 0.0 }
  0x24   : > { %5243 = vst [vmem:[#allocation13_spill] sm:$0xff] %v4451_v32  ;;  %v4459_v38 = vsel %vm258_vm0, %v289_v11, %v290_v15  ;;  %v292_v43 = vrot.slane %v4437_v24, 1  ;;  %v293_v48 = vrot.slane %v4440_v25, 1  ;;  %v853_v44 = vrot.slane %v4246_v54, 2 }
  0x25   : > { %3372 = vmatmul.mubr.msk.f32.gmra.mrb[6].mxu1 %vm329_vm1, %v4258_v56  ;;  %3560 = vmatmul.mubr.msk.f32.gmra.mrb[6].mxu0 %vm329_vm1, %v4281_v62  ;;  %5244 = vst [vmem:[#allocation14_spill] sm:$0xff] %v4459_v38  ;;  %v854_v1 = vrot.slane %v4249_v55, 2  ;;  %v4482_v51 = vsel %vm258_vm0, %v290_v15, 0.0  ;;  %v857_v15 = vrot.slane %v4272_v61, 2 }
  0x26   : > { %3374 = vmatprep.mubr.msk.f32.mxu1 %vm329_vm1, %v4261_v57  ;;  %3562 = vmatprep.mubr.msk.f32.mxu0 %vm329_vm1, %v4284_v63  ;;  %5245 = vst [vmem:[#allocation15_spill] sm:$0xff] %v4482_v51  ;;  %v4490_v11 = vsel %vm258_vm0, %v292_v43, %v293_v48 }
  0x27   : > { %5246 = vst [vmem:[#allocation16_spill] sm:$0xff] %v4490_v11  ;;  %v4511_v43 = vsel %vm837_vm2, %v854_v1, 0.0 }
  0x29   : > { %3375 = vmatmul.mubr.msk.f32.gmra.mrb[8].mxu1 %vm329_vm1, %v4281_v62  ;;  %3563 = vmatmul.mubr.msk.f32.gmra.mrb[8].mxu0 %vm329_vm1, %v4309_v7 }
  0x2a   : > { %3377 = vmatprep.mubr.msk.f32.mxu1 %vm329_vm1, %v4284_v63  ;;  %3565 = vmatprep.mubr.msk.f32.mxu0 %vm329_vm1, %v4312_v9 }
  0x2d   : > { %3378 = vmatmul.mubr.msk.f32.gmra.mrb[10].mxu1 %vm329_vm1, %v4309_v7  ;;  %3566 = vmatmul.mubr.msk.f32.gmra.mrb[10].mxu0 %vm329_vm1, %v4327_v13 }
  0x2e   : > { %3380 = vmatprep.mubr.msk.f32.mxu1 %vm329_vm1, %v4312_v9  ;;  %3568 = vmatprep.mubr.msk.f32.mxu0 %vm329_vm1, %v4331_v14 }
  0x31   : > { %3381 = vmatmul.mubr.msk.f32.gmra.mrb[12].mxu1 %vm329_vm1, %v4327_v13  ;;  %3569 = vmatmul.mubr.msk.f32.gmra.mrb[12].mxu0 %vm329_vm1, %v4348_v19 }
  0x32   : > { %3383 = vmatprep.mubr.msk.f32.mxu1 %vm329_vm1, %v4331_v14  ;;  %3597 = vmatprep.mubr.msk.f32.mxu0 %vm329_vm1, %v4357_v30  ;;  %v869_v14 = vrot.slane %v4403_v58, 2 }
  0x35   : > { %3384 = vmatmul.mubr.msk.f32.gmra.mrb[14].mxu1 %vm329_vm1, %v4348_v19  ;;  %3598 = vmatmul.mubr.msk.f32.vlgmr.msra.gmra.mrb[0].mxu0 %vm329_vm1, %v4387_v40 }
  0x36   : > { %3386 = vmatprep.mubr.msk.f32.mxu1 %vm329_vm1, %v4390_v41  ;;  %3828 = vmatpush3.bf16.msra.mxu0 %v4242_v53  ;;  %v851_v53 = vrot.slane %v4225_v46, 2  ;;  %v860_v41 = vrot.slane %v4294_v4, 2 }
  0x37   : > { %3600 = vmatprep.mubr.msk.f32.mxu0 %vm329_vm1, %v4395_v47  ;;  %3830 = vmatprep.subr.bf16.mxu0 %v3829_v59 }
  0x38   : > { %v4464_v0 = vsel %vm837_vm2, %v850_v23, %v851_v53  ;;  %v295_v23 = vrot.slane %v4469_v27, 1 }
  0x39   : > { %3387 = vmatmul.mubr.msk.f32.gmra.mrb[16].mxu1 %vm329_vm1, %v4418_v5  ;;  %3601 = vmatmul.mubr.msk.f32.gmra.mrb[2].mxu0 %vm329_vm1, %v4424_v6  ;;  %v859_v5 = vrot.slane %v4291_v2, 2 }
  0x3a   : > { %3389 = vmatprep.mubr.msk.f32.mxu1 %vm329_vm1, %v4427_v10  ;;  %3603 = vmatprep.mubr.msk.f32.mxu0 %vm329_vm1, %v4432_v16  ;;  %v4495_v10 = vsel %vm837_vm2, %v853_v44, %v854_v1 }
  0x3b   : > { %3832 = vmatpush3.bf16.msra.mxu0 %v3829_v59  ;;  %v4487_v59 = vsel %vm837_vm2, %v851_v53, 0.0  ;;  %v4506_v53 = vsel %vm258_vm0, %v293_v48, 0.0  ;;  %v4536_v1 = vsel %vm837_vm2, %v859_v5, %v860_v41  ;;  %v4555_v5 = vsel %vm837_vm2, %v860_v41, 0.0  ;;  %v2901_v41 = vld [vmem:[%s5193_s1 + $0x68] sm:$0xff] }
  0x3c   : > { %3834 = vmatprep.subr.bf16.mxu0 %v4442_v31  ;;  %5247 = vst [vmem:[#allocation17_spill] sm:$0xff] %v4506_v53 }
  0x3d   : > { %3390 = vmatmul.mubr.msk.f32.gmra.mrb[18].mxu1 %vm329_vm1, %v4451_v32  ;;  %3604 = vmatmul.mubr.msk.f32.gmra.mrb[4].mxu0 %vm329_vm1, %v4456_v37  ;;  %v296_v32 = vrot.slane %v4472_v8, 1 }
  0x3e   : > { %3392 = vmatprep.mubr.msk.f32.mxu1 %vm329_vm1, %v4459_v38  ;;  %3606 = vmatprep.mubr.msk.f32.mxu0 %vm329_vm1, %v4464_v0  ;;  %v856_v38 = vrot.slane %v4269_v60, 2 }
  0x3f   : > { %v4514_v44 = vsel %vm258_vm0, %v295_v23, %v296_v32  ;;  %v4528_v48 = vsel %vm258_vm0, %v296_v32, 0.0  ;;  %v862_v23 = vrot.slane %v4336_v17, 2  ;;  %v2872_v32 = vld [vmem:[%s5193_s1 + $0x50] sm:$0xff] }
  0x40   : > { %5248 = vst [vmem:[#allocation18_spill] sm:$0xff] %v4514_v44  ;;  %5249 = vst [vmem:[#allocation19_spill] sm:$0xff] %v4528_v48 }
  0x41   : > { %3393 = vmatmul.mubr.msk.f32.gmra.mrb[20].mxu1 %vm329_vm1, %v4482_v51  ;;  %3607 = vmatmul.mubr.msk.f32.gmra.mrb[6].mxu0 %vm329_vm1, %v4487_v59  ;;  %v4517_v51 = vsel %vm837_vm2, %v856_v38, %v857_v15  ;;  %v4533_v38 = vsel %vm837_vm2, %v857_v15, 0.0 }
  0x42   : > { %3395 = vmatprep.mubr.msk.f32.mxu1 %vm329_vm1, %v4490_v11  ;;  %3609 = vmatprep.mubr.msk.f32.mxu0 %vm329_vm1, %v4495_v10  ;;  %v866_v11 = vrot.slane %v4365_v36, 2 }
  0x45   : > { %3396 = vmatmul.mubr.msk.f32.gmra.mrb[22].mxu1 %vm329_vm1, %v4506_v53  ;;  %3610 = vmatmul.mubr.msk.f32.gmra.mrb[8].mxu0 %vm329_vm1, %v4511_v43  ;;  %v863_v53 = vrot.slane %v4339_v18, 2 }
  0x46   : > { %3398 = vmatprep.mubr.msk.f32.mxu1 %vm329_vm1, %v4514_v44  ;;  %3612 = vmatprep.mubr.msk.f32.mxu0 %vm329_vm1, %v4517_v51  ;;  %v2873_v44 = vld [vmem:[%s5193_s1 + $0x58] sm:$0xff] }
  0x47   : > { %v4558_v15 = vsel %vm837_vm2, %v862_v23, %v863_v53  ;;  %v3797_v19 = vpack.c.bf16 %v2873_v44, %v2872_v32  ;;  %v4578_v44 = vsel %vm837_vm2, %v863_v53, 0.0  ;;  %v868_v32 = vrot.slane %v4400_v52, 2 }
  0x49   : > { %3399 = vmatmul.mubr.msk.f32.gmra.mrb[24].mxu1 %vm329_vm1, %v4528_v48  ;;  %3613 = vmatmul.mubr.msk.f32.gmra.mrb[10].mxu0 %vm329_vm1, %v4533_v38  ;;  %v865_v48 = vrot.slane %v4362_v35, 2  ;;  %v4599_v53 = vsel %vm837_vm2, %v868_v32, %v869_v14  ;;  %v875_v32 = vrot.slane %v4472_v8, 2 }
  0x4a   : > { %3409 = vmatprep.mubr.msk.f32.mxu1 %vm329_vm1, %v4170_v20  ;;  %3615 = vmatprep.mubr.msk.f32.mxu0 %vm329_vm1, %v4536_v1  ;;  %v2900_v20 = vld [vmem:[%s5193_s1 + $0x60] sm:$0xff] }
  0x4b   : > { %v4581_v23 = vsel %vm837_vm2, %v865_v48, %v866_v11  ;;  %v4585_v13 = vpack.c.bf16 %v2901_v41, %v2900_v20  ;;  %v871_v48 = vrot.slane %v4437_v24, 2  ;;  %v872_v20 = vrot.slane %v4440_v25, 2 }
  0x4c   : > { %v874_v41 = vrot.slane %v4469_v27, 2 }
  0x4d   : > { %3410 = vmatmul.mubr.msk.f32.vlgmr.msra.gmra.mrb[0].mxu1 %vm329_vm1, %v4173_v21  ;;  %3616 = vmatmul.mubr.msk.f32.gmra.mrb[12].mxu0 %vm329_vm1, %v4555_v5 }
  0x4e   : > { %3412 = vmatprep.mubr.msk.f32.mxu1 %vm329_vm1, %v4176_v22  ;;  %3618 = vmatprep.mubr.msk.f32.mxu0 %vm329_vm1, %v4558_v15  ;;  %v4626_v22 = vld [vmem:[%s4161_s20 + $0xd8] sm:$0xff] }
  0x4f   : > { %3796 = vmatpush3.bf16.msra.mxu1 %v4318_v12  ;;  %v4596_v12 = vsel %vm837_vm2, %v866_v11, 0.0  ;;  %v4616_v11 = vsel %vm837_vm2, %v871_v48, %v872_v20  ;;  %v4638_v48 = vsel %vm837_vm2, %v874_v41, %v875_v32  ;;  %v1663_v7 = vrot.slane %v4626_v22, 2 }
  0x50   : > { %3798 = vmatprep.subr.bf16.mxu1 %v3797_v19  ;;  %5250 = vst [vmem:[#allocation20_spill] sm:$0xff] %v4638_v48 }
  0x51   : > { %3413 = vmatmul.mubr.msk.f32.gmra.mrb[2].mxu1 %vm329_vm1, %v4185_v26  ;;  %3619 = vmatmul.mubr.msk.f32.gmra.mrb[14].mxu0 %vm329_vm1, %v4578_v44  ;;  %v4623_v26 = vld [vmem:[%s4161_s20 + $0xd0] sm:$0xff] }
  0x52   : > { %3415 = vmatprep.mubr.msk.f32.mxu1 %vm329_vm1, %v4189_v28  ;;  %3621 = vmatprep.mubr.msk.f32.mxu0 %vm329_vm1, %v4581_v23  ;;  %v1662_v9 = vrot.slane %v4623_v26, 2 }
  0x53   : > { %3800 = vmatpush3.bf16.msra.mxu1 %v3797_v19  ;;  %v4613_v19 = vsel %vm837_vm2, %v869_v14, 0.0  ;;  %v4635_v14 = vsel %vm837_vm2, %v872_v20, 0.0  ;;  %v4651_v20 = vsel %vm837_vm2, %v875_v32, 0.0  ;;  %v3023_v32 = vld [vmem:[%s5193_s1 + $0xf8] sm:$0xff] }
  0x54   : > { %3802 = vmatprep.subr.bf16.mxu1 %v4585_v13  ;;  %5251 = vst [vmem:[#allocation21_spill] sm:$0xff] %v4651_v20  ;;  %v4654_v41 = vsel %vm837_vm2, %v1662_v9, %v1663_v7  ;;  %v3022_v9 = vld [vmem:[%s5193_s1 + $0xf0] sm:$0xff] }
  0x55   : > { %3416 = vmatmul.mubr.msk.f32.gmra.mrb[4].mxu1 %vm329_vm1, %v4192_v29  ;;  %3622 = vmatmul.mubr.msk.f32.gmra.mrb[16].mxu0 %vm329_vm1, %v4596_v12  ;;  %5252 = vst [vmem:[#allocation22_spill] sm:$0xff] %v4654_v41 }
  0x56   : > { %3418 = vmatprep.mubr.msk.f32.mxu1 %vm329_vm1, %v4198_v33  ;;  %3624 = vmatprep.mubr.msk.f32.mxu0 %vm329_vm1, %v4599_v53 }
  0x59   : > { %3419 = vmatmul.mubr.msk.f32.gmra.mrb[6].mxu1 %vm329_vm1, %v4201_v34  ;;  %3625 = vmatmul.mubr.msk.f32.gmra.mrb[18].mxu0 %vm329_vm1, %v4613_v19 }
  0x5a   : > { %3421 = vmatprep.mubr.msk.f32.mxu1 %vm329_vm1, %v4222_v45  ;;  %3627 = vmatprep.mubr.msk.f32.mxu0 %vm329_vm1, %v4616_v11 }
  0x5d   : > { %3422 = vmatmul.mubr.msk.f32.gmra.mrb[8].mxu1 %vm329_vm1, %v4225_v46  ;;  %3628 = vmatmul.mubr.msk.f32.gmra.mrb[20].mxu0 %vm329_vm1, %v4635_v14 }
  0x5e   : > { %3424 = vmatprep.mubr.msk.f32.mxu1 %vm329_vm1, %v4246_v54  ;;  %3630 = vmatprep.mubr.msk.f32.mxu0 %vm329_vm1, %v4638_v48  ;;  %v4665_v48 = vsel %vm837_vm2, %v1663_v7, 0.0  ;;  %v3837_v7 = vpack.c.bf16 %v3023_v32, %v3022_v9 }
  0x61   : > { %3425 = vmatmul.mubr.msk.f32.gmra.mrb[10].mxu1 %vm329_vm1, %v4249_v55  ;;  %3631 = vmatmul.mubr.msk.f32.gmra.mrb[22].mxu0 %vm329_vm1, %v4651_v20  ;;  %v3051_v20 = vld [vmem:[%s5193_s1 + $0x108] sm:$0xff] }
  0x62   : > { %3427 = vmatprep.mubr.msk.f32.mxu1 %vm329_vm1, %v4269_v60  ;;  %3633 = vmatprep.mubr.msk.f32.mxu0 %vm329_vm1, %v4654_v41  ;;  %v3050_v41 = vld [vmem:[%s5193_s1 + $0x100] sm:$0xff] }
  0x63   : > { %v4696_v9 = vpack.c.bf16 %v3051_v20, %v3050_v41  ;;  %v2903_v20 = vld [vmem:[%s5193_s1 + $0x78] sm:$0xff]  ;;  %v5253_v41 = vrot.slane %v4173_v21, 2  ;;  %v4790_v21 = vld [vmem:[%s4161_s20 + $0xe0] sm:$0xff] }
  0x65   : > { %3428 = vmatmul.mubr.msk.f32.gmra.mrb[12].mxu1 %vm329_vm1, %v4272_v61  ;;  %3634 = vmatmul.mubr.msk.f32.gmra.mrb[24].mxu0 %vm329_vm1, %v4665_v48  ;;  %v890_v32 = vsel %vm837_vm2, %v5253_v41, 0.0  ;;  %v5264_v41 = vld [vmem:[#allocation11_spill] sm:$0xff] }
  0x66   : > { %3430 = vmatprep.mubr.msk.f32.mxu1 %vm329_vm1, %v4291_v2  ;;  %3644 = vmatprep.mubr.msk.f32.mxu0 %vm329_vm1, %v4189_v28 }
  0x69   : > { %3431 = vmatmul.mubr.msk.f32.gmra.mrb[14].mxu1 %vm329_vm1, %v4294_v4  ;;  %3645 = vmatmul.mubr.msk.f32.vlgmr.msra.gmra.mrb[0].mxu0 %vm329_vm1, %v4192_v29 }
  0x6a   : > { %3433 = vmatprep.mubr.msk.f32.mxu1 %vm329_vm1, %v4336_v17  ;;  %3836 = vmatpush3.bf16.msra.mxu0 %v4442_v31  ;;  %v2902_v31 = vld [vmem:[%s5193_s1 + $0x70] sm:$0xff] }
  0x6b   : > { %3647 = vmatprep.mubr.msk.f32.mxu0 %vm329_vm1, %v4198_v33  ;;  %3838 = vmatprep.subr.bf16.mxu0 %v3837_v7 }
  0x6d   : > { %3434 = vmatmul.mubr.msk.f32.gmra.mrb[16].mxu1 %vm329_vm1, %v4339_v18  ;;  %3648 = vmatmul.mubr.msk.f32.gmra.mrb[2].mxu0 %vm329_vm1, %v4201_v34 }
  0x6e   : > { %3436 = vmatprep.mubr.msk.f32.mxu1 %vm329_vm1, %v4362_v35  ;;  %3650 = vmatprep.mubr.msk.f32.mxu0 %vm329_vm1, %v4222_v45 }
  0x6f   : > { %3840 = vmatpush3.bf16.msra.mxu0 %v3837_v7  ;;  %v3805_v7 = vpack.c.bf16 %v2903_v20, %v2902_v31  ;;  %v5262_v31 = vld [vmem:[#allocation10_spill] sm:$0xff]  ;;  %v5263_v20 = vld [vmem:[#allocation4_spill] sm:$0xff] }
  0x70   : > { %3842 = vmatprep.subr.bf16.mxu0 %v4696_v9 }
  0x71   : > { %3437 = vmatmul.mubr.msk.f32.gmra.mrb[18].mxu1 %vm329_vm1, %v4365_v36  ;;  %3651 = vmatmul.mubr.msk.f32.gmra.mrb[4].mxu0 %vm329_vm1, %v4225_v46 }
  0x72   : > { %3439 = vmatprep.mubr.msk.f32.mxu1 %vm329_vm1, %v4400_v52  ;;  %3653 = vmatprep.mubr.msk.f32.mxu0 %vm329_vm1, %v4246_v54 }
  0x75   : > { %3440 = vmatmul.mubr.msk.f32.gmra.mrb[20].mxu1 %vm329_vm1, %v4403_v58  ;;  %3654 = vmatmul.mubr.msk.f32.gmra.mrb[6].mxu0 %vm329_vm1, %v4249_v55 }
  0x76   : > { %3442 = vmatprep.mubr.msk.f32.mxu1 %vm329_vm1, %v4437_v24  ;;  %3656 = vmatprep.mubr.msk.f32.mxu0 %vm329_vm1, %v4269_v60 }
  0x79   : > { %3443 = vmatmul.mubr.msk.f32.gmra.mrb[22].mxu1 %vm329_vm1, %v4440_v25  ;;  %3657 = vmatmul.mubr.msk.f32.gmra.mrb[8].mxu0 %vm329_vm1, %v4272_v61 }
  0x7a   : > { %3445 = vmatprep.mubr.msk.f32.mxu1 %vm329_vm1, %v4469_v27  ;;  %3659 = vmatprep.mubr.msk.f32.mxu0 %vm329_vm1, %v4291_v2 }
  0x7d   : > { %3446 = vmatmul.mubr.msk.f32.gmra.mrb[24].mxu1 %vm329_vm1, %v4472_v8  ;;  %3660 = vmatmul.mubr.msk.f32.gmra.mrb[10].mxu0 %vm329_vm1, %v4294_v4 }
  0x7e   : > { %3456 = vmatprep.mubr.msk.f32.mxu1 %vm329_vm1, %v4378_v39  ;;  %3662 = vmatprep.mubr.msk.f32.mxu0 %vm329_vm1, %v4336_v17  ;;  %v3053_v39 = vld [vmem:[%s5193_s1 + $0x118] sm:$0xff] }
  0x81   : > { %3457 = vmatmul.mubr.msk.f32.vlgmr.msra.gmra.mrb[0].mxu1 %vm329_vm1, %v890_v32  ;;  %3663 = vmatmul.mubr.msk.f32.gmra.mrb[12].mxu0 %vm329_vm1, %v4339_v18  ;;  %v5265_v32 = vld [vmem:[#allocation12_spill] sm:$0xff] }
  0x82   : > { %3459 = vmatprep.mubr.msk.f32.mxu1 %vm329_vm1, %v4357_v30  ;;  %3665 = vmatprep.mubr.msk.f32.mxu0 %vm329_vm1, %v4362_v35  ;;  %v3052_v30 = vld [vmem:[%s5193_s1 + $0x110] sm:$0xff] }
  0x83   : > { %3804 = vmatpush3.bf16.msra.mxu1 %v4585_v13  ;;  %v4801_v13 = vld [vmem:[%s4161_s20 + $0xe8] sm:$0xff] }
  0x84   : > { %3806 = vmatprep.subr.bf16.mxu1 %v3805_v7 }
  0x85   : > { %3460 = vmatmul.mubr.msk.f32.gmra.mrb[2].mxu1 %vm329_vm1, %v4387_v40  ;;  %3666 = vmatmul.mubr.msk.f32.gmra.mrb[14].mxu0 %vm329_vm1, %v4365_v36  ;;  %v3845_v40 = vpack.c.bf16 %v3053_v39, %v3052_v30  ;;  %v5267_v30 = vld [vmem:[#allocation13_spill] sm:$0xff]  ;;  %v5268_v39 = vld [vmem:[#allocation14_spill] sm:$0xff] }
  0x86   : > { %3462 = vmatprep.mubr.msk.f32.mxu1 %vm329_vm1, %v4395_v47  ;;  %3668 = vmatprep.mubr.msk.f32.mxu0 %vm329_vm1, %v4400_v52 }
  0x87   : > { %3808 = vmatpush3.bf16.msra.mxu1 %v3805_v7  ;;  %v5266_v7 = vld [vmem:[#allocation2_spill] sm:$0xff] }
  0x88   : > { %3849 = vmatprep.subr.bf16.mxu1 %v4121_v3 }
  0x89   : > { %3463 = vmatmul.mubr.msk.f32.gmra.mrb[4].mxu1 %vm329_vm1, %v4424_v6  ;;  %3669 = vmatmul.mubr.msk.f32.gmra.mrb[16].mxu0 %vm329_vm1, %v4403_v58 }
  0x8a   : > { %3465 = vmatprep.mubr.msk.f32.mxu1 %vm329_vm1, %v4432_v16  ;;  %3671 = vmatprep.mubr.msk.f32.mxu0 %vm329_vm1, %v4437_v24 }
  0x8d   : > { %3466 = vmatmul.mubr.msk.f32.gmra.mrb[6].mxu1 %vm329_vm1, %v4456_v37  ;;  %3672 = vmatmul.mubr.msk.f32.gmra.mrb[18].mxu0 %vm329_vm1, %v4440_v25 }
  0x8e   : > { %3468 = vmatprep.mubr.msk.f32.mxu1 %vm329_vm1, %v4464_v0  ;;  %3674 = vmatprep.mubr.msk.f32.mxu0 %vm329_vm1, %v4469_v27 }
  0x91   : > { %3469 = vmatmul.mubr.msk.f32.gmra.mrb[8].mxu1 %vm329_vm1, %v4487_v59  ;;  %3675 = vmatmul.mubr.msk.f32.gmra.mrb[20].mxu0 %vm329_vm1, %v4472_v8 }
  0x92   : > { %3471 = vmatprep.mubr.msk.f32.mxu1 %vm329_vm1, %v4495_v10  ;;  %3677 = vmatprep.mubr.msk.f32.mxu0 %vm329_vm1, %v4623_v26 }
  0x95   : > { %3472 = vmatmul.mubr.msk.f32.gmra.mrb[10].mxu1 %vm329_vm1, %v4511_v43  ;;  %3678 = vmatmul.mubr.msk.f32.gmra.mrb[22].mxu0 %vm329_vm1, %v4626_v22 }
  0x96   : > { %3474 = vmatprep.mubr.msk.f32.mxu1 %vm329_vm1, %v4517_v51  ;;  %3680 = vmatprep.mubr.msk.f32.mxu0 %vm329_vm1, %v4790_v21 }
  0x99   : > { %3475 = vmatmul.mubr.msk.f32.gmra.mrb[12].mxu1 %vm329_vm1, %v4533_v38  ;;  %3681 = vmatmul.mubr.msk.f32.gmra.mrb[24].mxu0 %vm329_vm1, %v4801_v13 }
  0x9a   : > { %3477 = vmatprep.mubr.msk.f32.mxu1 %vm329_vm1, %v4536_v1  ;;  %3691 = vmatprep.mubr.msk.f32.mxu0 %vm329_vm1, %v4213_v42  ;;  %v5254_v42 = vld [vmem:[#allocation5_spill] sm:$0xff] }
  0x9d   : > { %3478 = vmatmul.mubr.msk.f32.gmra.mrb[14].mxu1 %vm329_vm1, %v4555_v5  ;;  %3692 = vmatmul.mubr.msk.f32.vlgmr.msra.gmra.mrb[0].mxu0 %vm329_vm1, %v4235_v49  ;;  %v5255_v49 = vld [vmem:[#allocation6_spill] sm:$0xff] }
  0x9e   : > { %3480 = vmatprep.mubr.msk.f32.mxu1 %vm329_vm1, %v4558_v15  ;;  %3844 = vmatpush3.bf16.msra.mxu0 %v4696_v9  ;;  %v5261_v9 = vld [vmem:[#allocation3_spill] sm:$0xff] }
  0x9f   : > { %3694 = vmatprep.mubr.msk.f32.mxu0 %vm329_vm1, %v4238_v50  ;;  %3846 = vmatprep.subr.bf16.mxu0 %v3845_v40  ;;  %v5256_v50 = vld [vmem:[#allocation7_spill] sm:$0xff] }
  0xa1   : > { %3481 = vmatmul.mubr.msk.f32.gmra.mrb[16].mxu1 %vm329_vm1, %v4578_v44  ;;  %3695 = vmatmul.mubr.msk.f32.gmra.mrb[2].mxu0 %vm329_vm1, %v4258_v56  ;;  %v5257_v56 = vld [vmem:[#allocation20_spill] sm:$0xff] }
  0xa2   : > { %3483 = vmatprep.mubr.msk.f32.mxu1 %vm329_vm1, %v4581_v23  ;;  %3697 = vmatprep.mubr.msk.f32.mxu0 %vm329_vm1, %v4261_v57  ;;  %v5258_v57 = vld [vmem:[#allocation8_spill] sm:$0xff] }
  0xa3   : > { %3848 = vmatpush3.bf16.msra.mxu0 %v3845_v40  ;;  %v5271_v40 = vld [vmem:[#allocation17_spill] sm:$0xff] }
  0xa5   : > { %3484 = vmatmul.mubr.msk.f32.gmra.mrb[18].mxu1 %vm329_vm1, %v4596_v12  ;;  %3698 = vmatmul.mubr.msk.f32.gmra.mrb[4].mxu0 %vm329_vm1, %v4281_v62  ;;  %v5259_v62 = vld [vmem:[#allocation21_spill] sm:$0xff] }
  0xa6   : > { %3486 = vmatprep.mubr.msk.f32.mxu1 %vm329_vm1, %v4599_v53  ;;  %3700 = vmatprep.mubr.msk.f32.mxu0 %vm329_vm1, %v4284_v63  ;;  %v5260_v63 = vld [vmem:[#allocation9_spill] sm:$0xff] }
  0xa9   : > { %3487 = vmatmul.mubr.msk.f32.gmra.mrb[20].mxu1 %vm329_vm1, %v4613_v19  ;;  %3701 = vmatmul.mubr.msk.f32.gmra.mrb[6].mxu0 %vm329_vm1, %v5254_v42  ;;  %v2131_v42 = vrot.slane %v4801_v13, 1 }
  0xaa   : > { %3489 = vmatprep.mubr.msk.f32.mxu1 %vm329_vm1, %v4616_v11  ;;  %3703 = vmatprep.mubr.msk.f32.mxu0 %vm329_vm1, %v5255_v49 }
  0xad   : > { %3490 = vmatmul.mubr.msk.f32.gmra.mrb[22].mxu1 %vm329_vm1, %v4635_v14  ;;  %3704 = vmatmul.mubr.msk.f32.gmra.mrb[8].mxu0 %vm329_vm1, %v5256_v50  ;;  %v5273_v50 = vld [vmem:[#allocation19_spill] sm:$0xff] }
  0xae   : > { %3492 = vmatprep.mubr.msk.f32.mxu1 %vm329_vm1, %v5257_v56  ;;  %3706 = vmatprep.mubr.msk.f32.mxu0 %vm329_vm1, %v5258_v57 }
  0xb1   : > { %3493 = vmatmul.mubr.msk.f32.gmra.mrb[24].mxu1 %vm329_vm1, %v5259_v62  ;;  %3707 = vmatmul.mubr.msk.f32.gmra.mrb[10].mxu0 %vm329_vm1, %v5260_v63 }
  0xb2   : > { %3503 = vmatprep.mubr.msk.f32.mxu1 %vm329_vm1, %v5261_v9  ;;  %3709 = vmatprep.mubr.msk.f32.mxu0 %vm329_vm1, %v5262_v31 }
  0xb5   : > { %3504 = vmatmul.mubr.msk.f32.vlgmr.msra.gmra.mrb[0].mxu1 %vm329_vm1, %v5263_v20  ;;  %3710 = vmatmul.mubr.msk.f32.gmra.mrb[12].mxu0 %vm329_vm1, %v5264_v41 }
  0xb6   : > { %3506 = vmatprep.mubr.msk.f32.mxu1 %vm329_vm1, %v4189_v28  ;;  %3712 = vmatprep.mubr.msk.f32.mxu0 %vm329_vm1, %v5265_v32  ;;  %v5270_v28 = vld [vmem:[#allocation16_spill] sm:$0xff] }
  0xb7   : > { %3851 = vmatpush3.bf16.msra.mxu1 %v4121_v3  ;;  %v5269_v3 = vld [vmem:[#allocation15_spill] sm:$0xff] }
  0xb8   : > { %3850 = vmatprep.subr.bf16.mxu1 %v5266_v7 }
  0xb9   : > { %3507 = vmatmul.mubr.msk.f32.gmra.mrb[2].mxu1 %vm329_vm1, %v4192_v29  ;;  %3713 = vmatmul.mubr.msk.f32.gmra.mrb[14].mxu0 %vm329_vm1, %v5267_v30  ;;  %v1426_v29 = vrot.slane %v4623_v26, 1 }
  0xba   : > { %3509 = vmatprep.mubr.msk.f32.mxu1 %vm329_vm1, %v4198_v33  ;;  %3715 = vmatprep.mubr.msk.f32.mxu0 %vm329_vm1, %v5268_v39  ;;  %v1427_v33 = vrot.slane %v4626_v22, 1 }
  0xbb   : > { %3852 = vmatpush3.bf16.msra.mxu1 %v5266_v7 }
  0xbc   : > { %v1428_v49 = vsel %vm258_vm0, %v1426_v29, %v1427_v33 }
  0xbd   : > { %3510 = vmatmul.mubr.msk.f32.gmra.mrb[4].mxu1 %vm329_vm1, %v4201_v34  ;;  %3716 = vmatmul.mubr.msk.f32.gmra.mrb[16].mxu0 %vm329_vm1, %v5269_v3  ;;  %v5272_v34 = vld [vmem:[#allocation18_spill] sm:$0xff] }
  0xbe   : > { %3512 = vmatprep.mubr.msk.f32.mxu1 %vm329_vm1, %v4222_v45  ;;  %3718 = vmatprep.mubr.msk.f32.mxu0 %vm329_vm1, %v5270_v28  ;;  %v2130_v45 = vrot.slane %v4790_v21, 1 }
  0xc1   : > { %3513 = vmatmul.mubr.msk.f32.gmra.mrb[6].mxu1 %vm329_vm1, %v4225_v46  ;;  %3719 = vmatmul.mubr.msk.f32.gmra.mrb[18].mxu0 %vm329_vm1, %v5271_v40  ;;  %v1430_v46 = vsel %vm258_vm0, %v1427_v33, 0.0 }
  0xc2   : > { %3515 = vmatprep.mubr.msk.f32.mxu1 %vm329_vm1, %v4246_v54  ;;  %3721 = vmatprep.mubr.msk.f32.mxu0 %vm329_vm1, %v5272_v34  ;;  %v2132_v54 = vsel %vm258_vm0, %v2130_v45, %v2131_v42 }
  0xc5   : > { %3516 = vmatmul.mubr.msk.f32.gmra.mrb[8].mxu1 %vm329_vm1, %v4249_v55  ;;  %3722 = vmatmul.mubr.msk.f32.gmra.mrb[20].mxu0 %vm329_vm1, %v5273_v50  ;;  %v2134_v55 = vsel %vm258_vm0, %v2131_v42, 0.0 }
  0xc6   : > { %3518 = vmatprep.mubr.msk.f32.mxu1 %vm329_vm1, %v4269_v60  ;;  %3724 = vmatprep.mubr.msk.f32.mxu0 %vm329_vm1, %v1428_v49 }
  0xc9   : > { %3519 = vmatmul.mubr.msk.f32.gmra.mrb[10].mxu1 %vm329_vm1, %v4272_v61  ;;  %3725 = vmatmul.mubr.msk.f32.gmra.mrb[22].mxu0 %vm329_vm1, %v1430_v46 }
  0xca   : > { %3521 = vmatprep.mubr.msk.f32.mxu1 %vm329_vm1, %v4291_v2  ;;  %3727 = vmatprep.mubr.msk.f32.mxu0 %vm329_vm1, %v2132_v54 }
  0xcd   : > { %3522 = vmatmul.mubr.msk.f32.gmra.mrb[12].mxu1 %vm329_vm1, %v4294_v4  ;;  %3728 = vmatmul.mubr.msk.f32.gmra.mrb[24].mxu0 %vm329_vm1, %v2134_v55 }
  0xce   : > { %3524 = vmatprep.mubr.msk.f32.mxu1 %vm329_vm1, %v4336_v17  ;;  %3738 = vmatprep.mubr.msk.f32.mxu0 %vm329_vm1, %v4395_v47 }
  0xd1   : > { %3525 = vmatmul.mubr.msk.f32.gmra.mrb[14].mxu1 %vm329_vm1, %v4339_v18  ;;  %3739 = vmatmul.mubr.msk.f32.vlgmr.msra.gmra.mrb[0].mxu0 %vm329_vm1, %v4424_v6 }
  0xd2   : > { %3527 = vmatprep.mubr.msk.f32.mxu1 %vm329_vm1, %v4362_v35  ;;  %3741 = vmatprep.mubr.msk.f32.mxu0 %vm329_vm1, %v4432_v16  ;;  %v2694_v16 = vlaneseq }
  0xd5   : > { %3528 = vmatmul.mubr.msk.f32.gmra.mrb[16].mxu1 %vm329_vm1, %v4365_v36  ;;  %3742 = vmatmul.mubr.msk.f32.gmra.mrb[2].mxu0 %vm329_vm1, %v4456_v37  ;;  %v2695_v37 = vshrl.u32 %v2694_v16, 7 }
  0xd6   : > { %3530 = vmatprep.mubr.msk.f32.mxu1 %vm329_vm1, %v4400_v52  ;;  %3744 = vmatprep.mubr.msk.f32.mxu0 %vm329_vm1, %v4464_v0 }
  0xd9   : > { %3531 = vmatmul.mubr.msk.f32.gmra.mrb[18].mxu1 %vm329_vm1, %v4403_v58  ;;  %3745 = vmatmul.mubr.msk.f32.gmra.mrb[4].mxu0 %vm329_vm1, %v4487_v59 }
  0xda   : > { %3533 = vmatprep.mubr.msk.f32.mxu1 %vm329_vm1, %v4437_v24  ;;  %3747 = vmatprep.mubr.msk.f32.mxu0 %vm329_vm1, %v4495_v10 }
  0xdd   : > { %3534 = vmatmul.mubr.msk.f32.gmra.mrb[20].mxu1 %vm329_vm1, %v4440_v25  ;;  %3748 = vmatmul.mubr.msk.f32.gmra.mrb[6].mxu0 %vm329_vm1, %v4511_v43 }
  0xde   : > { %3536 = vmatprep.mubr.msk.f32.mxu1 %vm329_vm1, %v4469_v27  ;;  %3750 = vmatprep.mubr.msk.f32.mxu0 %vm329_vm1, %v4517_v51  ;;  %v5038_v51 = vld [vmem:[%s5194_s2] ss:$0 sm:$0xff] }
  0xe1   : > { %3537 = vmatmul.mubr.msk.f32.gmra.mrb[22].mxu1 %vm329_vm1, %v4472_v8  ;;  %3751 = vmatmul.mubr.msk.f32.gmra.mrb[8].mxu0 %vm329_vm1, %v4533_v38  ;;  %v2366_v8 = vrot.slane %v4790_v21, 2  ;;  %v5043_v38 = vld [vmem:[%s5195_s3] ss:$0 sm:$0xff] }
  0xe2   : > { %3539 = vmatprep.mubr.msk.f32.mxu1 %vm329_vm1, %v4623_v26  ;;  %3753 = vmatprep.mubr.msk.f32.mxu0 %vm329_vm1, %v4536_v1  ;;  %v5274_v26 = vld [vmem:[#allocation22_spill] sm:$0xff]  ;;  %v5045_v1 = vadd.s32 8, %v2695_v37 }
  0xe4   : > { %vm2698_vm3 = vcmp.lt.s32.totalorder %v5045_v1, 13 }
  0xe5   : > { %3540 = vmatmul.mubr.msk.f32.gmra.mrb[24].mxu1 %vm329_vm1, %v4626_v22  ;;  %3754 = vmatmul.mubr.msk.f32.gmra.mrb[10].mxu0 %vm329_vm1, %v4555_v5  ;;  %v2367_v22 = vrot.slane %v4801_v13, 2 }
  0xe6   : > { %3571 = vmatprep.mubr.msk.f32.mxu1 %vm329_vm1, %v5262_v31  ;;  %3756 = vmatprep.mubr.msk.f32.mxu0 %vm329_vm1, %v4558_v15 }
  0xe7   : > { %v2368_v60 = vsel %vm837_vm2, %v2366_v8, %v2367_v22  ;;  %v2370_v61 = vsel %vm837_vm2, %v2367_v22, 0.0 }
  0xe9   : > { %3572 = vmatmul.mubr.msk.f32.vlgmr.msra.gmra.mrb[14].mxu1 %vm329_vm1, %v5264_v41  ;;  %3757 = vmatmul.mubr.msk.f32.gmra.mrb[12].mxu0 %vm329_vm1, %v4578_v44 }
  0xea   : > { %3574 = vmatprep.mubr.msk.f32.mxu1 %vm329_vm1, %v5265_v32  ;;  %3759 = vmatprep.mubr.msk.f32.mxu0 %vm329_vm1, %v4581_v23 }
  0xed   : > { %3575 = vmatmul.mubr.msk.f32.gmra.mrb[16].mxu1 %vm329_vm1, %v5267_v30  ;;  %3760 = vmatmul.mubr.msk.f32.gmra.mrb[14].mxu0 %vm329_vm1, %v4596_v12 }
  0xee   : > { %3577 = vmatprep.mubr.msk.f32.mxu1 %vm329_vm1, %v5268_v39  ;;  %3762 = vmatprep.mubr.msk.f32.mxu0 %vm329_vm1, %v4599_v53 }
  0xf1   : > { %3578 = vmatmul.mubr.msk.f32.gmra.mrb[18].mxu1 %vm329_vm1, %v5269_v3  ;;  %3763 = vmatmul.mubr.msk.f32.gmra.mrb[16].mxu0 %vm329_vm1, %v4613_v19 }
  0xf2   : > { %3580 = vmatprep.mubr.msk.f32.mxu1 %vm329_vm1, %v5270_v28  ;;  %3765 = vmatprep.mubr.msk.f32.mxu0 %vm329_vm1, %v4616_v11 }
  0xf5   : > { %3581 = vmatmul.mubr.msk.f32.gmra.mrb[20].mxu1 %vm329_vm1, %v5271_v40  ;;  %3766 = vmatmul.mubr.msk.f32.gmra.mrb[18].mxu0 %vm329_vm1, %v4635_v14 }
  0xf6   : > { %3583 = vmatprep.mubr.msk.f32.mxu1 %vm329_vm1, %v5272_v34  ;;  %3768 = vmatprep.mubr.msk.f32.mxu0 %vm329_vm1, %v5257_v56 }
  0xf9   : > { %3584 = vmatmul.mubr.msk.f32.gmra.mrb[22].mxu1 %vm329_vm1, %v5273_v50  ;;  %3769 = vmatmul.mubr.msk.f32.gmra.mrb[20].mxu0 %vm329_vm1, %v5259_v62 }
  0xfa   : > { %3586 = vmatprep.mubr.msk.f32.mxu1 %vm329_vm1, %v1428_v49  ;;  %3771 = vmatprep.mubr.msk.f32.mxu0 %vm329_vm1, %v5274_v26 }
  0xfd   : > { %3587 = vmatmul.mubr.msk.f32.gmra.mrb[24].mxu1 %vm329_vm1, %v1430_v46  ;;  %3772 = vmatmul.mubr.msk.f32.gmra.mrb[22].mxu0 %vm329_vm1, %v4665_v48 }
  0xfe   : > { %3774 = vmatprep.mubr.msk.f32.mxu0 %vm329_vm1, %v2368_v60 }
 0x101   : > { %3775 = vmatmul.mubr.msk.f32.gmra.mrb[24].mxu0 %vm329_vm1, %v2370_v61 }
 0x188   : > { %v3505_v2 = vpop.f32.mrb[0].mxu1 }
 0x189   : > { %v1271_v4 = vpop.f32.mrb[1].mxu1 }
 0x18c   : > { %v3508_v17 = vpop.f32.mrb[2].mxu1 }
 0x18d   : > { %v1281_v18 = vpop.f32.mrb[3].mxu1 }
 0x190   : > { %v3511_v27 = vpop.f32.mrb[4].mxu1 }
 0x191   : > { %v1291_v35 = vpop.f32.mrb[5].mxu1 }
 0x194   : > { %v3514_v36 = vpop.f32.mrb[6].mxu1 }
 0x195   : > { %v1301_v47 = vpop.f32.mrb[7].mxu1 }
 0x198   : > { %v3517_v52 = vpop.f32.mrb[8].mxu1 }
 0x199   : > { %v5025_v58 = vpop.f32.mrb[9].mxu1 }
 0x19c   : > { %v5027_v6 = vpop.f32.mrb[10].mxu1 }
 0x19d   : > { %v5029_v10 = vpop.f32.mrb[11].mxu1 }
 0x1a0   : > { %v5031_v24 = vpop.f32.mrb[12].mxu1 }
 0x1a1   : > { %v5033_v25 = vpop.f32.mrb[13].mxu1 }
 0x1a4   : > { %v3740_v0 = vpop.f32.mrb[0].mxu0 }
 0x1a5   : > { %v3853_v59 = vadd.f32 %v3740_v0, %v3505_v2  ;;  %v2447_v43 = vpop.f32.mrb[1].mxu0 }
 0x1a6   : > { %v3854_v5 = vadd.f32 %v2447_v43, %v1271_v4 }
 0x1a7   : > { %v2610_v15 = vmul.f32 %v3853_v59, %v5038_v51 }
 0x1a8   : > { %v2609_v44 = vmul.f32 %v3854_v5, %v5038_v51  ;;  %v3743_v23 = vpop.f32.mrb[2].mxu0 }
 0x1a9   : > { %v2643_v12 = vadd.f32 %v5043_v38, %v2610_v15  ;;  %v3855_v53 = vadd.f32 %v3743_v23, %v3508_v17  ;;  %v2457_v19 = vpop.f32.mrb[3].mxu0 }
 0x1aa   : > { %v2642_v11 = vadd.f32 %v5043_v38, %v2609_v44  ;;  %v3856_v14 = vadd.f32 %v2457_v19, %v1281_v18 }
 0x1ab   : > { %v2669_v48 = vmax.f32 %v2643_v12, 0.0  ;;  %v2612_v21 = vmul.f32 %v3855_v53, %v5038_v51 }
 0x1ac   : > { %v2668_v13 = vmax.f32 %v2642_v11, 0.0  ;;  %v2611_v56 = vmul.f32 %v3856_v14, %v5038_v51  ;;  %v3746_v57 = vpop.f32.mrb[4].mxu0 }
 0x1ad   : > { %v2700_v62 = vsel %vm2698_vm3, %v2669_v48, 0.0  ;;  %v2645_v63 = vadd.f32 %v5043_v38, %v2612_v21  ;;  %v3857_v9 = vadd.f32 %v3746_v57, %v3511_v27  ;;  %v2467_v31 = vpop.f32.mrb[5].mxu0 }
 0x1ae   : > { %2727 = vst.msk [vmem:[%s5056_s29 + $0x8] sm:$0xff] %vm2725_vm4, %v2700_v62  ;;  %2726 = vst.msk [vmem:[%s5056_s29] sm:$0xff] %vm2725_vm4, %v2668_v13  ;;  %v2644_v20 = vadd.f32 %v5043_v38, %v2611_v56  ;;  %v3858_v41 = vadd.f32 %v2467_v31, %v1291_v35 }
 0x1af   : > { %v2671_v32 = vmax.f32 %v2645_v63, 0.0  ;;  %v2614_v7 = vmul.f32 %v3857_v9, %v5038_v51 }
 0x1b0   : > { %v2670_v30 = vmax.f32 %v2644_v20, 0.0  ;;  %v2613_v39 = vmul.f32 %v3858_v41, %v5038_v51  ;;  %v3749_v3 = vpop.f32.mrb[6].mxu0 }
 0x1b1   : > { %v2702_v28 = vsel %vm2698_vm3, %v2671_v32, 0.0  ;;  %v2647_v29 = vadd.f32 %v5043_v38, %v2614_v7  ;;  %v3859_v33 = vadd.f32 %v3749_v3, %v3514_v36  ;;  %v2477_v40 = vpop.f32.mrb[7].mxu0 }
 0x1b2   : > { %2729 = vst.msk [vmem:[%s5056_s29 + $0x18] sm:$0xff] %vm2725_vm4, %v2702_v28  ;;  %2728 = vst.msk [vmem:[%s5056_s29 + $0x10] sm:$0xff] %vm2725_vm4, %v2670_v30  ;;  %v2646_v34 = vadd.f32 %v5043_v38, %v2613_v39  ;;  %v3860_v45 = vadd.f32 %v2477_v40, %v1301_v47 }
 0x1b3   : > { %v2673_v42 = vmax.f32 %v2647_v29, 0.0  ;;  %v2616_v49 = vmul.f32 %v3859_v33, %v5038_v51 }
 0x1b4   : > { %v2672_v50 = vmax.f32 %v2646_v34, 0.0  ;;  %v2615_v46 = vmul.f32 %v3860_v45, %v5038_v51  ;;  %v3752_v54 = vpop.f32.mrb[8].mxu0 }
 0x1b5   : > { %v2704_v55 = vsel %vm2698_vm3, %v2673_v42, 0.0  ;;  %v2649_v8 = vadd.f32 %v5043_v38, %v2616_v49  ;;  %v3861_v22 = vadd.f32 %v3752_v54, %v3517_v52  ;;  %v2487_v26 = vpop.f32.mrb[9].mxu0 }
 0x1b6   : > { %2731 = vst.msk [vmem:[%s5056_s29 + $0x28] sm:$0xff] %vm2725_vm4, %v2704_v55  ;;  %2730 = vst.msk [vmem:[%s5056_s29 + $0x20] sm:$0xff] %vm2725_vm4, %v2672_v50  ;;  %v2648_v60 = vadd.f32 %v5043_v38, %v2615_v46  ;;  %v3862_v61 = vadd.f32 %v2487_v26, %v5025_v58 }
 0x1b7   : > { %v2675_v2 = vmax.f32 %v2649_v8, 0.0  ;;  %v2618_v4 = vmul.f32 %v3861_v22, %v5038_v51 }
 0x1b8   : > { %v2674_v17 = vmax.f32 %v2648_v60, 0.0  ;;  %v2617_v18 = vmul.f32 %v3862_v61, %v5038_v51  ;;  %v3755_v27 = vpop.f32.mrb[10].mxu0 }
 0x1b9   : > { %v2706_v35 = vsel %vm2698_vm3, %v2675_v2, 0.0  ;;  %v2651_v36 = vadd.f32 %v5043_v38, %v2618_v4  ;;  %v3863_v47 = vadd.f32 %v3755_v27, %v5027_v6  ;;  %v2497_v52 = vpop.f32.mrb[11].mxu0 }
 0x1ba   : > { %2733 = vst.msk [vmem:[%s5056_s29 + $0x38] sm:$0xff] %vm2725_vm4, %v2706_v35  ;;  %2732 = vst.msk [vmem:[%s5056_s29 + $0x30] sm:$0xff] %vm2725_vm4, %v2674_v17  ;;  %v2650_v58 = vadd.f32 %v5043_v38, %v2617_v18  ;;  %v3864_v16 = vadd.f32 %v2497_v52, %v5029_v10 }
 0x1bb   : > { %v2677_v37 = vmax.f32 %v2651_v36, 0.0  ;;  %v2620_v0 = vmul.f32 %v3863_v47, %v5038_v51 }
 0x1bc   : > { %v3573_v59 = vpop.f32.mrb[14].mxu1  ;;  %v2676_v43 = vmax.f32 %v2650_v58, 0.0  ;;  %v2619_v5 = vmul.f32 %v3864_v16, %v5038_v51  ;;  %v3758_v15 = vpop.f32.mrb[12].mxu0 }
 0x1bd   : > { %v1577_v6 = vpop.f32.mrb[15].mxu1  ;;  %v2708_v44 = vsel %vm2698_vm3, %v2677_v37, 0.0  ;;  %v2653_v23 = vadd.f32 %v5043_v38, %v2620_v0  ;;  %v3865_v12 = vadd.f32 %v3758_v15, %v5031_v24  ;;  %v2507_v53 = vpop.f32.mrb[13].mxu0 }
 0x1be   : > { %2735 = vst.msk [vmem:[%s5056_s29 + $0x48] sm:$0xff] %vm2725_vm4, %v2708_v44  ;;  %2734 = vst.msk [vmem:[%s5056_s29 + $0x40] sm:$0xff] %vm2725_vm4, %v2676_v43  ;;  %v2652_v10 = vadd.f32 %v5043_v38, %v2619_v5  ;;  %v3866_v19 = vadd.f32 %v2507_v53, %v5033_v25 }
 0x1bf   : > { %v2679_v11 = vmax.f32 %v2653_v23, 0.0  ;;  %v2622_v14 = vmul.f32 %v3865_v12, %v5038_v51 }
 0x1c0   : > { %v3576_v48 = vpop.f32.mrb[16].mxu1  ;;  %v2678_v21 = vmax.f32 %v2652_v10, 0.0  ;;  %v2621_v13 = vmul.f32 %v3866_v19, %v5038_v51  ;;  %v3761_v56 = vpop.f32.mrb[14].mxu0 }
 0x1c1   : > { %v1587_v24 = vpop.f32.mrb[17].mxu1  ;;  %v2710_v57 = vsel %vm2698_vm3, %v2679_v11, 0.0  ;;  %v2655_v62 = vadd.f32 %v5043_v38, %v2622_v14  ;;  %v3867_v63 = vadd.f32 %v3761_v56, %v3573_v59  ;;  %v2517_v9 = vpop.f32.mrb[15].mxu0 }
 0x1c2   : > { %2737 = vst.msk [vmem:[%s5056_s29 + $0x58] sm:$0xff] %vm2725_vm4, %v2710_v57  ;;  %2736 = vst.msk [vmem:[%s5056_s29 + $0x50] sm:$0xff] %vm2725_vm4, %v2678_v21  ;;  %v2654_v25 = vadd.f32 %v5043_v38, %v2621_v13  ;;  %v3868_v31 = vadd.f32 %v2517_v9, %v1577_v6 }
 0x1c3   : > { %v2681_v20 = vmax.f32 %v2655_v62, 0.0  ;;  %v2624_v41 = vmul.f32 %v3867_v63, %v5038_v51 }
 0x1c4   : > { %v3579_v32 = vpop.f32.mrb[18].mxu1  ;;  %v2680_v7 = vmax.f32 %v2654_v25, 0.0  ;;  %v2623_v30 = vmul.f32 %v3868_v31, %v5038_v51  ;;  %v3764_v39 = vpop.f32.mrb[16].mxu0 }
 0x1c5   : > { %v1597_v3 = vpop.f32.mrb[19].mxu1  ;;  %v2712_v28 = vsel %vm2698_vm3, %v2681_v20, 0.0  ;;  %v2657_v29 = vadd.f32 %v5043_v38, %v2624_v41  ;;  %v3869_v33 = vadd.f32 %v3764_v39, %v3576_v48  ;;  %v2527_v40 = vpop.f32.mrb[17].mxu0 }
 0x1c6   : > { %2739 = vst.msk [vmem:[%s5056_s29 + $0x68] sm:$0xff] %vm2725_vm4, %v2712_v28  ;;  %2738 = vst.msk [vmem:[%s5056_s29 + $0x60] sm:$0xff] %vm2725_vm4, %v2680_v7  ;;  %v2656_v34 = vadd.f32 %v5043_v38, %v2623_v30  ;;  %v3870_v45 = vadd.f32 %v2527_v40, %v1587_v24 }
 0x1c7   : > { %v2683_v42 = vmax.f32 %v2657_v29, 0.0  ;;  %v2626_v49 = vmul.f32 %v3869_v33, %v5038_v51 }
 0x1c8   : > { %v3582_v50 = vpop.f32.mrb[20].mxu1  ;;  %v2682_v46 = vmax.f32 %v2656_v34, 0.0  ;;  %v2625_v54 = vmul.f32 %v3870_v45, %v5038_v51  ;;  %v3767_v55 = vpop.f32.mrb[18].mxu0 }
 0x1c9   : > { %v1607_v8 = vpop.f32.mrb[21].mxu1  ;;  %v2714_v22 = vsel %vm2698_vm3, %v2683_v42, 0.0  ;;  %v2659_v26 = vadd.f32 %v5043_v38, %v2626_v49  ;;  %v3871_v60 = vadd.f32 %v3767_v55, %v3579_v32  ;;  %v2537_v61 = vpop.f32.mrb[19].mxu0 }
 0x1ca   : > { %2741 = vst.msk [vmem:[%s5056_s29 + $0x78] sm:$0xff] %vm2725_vm4, %v2714_v22  ;;  %2740 = vst.msk [vmem:[%s5056_s29 + $0x70] sm:$0xff] %vm2725_vm4, %v2682_v46  ;;  %v2658_v2 = vadd.f32 %v5043_v38, %v2625_v54  ;;  %v3872_v4 = vadd.f32 %v2537_v61, %v1597_v3 }
 0x1cb   : > { %v2685_v17 = vmax.f32 %v2659_v26, 0.0  ;;  %v2628_v18 = vmul.f32 %v3871_v60, %v5038_v51 }
 0x1cc   : > { %v3585_v27 = vpop.f32.mrb[22].mxu1  ;;  %v2684_v35 = vmax.f32 %v2658_v2, 0.0  ;;  %v2627_v36 = vmul.f32 %v3872_v4, %v5038_v51  ;;  %v3770_v47 = vpop.f32.mrb[20].mxu0 }
 0x1cd   : > { %v1617_v52 = vpop.f32.mrb[23].mxu1  ;;  %v2716_v58 = vsel %vm2698_vm3, %v2685_v17, 0.0  ;;  %v2661_v16 = vadd.f32 %v5043_v38, %v2628_v18  ;;  %v3873_v37 = vadd.f32 %v3770_v47, %v3582_v50  ;;  %v2547_v0 = vpop.f32.mrb[21].mxu0 }
 0x1ce   : > { %2743 = vst.msk [vmem:[%s5056_s29 + $0x88] sm:$0xff] %vm2725_vm4, %v2716_v58  ;;  %2742 = vst.msk [vmem:[%s5056_s29 + $0x80] sm:$0xff] %vm2725_vm4, %v2684_v35  ;;  %v2660_v59 = vadd.f32 %v5043_v38, %v2627_v36  ;;  %v3874_v43 = vadd.f32 %v2547_v0, %v1607_v8 }
 0x1cf   : > { %v2687_v5 = vmax.f32 %v2661_v16, 0.0  ;;  %v2630_v15 = vmul.f32 %v3873_v37, %v5038_v51 }
 0x1d0   : > { %v3588_v6 = vpop.f32.mrb[24].mxu1  ;;  %v2686_v44 = vmax.f32 %v2660_v59, 0.0  ;;  %v2629_v23 = vmul.f32 %v3874_v43, %v5038_v51  ;;  %v3773_v12 = vpop.f32.mrb[22].mxu0 }
 0x1d1   : > { %v1627_v53 = vpop.f32.mrb[25].mxu1  ;;  %v2718_v10 = vsel %vm2698_vm3, %v2687_v5, 0.0  ;;  %v2663_v19 = vadd.f32 %v5043_v38, %v2630_v15  ;;  %v3875_v11 = vadd.f32 %v3773_v12, %v3585_v27  ;;  %v2557_v14 = vpop.f32.mrb[23].mxu0 }
 0x1d2   : > { %2745 = vst.msk [vmem:[%s5056_s29 + $0x98] sm:$0xff] %vm2725_vm4, %v2718_v10  ;;  %2744 = vst.msk [vmem:[%s5056_s29 + $0x90] sm:$0xff] %vm2725_vm4, %v2686_v44  ;;  %v2662_v48 = vadd.f32 %v5043_v38, %v2629_v23  ;;  %v3876_v21 = vadd.f32 %v2557_v14, %v1617_v52 }
 0x1d3   : > { %v2689_v13 = vmax.f32 %v2663_v19, 0.0  ;;  %v2632_v56 = vmul.f32 %v3875_v11, %v5038_v51 }
 0x1d4   : > { %v2688_v24 = vmax.f32 %v2662_v48, 0.0  ;;  %v2631_v57 = vmul.f32 %v3876_v21, %v5038_v51  ;;  %v3776_v62 = vpop.f32.mrb[24].mxu0 }
 0x1d5   : > { %v2720_v63 = vsel %vm2698_vm3, %v2689_v13, 0.0  ;;  %v2665_v9 = vadd.f32 %v5043_v38, %v2632_v56  ;;  %v3877_v25 = vadd.f32 %v3776_v62, %v3588_v6  ;;  %v2567_v31 = vpop.f32.mrb[25].mxu0 }
 0x1d6   : > { %2747 = vst.msk [vmem:[%s5056_s29 + $0xa8] sm:$0xff] %vm2725_vm4, %v2720_v63  ;;  %2746 = vst.msk [vmem:[%s5056_s29 + $0xa0] sm:$0xff] %vm2725_vm4, %v2688_v24  ;;  %v2664_v20 = vadd.f32 %v5043_v38, %v2631_v57  ;;  %v3878_v41 = vadd.f32 %v2567_v31, %v1627_v53 }
 0x1d7   : > { %v2691_v32 = vmax.f32 %v2665_v9, 0.0  ;;  %v2634_v7 = vmul.f32 %v3877_v25, %v5038_v51 }
 0x1d8   : > { %v2690_v30 = vmax.f32 %v2664_v20, 0.0  ;;  %v2633_v39 = vmul.f32 %v3878_v41, %v5038_v51 }
 0x1d9   : > { %v2722_v3 = vsel %vm2698_vm3, %v2691_v32, 0.0  ;;  %v2667_v28 = vadd.f32 %v5043_v38, %v2634_v7 }
 0x1da   : > { %2749 = vst.msk [vmem:[%s5056_s29 + $0xb8] sm:$0xff] %vm2725_vm4, %v2722_v3  ;;  %2748 = vst.msk [vmem:[%s5056_s29 + $0xb0] sm:$0xff] %vm2725_vm4, %v2690_v30  ;;  %v2666_v29 = vadd.f32 %v5043_v38, %v2633_v39 }
 0x1db   : > { %v2693_v33 = vmax.f32 %v2667_v28, 0.0 }
 0x1dc   : > { %v2692_v40 = vmax.f32 %v2666_v29, 0.0 }
 0x1dd   : > { %v2724_v34 = vsel %vm2698_vm3, %v2693_v33, 0.0 }
 0x1de   : > { %2751 = vst.msk [vmem:[%s5056_s29 + $0xc8] sm:$0xff] %vm2725_vm4, %v2724_v34  ;;  %2750 = vst.msk [vmem:[%s5056_s29 + $0xc0] sm:$0xff] %vm2725_vm4, %v2692_v40 }
 0x1df PF: > { %s14_s15 = sadd.s32 1, %s4077_s15  }
 0x1e0   : > { %p11_p4 = scmp.ge.s32.totalorder %s14_s15, 4  }
 0x1e2   :  { %13 = sbr.rel (!%p11_p4) target bundleno = 1 (0x1), region = 74 }

// kernel: inception_v3_forward.11
= control target key start
LH: loop header
LB: loop body
LE: loop exit
PB: predicated region body
PF: predicated region fallthrough
CT: control target
= control target key end

     0   :  { %s1970_s15 = smov 0   ;;  %s2738_s0 = inlined_call_operand.vmem [shape: f32[2,6,8,80], index: 0, kind: input, shape index: {}]   ;;  %s2739_s1 = inlined_call_operand.vmem [shape: f32[9,80,192], index: 1, kind: input, shape index: {}]   ;;  %s2740_s2 = inlined_call_operand.vmem [shape: f32[1,192], index: 2, kind: input, shape index: {}]   ;;  %s2741_s3 = inlined_call_operand.vmem [shape: f32[1,192], index: 3, kind: input, shape index: {}]   ;;  %s2742_s4 = inlined_call_operand.vmem [shape: f32[2,4,8,192], index: 4, kind: output, shape index: {}]  }
   0x1 LB: > { %s1465_s16 = sadd.s32 4294967295, %s1942_s15   ;;  %p1469_p0 = scmp.ge.s32.totalorder %s1942_s15, 1  ;;  %s1942_s15 = sphi %s1970_s15, %s14_s15  }
   0x2   : > { %p162_p1 = scmp.lt.s32.totalorder %s1942_s15, 3 }
   0x4   : > { %p163_p2 = pnand %p1469_p0, %p162_p1 }
   0x5   : > { %v1474_v0 = vld [vmem:[%s2739_s1 + $0xa8] sm:$0xff] (!%p163_p2)  ;;  %v1476_v1 = vld [vmem:[%s2739_s1 + $0xb8] sm:$0xff] (!%p163_p2)  ;;  %p1987_p3 = scmp.lt.s32.totalorder (!%p163_p2), %s1465_s16, 1  ;;  %v1473_v5 = vld [vmem:[%s2739_s1 + $0xa0] sm:$0xff] (!%p163_p2)  ;;  %v1944_v7 = vmov (!%p163_p2), 0.0   ;;  %vm236_vm0 = vcmask (!%p163_p2), 1046528  }
   0x6   : > { %166 = sbr.rel (%p163_p2) target bundleno = 336 (0x150), region = 36  ;;  %v1550_v2 = vld [vmem:[%s2739_s1 + $0x288] sm:$0xff] (!%p163_p2)  ;;  %v1672_v3 = vpack.c.bf16 (!%p163_p2), %v1476_v1, %v1474_v0  ;;  %v1552_v4 = vld [vmem:[%s2739_s1 + $0x298] sm:$0xff] (!%p163_p2)  ;;  %v1475_v6 = vld [vmem:[%s2739_s1 + $0xb0] sm:$0xff] (!%p163_p2)  ;;  %339 = vmatprep.mubr.f32.mxu1 (!%p163_p2), %v1944_v7  ;;  %816 = vmatprep.mubr.f32.mxu0 (!%p163_p2), %v1944_v7  ;;  %vm262_vm1 = vcmask (!%p163_p2), 654336   ;;  %vm469_vm2 = vcmask (!%p163_p2), 1045504  }
   0x7   : > { %v1752_v8 = vpack.c.bf16 (!%p163_p2), %v1552_v4, %v1550_v2  ;;  %v1674_v9 = vpack.c.bf16 (!%p163_p2), %v1475_v6, %v1473_v5  ;;  %v1549_v10 = vld [vmem:[%s2739_s1 + $0x280] sm:$0xff] (!%p163_p2)  ;;  %v1551_v11 = vld [vmem:[%s2739_s1 + $0x290] sm:$0xff] (!%p163_p2)  ;;  %v1478_v12 = vld [vmem:[%s2739_s1 + $0xc8] sm:$0xff] (!%p163_p2)  ;;  %vm1402_vm4 = vcmask (!%p163_p2), 523264  }
   0x8   : > { %1673 = vmatprep.subr.bf16.mxu1 (!%p163_p2), %v1672_v3  ;;  %v1754_v13 = vpack.c.bf16 (!%p163_p2), %v1551_v11, %v1549_v10  ;;  %v1480_v14 = vld [vmem:[%s2739_s1 + $0xd8] sm:$0xff] (!%p163_p2)  ;;  %v1554_v15 = vld [vmem:[%s2739_s1 + $0x2a8] sm:$0xff] (!%p163_p2)  ;;  %v1477_v19 = vld [vmem:[%s2739_s1 + $0xc0] sm:$0xff] (!%p163_p2) }
   0x9   : > { %v1556_v16 = vld [vmem:[%s2739_s1 + $0x2b8] sm:$0xff] (!%p163_p2)  ;;  %1753 = vmatprep.subr.bf16.mxu0 (!%p163_p2), %v1752_v8  ;;  %1675 = vmatpush1.bf16.msra.mxu1 (!%p163_p2), %v1674_v9  ;;  %v1676_v17 = vpack.c.bf16 (!%p163_p2), %v1480_v14, %v1478_v12  ;;  %v1479_v20 = vld [vmem:[%s2739_s1 + $0xd0] sm:$0xff] (!%p163_p2)  ;;  %v1553_v21 = vld [vmem:[%s2739_s1 + $0x2a0] sm:$0xff] (!%p163_p2) }
   0xa   : > { %v1756_v18 = vpack.c.bf16 (!%p163_p2), %v1556_v16, %v1554_v15  ;;  %1755 = vmatpush1.bf16.msra.mxu0 (!%p163_p2), %v1754_v13  ;;  %v1678_v22 = vpack.c.bf16 (!%p163_p2), %v1479_v20, %v1477_v19  ;;  %v1555_v23 = vld [vmem:[%s2739_s1 + $0x2b0] sm:$0xff] (!%p163_p2)  ;;  %v1482_v24 = vld [vmem:[%s2739_s1 + $0xe8] sm:$0xff] (!%p163_p2)  ;;  %v1484_v25 = vld [vmem:[%s2739_s1 + $0xf8] sm:$0xff] (!%p163_p2) }
   0xb   : > { %1677 = vmatprep.subr.bf16.mxu1 (!%p163_p2), %v1676_v17  ;;  %v1758_v26 = vpack.c.bf16 (!%p163_p2), %v1555_v23, %v1553_v21  ;;  %v1680_v27 = vpack.c.bf16 (!%p163_p2), %v1484_v25, %v1482_v24  ;;  %v1558_v28 = vld [vmem:[%s2739_s1 + $0x2c8] sm:$0xff] (!%p163_p2)  ;;  %v1560_v29 = vld [vmem:[%s2739_s1 + $0x2d8] sm:$0xff] (!%p163_p2)  ;;  %v1481_v30 = vld [vmem:[%s2739_s1 + $0xe0] sm:$0xff] (!%p163_p2) }
   0xc   : > { %1757 = vmatprep.subr.bf16.mxu0 (!%p163_p2), %v1756_v18  ;;  %v1760_v31 = vpack.c.bf16 (!%p163_p2), %v1560_v29, %v1558_v28  ;;  %v1483_v32 = vld [vmem:[%s2739_s1 + $0xf0] sm:$0xff] (!%p163_p2)  ;;  %v1557_v33 = vld [vmem:[%s2739_s1 + $0x2c0] sm:$0xff] (!%p163_p2)  ;;  %v1486_v36 = vld [vmem:[%s2739_s1 + $0x108] sm:$0xff] (!%p163_p2) }
   0xd   : > { %s2745_s16 = smov (!%p1987_p3, %s1465_s16), 1  ;;  %v1559_v34 = vld [vmem:[%s2739_s1 + $0x2d0] sm:$0xff]  ;;  %1679 = vmatpush1.bf16.msra.mxu1 %v1678_v22  ;;  %v1682_v35 = vpack.c.bf16 %v1483_v32, %v1481_v30  ;;  %v1488_v37 = vld [vmem:[%s2739_s1 + $0x118] sm:$0xff]  ;;  %v1562_v38 = vld [vmem:[%s2739_s1 + $0x2e8] sm:$0xff] }
   0xe   : > { %s1926_s18 = smul.u32 48, %s2745_s16  ;;  %1759 = vmatpush1.bf16.msra.mxu0 %v1758_v26  ;;  %1681 = vmatprep.subr.bf16.mxu1 %v1680_v27  ;;  %v1762_v39 = vpack.c.bf16 %v1559_v34, %v1557_v33  ;;  %v1684_v40 = vpack.c.bf16 %v1488_v37, %v1486_v36  ;;  %v1564_v41 = vld [vmem:[%s2739_s1 + $0x2f8] sm:$0xff]  ;;  %v1485_v42 = vld [vmem:[%s2739_s1 + $0x100] sm:$0xff]  ;;  %v1487_v43 = vld [vmem:[%s2739_s1 + $0x110] sm:$0xff]  ;;  %s1671_s10 = sshll.u32 %s2745_s16, 6 }
   0xf   : > { %1761 = vmatprep.subr.bf16.mxu0 %v1760_v31  ;;  %v1764_v44 = vpack.c.bf16 %v1564_v41, %v1562_v38  ;;  %v1561_v45 = vld [vmem:[%s2739_s1 + $0x2e0] sm:$0xff]  ;;  %v1563_v46 = vld [vmem:[%s2739_s1 + $0x2f0] sm:$0xff]  ;;  %v1490_v47 = vld [vmem:[%s2739_s1 + $0x128] sm:$0xff]  ;;  %v1686_v51 = vpack.c.bf16 %v1487_v43, %v1485_v42  ;;  %s2705_s16 = scalar_lea.vmem %s2742_s4, %s1671_s10 }
  0x10   : > { %v1492_v48 = vld [vmem:[%s2739_s1 + $0x138] sm:$0xff]  ;;  %v1566_v49 = vld [vmem:[%s2739_s1 + $0x308] sm:$0xff]  ;;  %s2100_s22 = scalar_lea.vmem %s2738_s0, %s1926_s18  ;;  %v1489_v52 = vld [vmem:[%s2739_s1 + $0x120] sm:$0xff]  ;;  %v1766_v53 = vpack.c.bf16 %v1563_v46, %v1561_v45 }
  0x11   : > { %v1568_v50 = vld [vmem:[%s2739_s1 + $0x318] sm:$0xff]  ;;  %1683 = vmatpush1.bf16.msra.mxu1 %v1682_v35  ;;  %v1688_v54 = vpack.c.bf16 %v1492_v48, %v1490_v47  ;;  %v1491_v55 = vld [vmem:[%s2739_s1 + $0x130] sm:$0xff]  ;;  %v1565_v56 = vld [vmem:[%s2739_s1 + $0x300] sm:$0xff] }
  0x12   : > { %1763 = vmatpush1.bf16.msra.mxu0 %v1762_v39  ;;  %1685 = vmatprep.subr.bf16.mxu1 %v1684_v40  ;;  %v1567_v57 = vld [vmem:[%s2739_s1 + $0x310] sm:$0xff]  ;;  %v1768_v58 = vpack.c.bf16 %v1568_v50, %v1566_v49  ;;  %v205_v59 = vld [vmem:[%s2739_s1 + $0x8] sm:$0xff]  ;;  %v207_v60 = vld [vmem:[%s2739_s1 + $0x18] sm:$0xff]  ;;  %v1690_v1 = vpack.c.bf16 %v1491_v55, %v1489_v52 }
  0x13   : > { %1765 = vmatprep.subr.bf16.mxu0 %v1764_v44  ;;  %v2121_v61 = vld [vmem:[%s2100_s22] sm:$0xff]  ;;  %v1574_v62 = vld [vmem:[%s2739_s1 + $0x328] sm:$0xff]  ;;  %v1576_v63 = vld [vmem:[%s2739_s1 + $0x338] sm:$0xff]  ;;  %v1770_v3 = vpack.c.bf16 %v1567_v57, %v1565_v56  ;;  %v1692_v4 = vpack.c.bf16 %v207_v60, %v205_v59 }
  0x14   : > { %v2130_v0 = vld [vmem:[%s2100_s22 + $0x8] sm:$0xff]  ;;  %v228_v2 = vrot.slane %v2121_v61, 1  ;;  %v204_v5 = vld [vmem:[%s2739_s1] sm:$0xff]  ;;  %v206_v6 = vld [vmem:[%s2739_s1 + $0x10] sm:$0xff]  ;;  %v1772_v10 = vpack.c.bf16 %v1576_v63, %v1574_v62 }
  0x15   : > { %1687 = vmatpush1.bf16.msra.mxu1 %v1686_v51  ;;  %v229_v8 = vrot.slane %v2130_v0, 1  ;;  %v1573_v9 = vld [vmem:[%s2739_s1 + $0x320] sm:$0xff]  ;;  %v1575_v11 = vld [vmem:[%s2739_s1 + $0x330] sm:$0xff]  ;;  %v209_v12 = vld [vmem:[%s2739_s1 + $0x28] sm:$0xff]  ;;  %v1694_v17 = vpack.c.bf16 %v206_v6, %v204_v5 }
  0x16   : > { %1767 = vmatpush1.bf16.msra.mxu0 %v1766_v53  ;;  %1689 = vmatprep.subr.bf16.mxu1 %v1688_v54  ;;  %v211_v13 = vld [vmem:[%s2739_s1 + $0x38] sm:$0xff]  ;;  %v1578_v14 = vld [vmem:[%s2739_s1 + $0x348] sm:$0xff]  ;;  %v237_v16 = vsel %vm236_vm0, %v228_v2, 0.0  ;;  %v208_v18 = vld [vmem:[%s2739_s1 + $0x20] sm:$0xff]  ;;  %v1774_v20 = vpack.c.bf16 %v1575_v11, %v1573_v9 }
  0x17   : > { %1769 = vmatprep.subr.bf16.mxu0 %v1768_v58  ;;  %v1580_v15 = vld [vmem:[%s2739_s1 + $0x358] sm:$0xff]  ;;  %v238_v19 = vsel %vm236_vm0, %v229_v8, 0.0  ;;  %v1696_v21 = vpack.c.bf16 %v211_v13, %v209_v12  ;;  %v210_v22 = vld [vmem:[%s2739_s1 + $0x30] sm:$0xff]  ;;  %v1577_v23 = vld [vmem:[%s2739_s1 + $0x340] sm:$0xff] }
  0x18   : > { %v2170_v24 = vld [vmem:[%s2100_s22 + $0x10] sm:$0xff]  ;;  %v1776_v25 = vpack.c.bf16 %v1580_v15, %v1578_v14  ;;  %v213_v27 = vld [vmem:[%s2739_s1 + $0x48] sm:$0xff]  ;;  %v215_v28 = vld [vmem:[%s2739_s1 + $0x58] sm:$0xff]  ;;  %v1698_v32 = vpack.c.bf16 %v210_v22, %v208_v18 }
  0x19   : > { %1691 = vmatpush1.bf16.msra.mxu1 %v1690_v1  ;;  %v1579_v26 = vld [vmem:[%s2739_s1 + $0x350] sm:$0xff]  ;;  %v230_v29 = vrot.slane %v2170_v24, 1  ;;  %v1582_v30 = vld [vmem:[%s2739_s1 + $0x368] sm:$0xff]  ;;  %v1584_v31 = vld [vmem:[%s2739_s1 + $0x378] sm:$0xff]  ;;  %v1700_v35 = vpack.c.bf16 %v215_v28, %v213_v27 }
  0x1a   : > { %1771 = vmatpush1.bf16.msra.mxu0 %v1770_v3  ;;  %1693 = vmatprep.subr.bf16.mxu1 %v1692_v4  ;;  %v2191_v33 = vld [vmem:[%s2100_s22 + $0x18] sm:$0xff]  ;;  %v1778_v34 = vpack.c.bf16 %v1579_v26, %v1577_v23  ;;  %v212_v36 = vld [vmem:[%s2739_s1 + $0x40] sm:$0xff]  ;;  %v214_v37 = vld [vmem:[%s2739_s1 + $0x50] sm:$0xff]  ;;  %v1780_v41 = vpack.c.bf16 %v1584_v31, %v1582_v30 }
  0x1b   : > { %1773 = vmatprep.subr.bf16.mxu0 %v1772_v10  ;;  %v2200_v38 = vsel %vm236_vm0, %v230_v29, 0.0  ;;  %v1581_v39 = vld [vmem:[%s2739_s1 + $0x360] sm:$0xff]  ;;  %v231_v40 = vrot.slane %v2191_v33, 1  ;;  %v1583_v42 = vld [vmem:[%s2739_s1 + $0x370] sm:$0xff]  ;;  %v217_v43 = vld [vmem:[%s2739_s1 + $0x68] sm:$0xff]  ;;  %v1702_v48 = vpack.c.bf16 %v214_v37, %v212_v36  ;;  %v463_v36 = vrot.slane %v2170_v24, 2 }
  0x1c   : > { %1493 = vmatmul.mubr.msk.f32.vlgmr.msra.gmra.mrb[0].mxu1 %vm262_vm1, %v237_v16  ;;  %v219_v44 = vld [vmem:[%s2739_s1 + $0x78] sm:$0xff]  ;;  %v1586_v45 = vld [vmem:[%s2739_s1 + $0x388] sm:$0xff]  ;;  %v2225_v47 = vld [vmem:[%s2100_s22 + $0x20] sm:$0xff]  ;;  %v1782_v49 = vpack.c.bf16 %v1583_v42, %v1581_v39 }
  0x1d   : > { %1695 = vmatpush1.bf16.msra.mxu1 %v1694_v17  ;;  %1569 = vmatmul.mubr.msk.f32.vlgmr.msra.gmra.mrb[0].mxu0 %vm262_vm1, %v238_v19  ;;  %v1588_v46 = vld [vmem:[%s2739_s1 + $0x398] sm:$0xff]  ;;  %v1704_v50 = vpack.c.bf16 %v219_v44, %v217_v43  ;;  %v216_v51 = vld [vmem:[%s2739_s1 + $0x60] sm:$0xff]  ;;  %v218_v52 = vld [vmem:[%s2739_s1 + $0x70] sm:$0xff]  ;;  %v2236_v53 = vsel %vm236_vm0, %v231_v40, 0.0  ;;  %v725_v55 = vrot.slane %v2225_v47, 1 }
  0x1e   : > { %1775 = vmatpush1.bf16.msra.mxu0 %v1774_v20  ;;  %1697 = vmatprep.subr.bf16.mxu1 %v1696_v21  ;;  %v1585_v54 = vld [vmem:[%s2739_s1 + $0x380] sm:$0xff]  ;;  %v1784_v56 = vpack.c.bf16 %v1588_v46, %v1586_v45  ;;  %v1587_v57 = vld [vmem:[%s2739_s1 + $0x390] sm:$0xff]  ;;  %v221_v58 = vld [vmem:[%s2739_s1 + $0x88] sm:$0xff]  ;;  %v1706_v63 = vpack.c.bf16 %v218_v52, %v216_v51  ;;  %v464_v52 = vrot.slane %v2191_v33, 2 }
  0x1f   : > { %1777 = vmatprep.subr.bf16.mxu0 %v1776_v25  ;;  %345 = vmatprep.mubr.f32.mxu1 %v1944_v7  ;;  %v223_v59 = vld [vmem:[%s2739_s1 + $0x98] sm:$0xff]  ;;  %v1590_v60 = vld [vmem:[%s2739_s1 + $0x3a8] sm:$0xff]  ;;  %v1786_v1 = vpack.c.bf16 %v1587_v57, %v1585_v54  ;;  %v220_v3 = vld [vmem:[%s2739_s1 + $0x80] sm:$0xff]  ;;  %v2270_v5 = vsel %vm236_vm0, %v725_v55, 0.0 }
  0x20   : > { %822 = vmatprep.mubr.f32.mxu0 %v1944_v7  ;;  %1494 = vmatmul.mubr.msk.f32.gmra.mrb[2].mxu1 %vm262_vm1, %v238_v19  ;;  %v1592_v62 = vld [vmem:[%s2739_s1 + $0x3b8] sm:$0xff]  ;;  %v1708_v2 = vpack.c.bf16 %v223_v59, %v221_v58  ;;  %v222_v4 = vld [vmem:[%s2739_s1 + $0x90] sm:$0xff]  ;;  %v1589_v6 = vld [vmem:[%s2739_s1 + $0x3a0] sm:$0xff]  ;;  %v462_v19 = vrot.slane %v2130_v0, 2 }
  0x21   : > { %1699 = vmatpush1.bf16.msra.mxu1 %v1698_v32  ;;  %1570 = vmatmul.mubr.msk.f32.gmra.mrb[2].mxu0 %vm262_vm1, %v2200_v38  ;;  %v1788_v8 = vpack.c.bf16 %v1592_v62, %v1590_v60  ;;  %v1591_v9 = vld [vmem:[%s2739_s1 + $0x3b0] sm:$0xff]  ;;  %v1502_v10 = vld [vmem:[%s2739_s1 + $0x148] sm:$0xff]  ;;  %v1504_v11 = vld [vmem:[%s2739_s1 + $0x158] sm:$0xff]  ;;  %v1710_v14 = vpack.c.bf16 %v222_v4, %v220_v3  ;;  %v2396_v3 = vsel %vm469_vm2, %v464_v52, 0.0 }
  0x22   : > { %1779 = vmatpush1.bf16.msra.mxu0 %v1778_v34  ;;  %1701 = vmatprep.subr.bf16.mxu1 %v1700_v35  ;;  %v1598_v12 = vld [vmem:[%s2739_s1 + $0x3c8] sm:$0xff]  ;;  %v1600_v13 = vld [vmem:[%s2739_s1 + $0x3d8] sm:$0xff]  ;;  %v1790_v15 = vpack.c.bf16 %v1591_v9, %v1589_v6  ;;  %v1712_v16 = vpack.c.bf16 %v1504_v11, %v1502_v10  ;;  %v1501_v17 = vld [vmem:[%s2739_s1 + $0x140] sm:$0xff]  ;;  %v2324_v29 = vsel %vm469_vm2, %v462_v19, 0.0  ;;  %v849_v6 = vrot.slane %v2225_v47, 2 }
  0x23   : > { %1781 = vmatprep.subr.bf16.mxu0 %v1780_v41  ;;  %351 = vmatprep.mubr.f32.mxu1 %v1944_v7  ;;  %v1503_v18 = vld [vmem:[%s2739_s1 + $0x150] sm:$0xff]  ;;  %v1597_v20 = vld [vmem:[%s2739_s1 + $0x3c0] sm:$0xff]  ;;  %v1792_v21 = vpack.c.bf16 %v1600_v13, %v1598_v12  ;;  %v1506_v23 = vld [vmem:[%s2739_s1 + $0x168] sm:$0xff] }
  0x24   : > { %828 = vmatprep.mubr.f32.mxu0 %v1944_v7  ;;  %1495 = vmatmul.mubr.msk.f32.gmra.mrb[4].mxu1 %vm262_vm1, %v2200_v38  ;;  %v1599_v22 = vld [vmem:[%s2739_s1 + $0x3d0] sm:$0xff]  ;;  %v1508_v25 = vld [vmem:[%s2739_s1 + $0x178] sm:$0xff]  ;;  %v1602_v26 = vld [vmem:[%s2739_s1 + $0x3e8] sm:$0xff]  ;;  %v1714_v28 = vpack.c.bf16 %v1503_v18, %v1501_v17  ;;  %v2430_v19 = vsel %vm469_vm2, %v849_v6, 0.0 }
  0x25   : > { %1703 = vmatpush1.bf16.msra.mxu1 %v1702_v48  ;;  %1571 = vmatmul.mubr.msk.f32.gmra.mrb[4].mxu0 %vm262_vm1, %v2236_v53  ;;  %v1604_v27 = vld [vmem:[%s2739_s1 + $0x3f8] sm:$0xff]  ;;  %v1794_v30 = vpack.c.bf16 %v1599_v22, %v1597_v20  ;;  %v1716_v31 = vpack.c.bf16 %v1508_v25, %v1506_v23  ;;  %v1505_v32 = vld [vmem:[%s2739_s1 + $0x160] sm:$0xff]  ;;  %v1507_v34 = vld [vmem:[%s2739_s1 + $0x170] sm:$0xff] }
  0x26   : > { %1783 = vmatpush1.bf16.msra.mxu0 %v1782_v49  ;;  %1705 = vmatprep.subr.bf16.mxu1 %v1704_v50  ;;  %v1601_v35 = vld [vmem:[%s2739_s1 + $0x3e0] sm:$0xff]  ;;  %v1796_v37 = vpack.c.bf16 %v1604_v27, %v1602_v26  ;;  %v1603_v39 = vld [vmem:[%s2739_s1 + $0x3f0] sm:$0xff]  ;;  %v1510_v40 = vld [vmem:[%s2739_s1 + $0x188] sm:$0xff]  ;;  %v1718_v44 = vpack.c.bf16 %v1507_v34, %v1505_v32  ;;  %v2362_v50 = vsel %vm469_vm2, %v463_v36, 0.0 }
  0x27   : > { %1785 = vmatprep.subr.bf16.mxu0 %v1784_v56  ;;  %357 = vmatprep.mubr.f32.mxu1 %v1944_v7  ;;  %v1512_v41 = vld [vmem:[%s2739_s1 + $0x198] sm:$0xff]  ;;  %v1606_v42 = vld [vmem:[%s2739_s1 + $0x408] sm:$0xff]  ;;  %v1798_v45 = vpack.c.bf16 %v1603_v39, %v1601_v35  ;;  %v1509_v48 = vld [vmem:[%s2739_s1 + $0x180] sm:$0xff] }
  0x28   : > { %834 = vmatprep.mubr.f32.mxu0 %v1944_v7  ;;  %1496 = vmatmul.mubr.msk.f32.gmra.mrb[6].mxu1 %vm262_vm1, %v2236_v53  ;;  %v1608_v43 = vld [vmem:[%s2739_s1 + $0x418] sm:$0xff]  ;;  %v1720_v46 = vpack.c.bf16 %v1512_v41, %v1510_v40  ;;  %v1511_v49 = vld [vmem:[%s2739_s1 + $0x190] sm:$0xff]  ;;  %v1605_v51 = vld [vmem:[%s2739_s1 + $0x400] sm:$0xff] }
  0x29   : > { %1707 = vmatpush1.bf16.msra.mxu1 %v1706_v63  ;;  %1572 = vmatmul.mubr.msk.f32.gmra.mrb[6].mxu0 %vm262_vm1, %v2270_v5  ;;  %v1800_v54 = vpack.c.bf16 %v1608_v43, %v1606_v42  ;;  %v1607_v55 = vld [vmem:[%s2739_s1 + $0x410] sm:$0xff]  ;;  %v1514_v56 = vld [vmem:[%s2739_s1 + $0x1a8] sm:$0xff]  ;;  %v1516_v57 = vld [vmem:[%s2739_s1 + $0x1b8] sm:$0xff]  ;;  %v1722_v60 = vpack.c.bf16 %v1511_v49, %v1509_v48 }
  0x2a   : > { %1787 = vmatpush1.bf16.msra.mxu0 %v1786_v1  ;;  %1709 = vmatprep.subr.bf16.mxu1 %v1708_v2  ;;  %v1610_v58 = vld [vmem:[%s2739_s1 + $0x428] sm:$0xff]  ;;  %v1612_v59 = vld [vmem:[%s2739_s1 + $0x438] sm:$0xff]  ;;  %v1802_v62 = vpack.c.bf16 %v1607_v55, %v1605_v51  ;;  %v1724_v63 = vpack.c.bf16 %v1516_v57, %v1514_v56  ;;  %v1513_v1 = vld [vmem:[%s2739_s1 + $0x1a0] sm:$0xff] }
  0x2b   : > { %1789 = vmatprep.subr.bf16.mxu0 %v1788_v8  ;;  %436 = vmatprep.mubr.f32.mxu1 %v1944_v7  ;;  %v1515_v2 = vld [vmem:[%s2739_s1 + $0x1b0] sm:$0xff]  ;;  %v1609_v4 = vld [vmem:[%s2739_s1 + $0x420] sm:$0xff]  ;;  %v1804_v8 = vpack.c.bf16 %v1612_v59, %v1610_v58  ;;  %v1518_v10 = vld [vmem:[%s2739_s1 + $0x1c8] sm:$0xff] }
  0x2c   : > { %940 = vmatprep.mubr.f32.mxu0 %v1944_v7  ;;  %v1611_v9 = vld [vmem:[%s2739_s1 + $0x430] sm:$0xff]  ;;  %v1520_v11 = vld [vmem:[%s2739_s1 + $0x1d8] sm:$0xff]  ;;  %v1614_v12 = vld [vmem:[%s2739_s1 + $0x448] sm:$0xff] }
  0x2d   : > { %1711 = vmatpush1.bf16.msra.mxu1 %v1710_v14  ;;  %v1616_v13 = vld [vmem:[%s2739_s1 + $0x458] sm:$0xff]  ;;  %v1726_v14 = vpack.c.bf16 %v1515_v2, %v1513_v1  ;;  %v1517_v17 = vld [vmem:[%s2739_s1 + $0x1c0] sm:$0xff]  ;;  %v1519_v18 = vld [vmem:[%s2739_s1 + $0x1d0] sm:$0xff] }
  0x2e   : > { %1791 = vmatpush1.bf16.msra.mxu0 %v1790_v15  ;;  %1713 = vmatprep.subr.bf16.mxu1 %v1712_v16  ;;  %v1806_v15 = vpack.c.bf16 %v1611_v9, %v1609_v4  ;;  %v1728_v16 = vpack.c.bf16 %v1520_v11, %v1518_v10  ;;  %v1613_v20 = vld [vmem:[%s2739_s1 + $0x440] sm:$0xff]  ;;  %v1615_v22 = vld [vmem:[%s2739_s1 + $0x450] sm:$0xff]  ;;  %v1526_v23 = vld [vmem:[%s2739_s1 + $0x1e8] sm:$0xff] }
  0x2f   : > { %1793 = vmatprep.subr.bf16.mxu0 %v1792_v21  ;;  %v1808_v21 = vpack.c.bf16 %v1616_v13, %v1614_v12  ;;  %v1528_v25 = vld [vmem:[%s2739_s1 + $0x1f8] sm:$0xff]  ;;  %v1622_v26 = vld [vmem:[%s2739_s1 + $0x468] sm:$0xff]  ;;  %v1525_v34 = vld [vmem:[%s2739_s1 + $0x1e0] sm:$0xff] }
  0x30   : > { %1497 = vmatmul.mubr.msk.f32.vlgmr.msra.gmra.mrb[0].mxu1 %vm262_vm1, %v2121_v61  ;;  %v1624_v27 = vld [vmem:[%s2739_s1 + $0x478] sm:$0xff]  ;;  %v1732_v32 = vpack.c.bf16 %v1528_v25, %v1526_v23  ;;  %v1527_v35 = vld [vmem:[%s2739_s1 + $0x1f0] sm:$0xff]  ;;  %v1530_v39 = vld [vmem:[%s2739_s1 + $0x208] sm:$0xff] }
  0x31   : > { %1715 = vmatpush1.bf16.msra.mxu1 %v1714_v28  ;;  %1593 = vmatmul.mubr.msk.f32.vlgmr.msra.gmra.mrb[0].mxu0 %vm262_vm1, %v2324_v29  ;;  %v461_v28 = vrot.slane %v2121_v61, 2  ;;  %v1621_v61 = vld [vmem:[%s2739_s1 + $0x460] sm:$0xff]  ;;  %v1812_v36 = vpack.c.bf16 %v1624_v27, %v1622_v26  ;;  %v1532_v40 = vld [vmem:[%s2739_s1 + $0x218] sm:$0xff]  ;;  %v1626_v41 = vld [vmem:[%s2739_s1 + $0x488] sm:$0xff] }
  0x32   : > { %1795 = vmatpush1.bf16.msra.mxu0 %v1794_v30  ;;  %1717 = vmatprep.subr.bf16.mxu1 %v1716_v31  ;;  %v1730_v30 = vpack.c.bf16 %v1519_v18, %v1517_v17  ;;  %v1810_v31 = vpack.c.bf16 %v1615_v22, %v1613_v20  ;;  %v1628_v42 = vld [vmem:[%s2739_s1 + $0x498] sm:$0xff]  ;;  %v1529_v48 = vld [vmem:[%s2739_s1 + $0x200] sm:$0xff]  ;;  %v1531_v49 = vld [vmem:[%s2739_s1 + $0x210] sm:$0xff] }
  0x33   : > { %1797 = vmatprep.subr.bf16.mxu0 %v1796_v37  ;;  %442 = vmatprep.mubr.f32.mxu1 %v1944_v7  ;;  %v1623_v37 = vld [vmem:[%s2739_s1 + $0x470] sm:$0xff]  ;;  %v470_v43 = vsel %vm469_vm2, %v461_v28, 0.0  ;;  %v1625_v51 = vld [vmem:[%s2739_s1 + $0x480] sm:$0xff]  ;;  %v1816_v52 = vpack.c.bf16 %v1628_v42, %v1626_v41  ;;  %v1534_v55 = vld [vmem:[%s2739_s1 + $0x228] sm:$0xff]  ;;  %v1738_v59 = vpack.c.bf16 %v1531_v49, %v1529_v48 }
  0x34   : > { %946 = vmatprep.mubr.f32.mxu0 %v1944_v7  ;;  %1498 = vmatmul.mubr.msk.f32.gmra.mrb[2].mxu1 %vm262_vm1, %v2130_v0  ;;  %v1536_v56 = vld [vmem:[%s2739_s1 + $0x238] sm:$0xff]  ;;  %v1630_v57 = vld [vmem:[%s2739_s1 + $0x4a8] sm:$0xff]  ;;  %v1535_v1 = vld [vmem:[%s2739_s1 + $0x230] sm:$0xff] }
  0x35   : > { %1719 = vmatpush1.bf16.msra.mxu1 %v1718_v44  ;;  %1594 = vmatmul.mubr.msk.f32.gmra.mrb[2].mxu0 %vm262_vm1, %v2362_v50  ;;  %v1734_v44 = vpack.c.bf16 %v1527_v35, %v1525_v34  ;;  %v1632_v58 = vld [vmem:[%s2739_s1 + $0x4b8] sm:$0xff]  ;;  %v1629_v2 = vld [vmem:[%s2739_s1 + $0x4a0] sm:$0xff]  ;;  %v1631_v6 = vld [vmem:[%s2739_s1 + $0x4b0] sm:$0xff] }
  0x36   : > { %1799 = vmatpush1.bf16.msra.mxu0 %v1798_v45  ;;  %1721 = vmatprep.subr.bf16.mxu1 %v1720_v46  ;;  %v1814_v45 = vpack.c.bf16 %v1623_v37, %v1621_v61  ;;  %v1736_v46 = vpack.c.bf16 %v1532_v40, %v1530_v39  ;;  %v1820_v4 = vpack.c.bf16 %v1632_v58, %v1630_v57  ;;  %v1540_v9 = vld [vmem:[%s2739_s1 + $0x258] sm:$0xff]  ;;  %v1634_v10 = vld [vmem:[%s2739_s1 + $0x4c8] sm:$0xff]  ;;  %v1635_v18 = vld [vmem:[%s2739_s1 + $0x4d0] sm:$0xff] }
  0x37   : > { %1801 = vmatprep.subr.bf16.mxu0 %v1800_v54  ;;  %448 = vmatprep.mubr.f32.mxu1 %v1944_v7  ;;  %v1627_v54 = vld [vmem:[%s2739_s1 + $0x490] sm:$0xff]  ;;  %v1636_v11 = vld [vmem:[%s2739_s1 + $0x4d8] sm:$0xff]  ;;  %v1822_v13 = vpack.c.bf16 %v1631_v6, %v1629_v2  ;;  %v1542_v20 = vld [vmem:[%s2739_s1 + $0x268] sm:$0xff] }
  0x38   : > { %952 = vmatprep.mubr.f32.mxu0 %v1944_v7  ;;  %1499 = vmatmul.mubr.msk.f32.gmra.mrb[4].mxu1 %vm262_vm1, %v2170_v24  ;;  %v1824_v17 = vpack.c.bf16 %v1636_v11, %v1634_v10  ;;  %v1638_v22 = vld [vmem:[%s2739_s1 + $0x4e8] sm:$0xff]  ;;  %v1640_v23 = vld [vmem:[%s2739_s1 + $0x4f8] sm:$0xff]  ;;  %v1639_v35 = vld [vmem:[%s2739_s1 + $0x4f0] sm:$0xff] }
  0x39   : > { %1723 = vmatpush1.bf16.msra.mxu1 %v1722_v60  ;;  %1595 = vmatmul.mubr.msk.f32.gmra.mrb[4].mxu0 %vm262_vm1, %v2396_v3  ;;  %v1818_v60 = vpack.c.bf16 %v1627_v54, %v1625_v51  ;;  %v2572_v26 = vld [vmem:[%s2100_s22 + $0x28] sm:$0xff]  ;;  %v1828_v34 = vpack.c.bf16 %v1640_v23, %v1638_v22  ;;  %v1645_v41 = vld [vmem:[%s2739_s1 + $0x500] sm:$0xff]  ;;  %v1647_v42 = vld [vmem:[%s2739_s1 + $0x510] sm:$0xff] }
  0x3a   : > { %1803 = vmatpush1.bf16.msra.mxu0 %v1802_v62  ;;  %1725 = vmatprep.subr.bf16.mxu1 %v1724_v63  ;;  %v1740_v62 = vpack.c.bf16 %v1536_v56, %v1534_v55  ;;  %v1533_v63 = vld [vmem:[%s2739_s1 + $0x220] sm:$0xff]  ;;  %v1646_v61 = vld [vmem:[%s2739_s1 + $0x508] sm:$0xff]  ;;  %v1651_v48 = vld [vmem:[%s2739_s1 + $0x530] sm:$0xff] }
  0x3b   : > { %1805 = vmatprep.subr.bf16.mxu0 %v1804_v8  ;;  %454 = vmatprep.mubr.f32.mxu1 %v1944_v7  ;;  %v1538_v8 = vld [vmem:[%s2739_s1 + $0x248] sm:$0xff]  ;;  %v1742_v12 = vpack.c.bf16 %v1535_v1, %v1533_v63  ;;  %v1655_v55 = vld [vmem:[%s2739_s1 + $0x550] sm:$0xff]  ;;  %v1660_v57 = vld [vmem:[%s2739_s1 + $0x578] sm:$0xff] }
  0x3c   : > { %958 = vmatprep.mubr.f32.mxu0 %v1944_v7  ;;  %1500 = vmatmul.mubr.msk.f32.gmra.mrb[6].mxu1 %vm262_vm1, %v2191_v33  ;;  %v1654_v51 = vld [vmem:[%s2739_s1 + $0x548] sm:$0xff]  ;;  %v1664_v63 = vld [vmem:[%s2739_s1 + $0x598] sm:$0xff]  ;;  %v1661_v6 = vld [vmem:[%s2739_s1 + $0x580] sm:$0xff] }
  0x3d   : > { %1727 = vmatpush1.bf16.msra.mxu1 %v1726_v14  ;;  %1596 = vmatmul.mubr.msk.f32.gmra.mrb[6].mxu0 %vm262_vm1, %v2430_v19  ;;  %v1744_v14 = vpack.c.bf16 %v1540_v9, %v1538_v8  ;;  %v1218_v8 = vrot.slane %v2572_v26, 2 }
  0x3e   : > { %1807 = vmatpush1.bf16.msra.mxu0 %v1806_v15  ;;  %1729 = vmatprep.subr.bf16.mxu1 %v1728_v16  ;;  %v1539_v15 = vld [vmem:[%s2739_s1 + $0x250] sm:$0xff]  ;;  %v1633_v16 = vld [vmem:[%s2739_s1 + $0x4c0] sm:$0xff] }
  0x3f   : > { %1809 = vmatprep.subr.bf16.mxu0 %v1808_v21  ;;  %571 = vmatprep.mubr.f32.mxu1 %v1944_v7  ;;  %v1544_v21 = vld [vmem:[%s2739_s1 + $0x278] sm:$0xff]  ;;  %v1826_v27 = vpack.c.bf16 %v1635_v18, %v1633_v16 }
  0x40   : > { %1061 = vmatprep.mubr.f32.mxu0 %v1944_v7  ;;  %v1748_v28 = vpack.c.bf16 %v1544_v21, %v1542_v20 }
  0x41   : > { %1731 = vmatpush1.bf16.msra.mxu1 %v1730_v30  ;;  %v1541_v30 = vld [vmem:[%s2739_s1 + $0x260] sm:$0xff] }
  0x42   : > { %1811 = vmatpush1.bf16.msra.mxu0 %v1810_v31  ;;  %1733 = vmatprep.subr.bf16.mxu1 %v1732_v32  ;;  %v1543_v31 = vld [vmem:[%s2739_s1 + $0x270] sm:$0xff]  ;;  %v1637_v32 = vld [vmem:[%s2739_s1 + $0x4e0] sm:$0xff] }
  0x43   : > { %1813 = vmatprep.subr.bf16.mxu0 %v1812_v36  ;;  %v1648_v36 = vld [vmem:[%s2739_s1 + $0x518] sm:$0xff]  ;;  %v1750_v37 = vpack.c.bf16 %v1543_v31, %v1541_v30  ;;  %v1830_v39 = vpack.c.bf16 %v1639_v35, %v1637_v32 }
  0x44   : > { %1521 = vmatmul.mubr.msk.f32.vlgmr.msra.gmra.mrb[0].mxu1 %vm262_vm1, %v470_v43  ;;  %v1832_v40 = vpack.c.bf16 %v1648_v36, %v1646_v61  ;;  %v1650_v43 = vld [vmem:[%s2739_s1 + $0x528] sm:$0xff] }
  0x45   : > { %1735 = vmatpush1.bf16.msra.mxu1 %v1734_v44  ;;  %1617 = vmatmul.mubr.msk.f32.vlgmr.msra.gmra.mrb[0].mxu0 %vm262_vm1, %v2170_v24  ;;  %v1652_v44 = vld [vmem:[%s2739_s1 + $0x538] sm:$0xff] }
  0x46   : > { %1815 = vmatpush1.bf16.msra.mxu0 %v1814_v45  ;;  %1737 = vmatprep.subr.bf16.mxu1 %v1736_v46  ;;  %v1834_v45 = vpack.c.bf16 %v1647_v42, %v1645_v41  ;;  %v1649_v46 = vld [vmem:[%s2739_s1 + $0x520] sm:$0xff]  ;;  %v1836_v49 = vpack.c.bf16 %v1652_v44, %v1650_v43 }
  0x47   : > { %1817 = vmatprep.subr.bf16.mxu0 %v1816_v52  ;;  %577 = vmatprep.mubr.f32.mxu1 %v1944_v7  ;;  %v1656_v52 = vld [vmem:[%s2739_s1 + $0x558] sm:$0xff]  ;;  %v1838_v54 = vpack.c.bf16 %v1651_v48, %v1649_v46 }
  0x48   : > { %1067 = vmatprep.mubr.f32.mxu0 %v1944_v7  ;;  %1522 = vmatmul.mubr.msk.f32.gmra.mrb[2].mxu1 %vm262_vm1, %v2324_v29  ;;  %v1537_v29 = vld [vmem:[%s2739_s1 + $0x240] sm:$0xff]  ;;  %v1840_v56 = vpack.c.bf16 %v1656_v52, %v1654_v51 }
  0x49   : > { %1739 = vmatpush1.bf16.msra.mxu1 %v1738_v59  ;;  %1618 = vmatmul.mubr.msk.f32.gmra.mrb[2].mxu0 %vm262_vm1, %v2191_v33  ;;  %v1746_v25 = vpack.c.bf16 %v1539_v15, %v1537_v29  ;;  %v1094_v59 = vrot.slane %v2572_v26, 1 }
  0x4a   : > { %1819 = vmatpush1.bf16.msra.mxu0 %v1818_v60  ;;  %1741 = vmatprep.subr.bf16.mxu1 %v1740_v62  ;;  %v1659_v60 = vld [vmem:[%s2739_s1 + $0x570] sm:$0xff] }
  0x4b   : > { %1821 = vmatprep.subr.bf16.mxu0 %v1820_v4  ;;  %583 = vmatprep.mubr.f32.mxu1 %v1944_v7  ;;  %v1096_v2 = vsel %vm236_vm0, %v1094_v59, 0.0 }
  0x4c   : > { %1073 = vmatprep.mubr.f32.mxu0 %v1944_v7  ;;  %1523 = vmatmul.mubr.msk.f32.gmra.mrb[4].mxu1 %vm262_vm1, %v2362_v50 }
  0x4d   : > { %1743 = vmatpush1.bf16.msra.mxu1 %v1742_v12  ;;  %1619 = vmatmul.mubr.msk.f32.gmra.mrb[4].mxu0 %vm262_vm1, %v2225_v47 }
  0x4e   : > { %1823 = vmatpush1.bf16.msra.mxu0 %v1822_v13  ;;  %1745 = vmatprep.subr.bf16.mxu1 %v1744_v14  ;;  %v1344_v13 = vlaneseq }
  0x4f   : > { %1825 = vmatprep.subr.bf16.mxu0 %v1824_v17  ;;  %589 = vmatprep.mubr.f32.mxu1 %v1944_v7 }
  0x50   : > { %1079 = vmatprep.mubr.f32.mxu0 %v1944_v7  ;;  %1524 = vmatmul.mubr.msk.f32.gmra.mrb[6].mxu1 %vm262_vm1, %v2396_v3  ;;  %v2690_v17 = vshrl.u32 %v1344_v13, 7 }
  0x51   : > { %1747 = vmatpush1.bf16.msra.mxu1 %v1746_v25  ;;  %1620 = vmatmul.mubr.msk.f32.gmra.mrb[6].mxu0 %vm262_vm1, %v2572_v26  ;;  %v1342_v25 = vld [vmem:[%s2740_s2] sm:$0x3] }
  0x52   : > { %1827 = vmatpush1.bf16.msra.mxu0 %v1826_v27  ;;  %1749 = vmatprep.subr.bf16.mxu1 %v1748_v28  ;;  %v1350_v26 = vsub.s32 1, %v2690_v17  ;;  %v1362_v27 = vld [vmem:[%s2741_s3] sm:$0x3]  ;;  %vm1392_vm3 = vcmp.lt.s32.totalorder %v2690_v17, 4 }
  0x53   : > { %1829 = vmatprep.subr.bf16.mxu0 %v1828_v34  ;;  %692 = vmatprep.mubr.f32.mxu1 %v1944_v7 }
  0x54   : > { %1185 = vmatprep.mubr.f32.mxu0 %v1944_v7  ;;  %v1351_v31 = vrot.slane %v1342_v25, %v1350_v26 }
  0x55   : > { %1751 = vmatpush1.bf16.msra.mxu1 %v1750_v37 }
  0x56   : > { %1831 = vmatpush1.bf16.msra.mxu0 %v1830_v39  ;;  %1852 = vmatprep.subr.bf16.mxu1 %v1832_v40  ;;  %v1371_v39 = vrot.slane %v1362_v27, %v1350_v26 }
  0x57   : > { %1833 = vmatprep.subr.bf16.mxu0 %v1832_v40 }
  0x58   : > { %1545 = vmatmul.mubr.msk.f32.vlgmr.msra.gmra.mrb[0].mxu1 %vm262_vm1, %v2130_v0  ;;  %v1653_v0 = vld [vmem:[%s2739_s1 + $0x540] sm:$0xff] }
  0x59   : > { %1641 = vmatmul.mubr.msk.f32.vlgmr.msra.gmra.mrb[0].mxu0 %vm262_vm1, %v2200_v38  ;;  %1857 = vmatpush1.bf16.msra.mxu1 %v1834_v45  ;;  %v1658_v38 = vld [vmem:[%s2739_s1 + $0x568] sm:$0xff]  ;;  %v1842_v58 = vpack.c.bf16 %v1655_v55, %v1653_v0 }
  0x5a   : > { %1835 = vmatpush1.bf16.msra.mxu0 %v1834_v45  ;;  %698 = vmatprep.mubr.f32.mxu1 %v1944_v7  ;;  %v1844_v62 = vpack.c.bf16 %v1660_v57, %v1658_v38 }
  0x5b   : > { %1191 = vmatprep.mubr.f32.mxu0 %v1944_v7  ;;  %1837 = vmatprep.subr.bf16.mxu0 %v1836_v49 }
  0x5c   : > { %1546 = vmatmul.mubr.msk.f32.gmra.mrb[2].mxu1 %vm262_vm1, %v2170_v24  ;;  %1853 = vmatprep.subr.bf16.mxu1 %v1836_v49  ;;  %v1657_v24 = vld [vmem:[%s2739_s1 + $0x560] sm:$0xff] }
  0x5d   : > { %1642 = vmatmul.mubr.msk.f32.gmra.mrb[2].mxu0 %vm262_vm1, %v2236_v53  ;;  %1858 = vmatpush1.bf16.msra.mxu1 %v1838_v54  ;;  %v1662_v53 = vld [vmem:[%s2739_s1 + $0x588] sm:$0xff]  ;;  %v1846_v1 = vpack.c.bf16 %v1659_v60, %v1657_v24 }
  0x5e   : > { %1839 = vmatpush1.bf16.msra.mxu0 %v1838_v54  ;;  %704 = vmatprep.mubr.f32.mxu1 %v1944_v7  ;;  %v1848_v4 = vpack.c.bf16 %v1664_v63, %v1662_v53 }
  0x5f   : > { %1197 = vmatprep.mubr.f32.mxu0 %v1944_v7  ;;  %1841 = vmatprep.subr.bf16.mxu0 %v1840_v56 }
  0x60   : > { %1547 = vmatmul.mubr.msk.f32.gmra.mrb[4].mxu1 %vm262_vm1, %v2191_v33  ;;  %1854 = vmatprep.subr.bf16.mxu1 %v1840_v56  ;;  %v1663_v33 = vld [vmem:[%s2739_s1 + $0x590] sm:$0xff] }
  0x61   : > { %1643 = vmatmul.mubr.msk.f32.gmra.mrb[4].mxu0 %vm262_vm1, %v2270_v5  ;;  %1859 = vmatpush1.bf16.msra.mxu1 %v1842_v58  ;;  %v1850_v5 = vpack.c.bf16 %v1663_v33, %v1661_v6 }
  0x62   : > { %1843 = vmatpush1.bf16.msra.mxu0 %v1842_v58  ;;  %710 = vmatprep.mubr.f32.mxu1 %v1944_v7 }
  0x63   : > { %1203 = vmatprep.mubr.f32.mxu0 %v1944_v7  ;;  %1845 = vmatprep.subr.bf16.mxu0 %v1844_v62 }
  0x64   : > { %1548 = vmatmul.mubr.msk.f32.gmra.mrb[6].mxu1 %vm262_vm1, %v2225_v47  ;;  %1855 = vmatprep.subr.bf16.mxu1 %v1844_v62  ;;  %v1220_v47 = vsel %vm469_vm2, %v1218_v8, 0.0 }
  0x65   : > { %1644 = vmatmul.mubr.msk.f32.gmra.mrb[6].mxu0 %vm262_vm1, %v1096_v2  ;;  %1860 = vmatpush1.bf16.msra.mxu1 %v1846_v1 }
  0x66   : > { %1847 = vmatpush1.bf16.msra.mxu0 %v1846_v1  ;;  %1856 = vmatprep.subr.bf16.mxu1 %v1848_v4 }
  0x67   : > { %1849 = vmatprep.subr.bf16.mxu0 %v1848_v4  ;;  %1309 = vmatprep.mubr.f32.mxu0 %v1944_v7 }
  0x68   : > { %1321 = vmatprep.mubr.f32.mxu1 %v1944_v7 }
  0x69   : > { %1861 = vmatpush1.bf16.msra.mxu1 %v1850_v5 }
  0x6a   : > { %1851 = vmatpush1.bf16.msra.mxu0 %v1850_v5 }
  0x6c   : > { %1667 = vmatmul.mubr.msk.f32.vlgmr.msra.gmra.mrb[8].mxu1 %vm262_vm1, %v2430_v19 }
  0x6d   : > { %1665 = vmatmul.mubr.msk.f32.vlgmr.msra.gmra.mrb[0].mxu0 %vm262_vm1, %v2362_v50  ;;  %1327 = vmatprep.mubr.f32.mxu1 %v1944_v7 }
  0x6e   : > { %1315 = vmatprep.mubr.f32.mxu0 %v1944_v7 }
  0x70   : > { %1668 = vmatmul.mubr.msk.f32.gmra.mrb[10].mxu1 %vm262_vm1, %v1220_v47 }
  0x71   : > { %1666 = vmatmul.mubr.msk.f32.gmra.mrb[2].mxu0 %vm262_vm1, %v2396_v3  ;;  %v1346_v3 = vsub.s32 0, %v2690_v17 }
  0x73   : > { %v1347_v28 = vrot.slane %v1342_v25, %v1346_v3  ;;  %v1367_v34 = vrot.slane %v1362_v27, %v1346_v3 }
 0x12b   : > { %v694_v9 = vpop.f32.mrb[0].mxu1 }
 0x12c   : > { %v696_v10 = vpop.f32.mrb[1].mxu1 }
 0x12f   : > { %v700_v11 = vpop.f32.mrb[2].mxu1 }
 0x130   : > { %v702_v12 = vpop.f32.mrb[3].mxu1 }
 0x133   : > { %v706_v19 = vpop.f32.mrb[4].mxu1 }
 0x134   : > { %v1199_v14 = vpop.f32.mrb[4].mxu0  ;;  %v708_v29 = vpop.f32.mrb[5].mxu1 }
 0x135   : > { %v1866_v50 = vadd.f32 %v1199_v14, %v706_v19  ;;  %v1201_v15 = vpop.f32.mrb[5].mxu0 }
 0x136   : > { %v1868_v16 = vadd.f32 %v1201_v15, %v708_v29 }
 0x137   : > { %v712_v18 = vpop.f32.mrb[6].mxu1 }
 0x138   : > { %v1205_v7 = vpop.f32.mrb[6].mxu0  ;;  %v714_v20 = vpop.f32.mrb[7].mxu1 }
 0x139   : > { %v1870_v21 = vadd.f32 %v1205_v7, %v712_v18  ;;  %v1207_v22 = vpop.f32.mrb[7].mxu0 }
 0x13a   : > { %v1872_v23 = vadd.f32 %v1207_v22, %v714_v20 }
 0x13f   : > { %v1323_v30 = vpop.f32.mrb[8].mxu1 }
 0x140   : > { %v1311_v32 = vpop.f32.mrb[0].mxu0  ;;  %v1867_v35 = vadd.f32 %v1866_v50, %v1323_v30  ;;  %v1325_v61 = vpop.f32.mrb[9].mxu1 }
 0x141   : > { %v1862_v36 = vadd.f32 %v1311_v32, %v694_v9  ;;  %v1313_v37 = vpop.f32.mrb[1].mxu0  ;;  %v1869_v40 = vadd.f32 %v1868_v16, %v1325_v61 }
 0x142   : > { %v1358_v41 = vmul.f32 %v1867_v35, %v1347_v28  ;;  %v1863_v42 = vadd.f32 %v1313_v37, %v696_v10 }
 0x143   : > { %v1354_v43 = vmul.f32 %v1862_v36, %v1347_v28  ;;  %v1359_v44 = vmul.f32 %v1869_v40, %v1351_v31  ;;  %v1329_v45 = vpop.f32.mrb[10].mxu1 }
 0x144   : > { %v1378_v46 = vadd.f32 %v1367_v34, %v1358_v41  ;;  %v1355_v48 = vmul.f32 %v1863_v42, %v1351_v31  ;;  %v1317_v49 = vpop.f32.mrb[2].mxu0  ;;  %v1871_v51 = vadd.f32 %v1870_v21, %v1329_v45  ;;  %v1331_v52 = vpop.f32.mrb[11].mxu1 }
 0x145   : > { %v1374_v54 = vadd.f32 %v1367_v34, %v1354_v43  ;;  %v1379_v0 = vadd.f32 %v1371_v39, %v1359_v44  ;;  %v1864_v55 = vadd.f32 %v1317_v49, %v700_v11  ;;  %v1319_v56 = vpop.f32.mrb[3].mxu0  ;;  %v1873_v38 = vadd.f32 %v1872_v23, %v1331_v52 }
 0x146   : > { %v1386_v57 = vmax.f32 %v1378_v46, 0.0  ;;  %v1375_v58 = vadd.f32 %v1371_v39, %v1355_v48  ;;  %v1360_v59 = vmul.f32 %v1871_v51, %v1347_v28  ;;  %v1865_v24 = vadd.f32 %v1319_v56, %v702_v12 }
 0x147   : > { %v1382_v60 = vmax.f32 %v1374_v54, 0.0  ;;  %v1387_v62 = vmax.f32 %v1379_v0, 0.0  ;;  %v1356_v53 = vmul.f32 %v1864_v55, %v1347_v28  ;;  %v1361_v63 = vmul.f32 %v1873_v38, %v1351_v31 }
 0x148   : > { %v1397_v1 = vsel %vm1392_vm3, %v1386_v57, 0.0  ;;  %v1383_v2 = vmax.f32 %v1375_v58, 0.0  ;;  %v1380_v4 = vadd.f32 %v1367_v34, %v1360_v59  ;;  %v1357_v6 = vmul.f32 %v1865_v24, %v1351_v31 }
 0x149   : > { %v1393_v33 = vsel %vm1392_vm3, %v1382_v60, 0.0  ;;  %1406 = vst [vmem:[%s2705_s16 + $0x20] sm:$0xff] %v1397_v1  ;;  %v1398_v5 = vsel %vm1392_vm3, %v1387_v62, 0.0  ;;  %v1376_v8 = vadd.f32 %v1367_v34, %v1356_v53  ;;  %v1381_v47 = vadd.f32 %v1371_v39, %v1361_v63 }
 0x14a   : > { %1401 = vst [vmem:[%s2705_s16] sm:$0xff] %v1393_v33  ;;  %v1394_v9 = vsel %vm1392_vm3, %v1383_v2, 0.0  ;;  %1407 = vst.msk [vmem:[%s2705_s16 + $0x28] sm:$0xff] %vm1402_vm4, %v1398_v5  ;;  %v1388_v10 = vmax.f32 %v1380_v4, 0.0  ;;  %v1377_v11 = vadd.f32 %v1371_v39, %v1357_v6 }
 0x14b   : > { %1403 = vst.msk [vmem:[%s2705_s16 + $0x8] sm:$0xff] %vm1402_vm4, %v1394_v9  ;;  %v1384_v12 = vmax.f32 %v1376_v8, 0.0  ;;  %v1389_v13 = vmax.f32 %v1381_v47, 0.0 }
 0x14c   : > { %v1399_v19 = vsel %vm1392_vm3, %v1388_v10, 0.0  ;;  %v1385_v14 = vmax.f32 %v1377_v11, 0.0 }
 0x14d   : > { %v1395_v29 = vsel %vm1392_vm3, %v1384_v12, 0.0  ;;  %1408 = vst [vmem:[%s2705_s16 + $0x30] sm:$0xff] %v1399_v19  ;;  %v1400_v50 = vsel %vm1392_vm3, %v1389_v13, 0.0 }
 0x14e   : > { %1404 = vst [vmem:[%s2705_s16 + $0x10] sm:$0xff] %v1395_v29  ;;  %v1396_v15 = vsel %vm1392_vm3, %v1385_v14, 0.0  ;;  %1409 = vst.msk [vmem:[%s2705_s16 + $0x38] sm:$0xff] %vm1402_vm4, %v1400_v50 }
 0x14f   : > { %1405 = vst.msk [vmem:[%s2705_s16 + $0x18] sm:$0xff] %vm1402_vm4, %v1396_v15 }
 0x150 PF: > { %s14_s15 = sadd.s32 1, %s1942_s15  }
 0x151   : > { %p11_p4 = scmp.ge.s32.totalorder %s14_s15, 4  }
 0x153   :  { %13 = sbr.rel (!%p11_p4) target bundleno = 1 (0x1), region = 74 }

</bundles_post_ra>
